<compile_context>
chip_gen: v7x
topology: tpu7x:2x2x1
jax: 0.10.0
libtpu: 0.0.40
codegen_flags: <defaults>
</compile_context>

<pallas_src>
import functools
import math

import jax
import jax.numpy as jnp
from jax import lax
from jax.experimental import pallas as pl
from jax.experimental.pallas import tpu as pltpu

LN_EPS = 1e-5


def _bytes(shape, dtype):
    return math.prod(shape) * jnp.dtype(dtype).itemsize


def _encoder_gru_kernel(x_ref, wih1_ref, whh1_ref, bih1_ref, bhh1_ref,
                        g1_ref, b1_ref,
                        wih2_ref, whh2_ref, bih2_ref, bhh2_ref,
                        g2_ref, b2_ref,
                        out_ref,
                        gi_scr, h1_ref, h2_ref,
                        *, chunk, b_pad):
    """Fused 2-layer GRU + LayerNorms over one time-chunk.

    x_ref   : (chunk*b_pad, F)  time-chunk of the (time-major, batch-padded,
                                flattened) input, streamed per grid step.
    wih1    : (3, F, H)   per-gate [r|z|n] input weights, layer 1
    whh1    : (3, H, H)   per-gate recurrent weights, layer 1
    bih1/bhh1: (3, 1, H)
    g1/b1   : (1, H)      LayerNorm1 gamma/beta
    wih2    : (3, H, E), whh2: (3, E, E), bih2/bhh2: (3, 1, E)
    g2/b2   : (1, E)      LayerNorm2 gamma/beta
    out_ref : (b_pad, E)  LayerNorm2(final hidden of layer 2)
    gi_scr  : (3, chunk*b_pad, H)  hoisted layer-1 input projection
    h1_ref  : (b_pad, H)  raw layer-1 recurrent state (persists across chunks)
    h2_ref  : (b_pad, E)  raw layer-2 recurrent state (persists across chunks)
    """
    c = pl.program_id(0)

    @pl.when(c == 0)
    def _():
        h1_ref[...] = jnp.zeros_like(h1_ref)
        h2_ref[...] = jnp.zeros_like(h2_ref)

    cdt = wih1_ref.dtype  # matmul operand dtype (f32 or bf16)

    # ---- Hoisted (non-recurrent) input projection for the whole chunk ------
    # One (chunk*b_pad, F) x (F, H) matmul per gate instead of `chunk` tiny
    # per-step matmuls.  Accumulate in f32.
    x_c = x_ref[...].astype(cdt)
    for g in range(3):
        gi_scr[g] = (jnp.dot(x_c, wih1_ref[g], preferred_element_type=jnp.float32)
                     + bih1_ref[g])

    h1 = h1_ref[...]
    h2 = h2_ref[...]
    gamma1 = g1_ref[...]
    beta1 = b1_ref[...]

    def step(i, carry):
        h1, h2 = carry
        row = i * b_pad

        # Layer 1: only the recurrent half is in the serial loop.
        gi_r = gi_scr[0, pl.ds(row, b_pad), :]
        gi_z = gi_scr[1, pl.ds(row, b_pad), :]
        gi_n = gi_scr[2, pl.ds(row, b_pad), :]
        h1c = h1.astype(cdt)
        gh_r = jnp.dot(h1c, whh1_ref[0], preferred_element_type=jnp.float32) + bhh1_ref[0]
        gh_z = jnp.dot(h1c, whh1_ref[1], preferred_element_type=jnp.float32) + bhh1_ref[1]
        gh_n = jnp.dot(h1c, whh1_ref[2], preferred_element_type=jnp.float32) + bhh1_ref[2]
        r = jax.nn.sigmoid(gi_r + gh_r)
        z = jax.nn.sigmoid(gi_z + gh_z)
        n = jnp.tanh(gi_n + r * gh_n)
        h1_new = (1.0 - z) * n + z * h1

        # Fused LayerNorm1 (PyTorch: biased variance, eps inside rsqrt);
        # the recurrence keeps using the *un-normalized* state.
        mu = jnp.mean(h1_new, axis=-1, keepdims=True)
        var = jnp.mean((h1_new - mu) ** 2, axis=-1, keepdims=True)
        y1 = (h1_new - mu) * lax.rsqrt(var + LN_EPS) * gamma1 + beta1

        # Layer 2 recurrence, fed directly from registers (no HBM round trip).
        y1c = y1.astype(cdt)
        h2c = h2.astype(cdt)
        i2_r = jnp.dot(y1c, wih2_ref[0], preferred_element_type=jnp.float32) + bih2_ref[0]
        i2_z = jnp.dot(y1c, wih2_ref[1], preferred_element_type=jnp.float32) + bih2_ref[1]
        i2_n = jnp.dot(y1c, wih2_ref[2], preferred_element_type=jnp.float32) + bih2_ref[2]
        g2_r = jnp.dot(h2c, whh2_ref[0], preferred_element_type=jnp.float32) + bhh2_ref[0]
        g2_z = jnp.dot(h2c, whh2_ref[1], preferred_element_type=jnp.float32) + bhh2_ref[1]
        g2_n = jnp.dot(h2c, whh2_ref[2], preferred_element_type=jnp.float32) + bhh2_ref[2]
        r2 = jax.nn.sigmoid(i2_r + g2_r)
        z2 = jax.nn.sigmoid(i2_z + g2_z)
        n2 = jnp.tanh(i2_n + r2 * g2_n)
        h2_new = (1.0 - z2) * n2 + z2 * h2
        return (h1_new, h2_new)

    h1, h2 = lax.fori_loop(0, chunk, step, (h1, h2), unroll=True)
    h1_ref[...] = h1
    h2_ref[...] = h2

    # Layer-2 output is only needed at the very end: one LayerNorm of the
    # final hidden state, written once (tiny (b_pad, E) HBM writeback).
    @pl.when(c == pl.num_programs(0) - 1)
    def _():
        mu = jnp.mean(h2, axis=-1, keepdims=True)
        var = jnp.mean((h2 - mu) ** 2, axis=-1, keepdims=True)
        out_ref[...] = ((h2 - mu) * lax.rsqrt(var + LN_EPS)
                        * g2_ref[...] + b2_ref[...]).astype(out_ref.dtype)


def encoder_gru_forward(x, params, *, time_chunk=4, compute_dtype=jnp.float32):
    """x: (B, T, n_features) batch_first.  Returns (B, 1, embedding_dim)."""
    B, T, F = x.shape
    H = params["w_hh1"].shape[1]
    E = params["w_hh2"].shape[1]

    # Pad batch to the 8-sublane granularity (f32); extra rows are discarded.
    B_pad = max(8, ((B + 7) // 8) * 8)
    # Time-chunk must divide T so the recurrence carry stays exact.
    chunk = max(1, min(time_chunk, T))
    while T % chunk:
        chunk -= 1
    rows = chunk * B_pad

    # Time-major, batch-padded, flattened to (T*B_pad, F) so each chunk block
    # is a plain 2-D tile (no in-kernel reshapes).
    x_tm = jnp.transpose(x, (1, 0, 2))
    if B_pad != B:
        x_tm = jnp.pad(x_tm, ((0, 0), (0, B_pad - B), (0, 0)))
    x2d = x_tm.reshape(T * B_pad, F).astype(jnp.float32)

    wdt = jnp.dtype(compute_dtype)  # bf16 recommended on v6e/v7x; f32 on v5e
    w_ih1 = params["w_ih1"].astype(wdt)
    w_hh1 = params["w_hh1"].astype(wdt)
    w_ih2 = params["w_ih2"].astype(wdt)
    w_hh2 = params["w_hh2"].astype(wdt)
    b_ih1, b_hh1 = params["b_ih1"], params["b_hh1"]
    b_ih2, b_hh2 = params["b_ih2"], params["b_hh2"]
    gamma1, beta1 = params["gamma1"], params["beta1"]
    gamma2, beta2 = params["gamma2"], params["beta2"]

    # Explicit VMEM budget: streamed x chunk + resident weights (x2 for
    # double-buffering) + scratch, plus headroom.
    block_bytes = (
        _bytes((rows, F), jnp.float32)
        + _bytes((3, F, H), wdt) + _bytes((3, H, H), wdt)
        + 2 * _bytes((3, 1, H), jnp.float32) + 2 * _bytes((1, H), jnp.float32)
        + _bytes((3, H, E), wdt) + _bytes((3, E, E), wdt)
        + 2 * _bytes((3, 1, E), jnp.float32) + 2 * _bytes((1, E), jnp.float32)
        + _bytes((B_pad, E), jnp.float32))
    scratch_bytes = (_bytes((3, rows, H), jnp.float32)
                     + _bytes((B_pad, H), jnp.float32)
                     + _bytes((B_pad, E), jnp.float32))
    vmem_limit = min(2 * block_bytes + scratch_bytes + (8 << 20), 100 << 20)

    grid_spec = pltpu.PrefetchScalarGridSpec(
        num_scalar_prefetch=0,
        grid=(T // chunk,),
        in_specs=[
            pl.BlockSpec((rows, F), lambda c: (c, 0)),       # streamed input chunk
            pl.BlockSpec((3, F, H), lambda c: (0, 0, 0)),    # resident weights
            pl.BlockSpec((3, H, H), lambda c: (0, 0, 0)),
            pl.BlockSpec((3, 1, H), lambda c: (0, 0, 0)),
            pl.BlockSpec((3, 1, H), lambda c: (0, 0, 0)),
            pl.BlockSpec((1, H), lambda c: (0, 0)),
            pl.BlockSpec((1, H), lambda c: (0, 0)),
            pl.BlockSpec((3, H, E), lambda c: (0, 0, 0)),
            pl.BlockSpec((3, E, E), lambda c: (0, 0, 0)),
            pl.BlockSpec((3, 1, E), lambda c: (0, 0, 0)),
            pl.BlockSpec((3, 1, E), lambda c: (0, 0, 0)),
            pl.BlockSpec((1, E), lambda c: (0, 0)),
            pl.BlockSpec((1, E), lambda c: (0, 0)),
        ],
        out_specs=pl.BlockSpec((B_pad, E), lambda c: (0, 0)),
        scratch_shapes=[
            pltpu.VMEM((3, rows, H), jnp.float32),   # hoisted input projection
            pltpu.VMEM((B_pad, H), jnp.float32),     # layer-1 recurrent state
            pltpu.VMEM((B_pad, E), jnp.float32),     # layer-2 recurrent state
        ],
    )

    out = pl.pallas_call(
        functools.partial(_encoder_gru_kernel, chunk=chunk, b_pad=B_pad),
        out_shape=jax.ShapeDtypeStruct((B_pad, E), jnp.float32),
        grid_spec=grid_spec,
        compiler_params=pltpu.CompilerParams(
            # Time axis is a true recurrence -> sequential.  (A batch-parallel
            # axis for v7x's 2 TCs only pays off once B_pad >> 8.)
            dimension_semantics=("arbitrary",),
            vmem_limit_bytes=int(vmem_limit),
        ),
    )(x2d, w_ih1, w_hh1, b_ih1, b_hh1, gamma1, beta1,
      w_ih2, w_hh2, b_ih2, b_hh2, gamma2, beta2)

    return out[:B][:, None, :]                               # (B, 1, E)


# ---------------------------------------------------------------------------
# Pure-JAX reference (same math, no Pallas) for a correctness check.
# ---------------------------------------------------------------------------
def _gru_ref(x_tm, w_ih, w_hh, b_ih, b_hh):
    B = x_tm.shape[1]
    H = w_hh.shape[1]

    def step(h, x_t):
        i_r = x_t @ w_ih[0] + b_ih[0]
        i_z = x_t @ w_ih[1] + b_ih[1]
        i_n = x_t @ w_ih[2] + b_ih[2]
        h_r = h @ w_hh[0] + b_hh[0]
        h_z = h @ w_hh[1] + b_hh[1]
        h_n = h @ w_hh[2] + b_hh[2]
        r = jax.nn.sigmoid(i_r + h_r)
        z = jax.nn.sigmoid(i_z + h_z)
        n = jnp.tanh(i_n + r * h_n)
        h_new = (1.0 - z) * n + z * h
        return h_new, h_new

    h0 = jnp.zeros((B, H), jnp.float32)
    _, outs = lax.scan(step, h0, x_tm)
    return outs                                              # (T, B, H)


def _layernorm_ref(x, gamma, beta):
    mu = jnp.mean(x, axis=-1, keepdims=True)
    var = jnp.mean((x - mu) ** 2, axis=-1, keepdims=True)
    return (x - mu) * lax.rsqrt(var + LN_EPS) * gamma + beta


def encoder_gru_reference(x, params):
    x_tm = jnp.transpose(x, (1, 0, 2))
    h1 = _gru_ref(x_tm, params["w_ih1"], params["w_hh1"],
                  params["b_ih1"], params["b_hh1"])
    h1 = _layernorm_ref(h1, params["gamma1"], params["beta1"])
    h2 = _gru_ref(h1, params["w_ih2"], params["w_hh2"],
                  params["b_ih2"], params["b_hh2"])
    hidden_n = h2[-1][:, None, :]                            # (B, 1, Emb)
    return _layernorm_ref(hidden_n, params["gamma2"], params["beta2"])


# ---------------------------------------------------------------------------
# Deterministic parameter init (PyTorch GRU init style: U(-1/sqrt(H), 1/sqrt(H))).
# Weights are stored per-gate and already transposed: w_ih is (3, in, out),
# w_hh is (3, out, out), gate order [reset | update | new] along the leading
# axis (matching PyTorch's row-block order).
# ---------------------------------------------------------------------------
def init_params(key, n_features, hidden_dim, embedding_dim):
    ks = jax.random.split(key, 8)

    def u(k, shape, bound):
        return jax.random.uniform(k, shape, jnp.float32, -bound, bound)

    b1 = hidden_dim ** -0.5
    b2 = embedding_dim ** -0.5
    return {
        "w_ih1": u(ks[0], (3, n_features, hidden_dim), b1),
        "w_hh1": u(ks[1], (3, hidden_dim, hidden_dim), b1),
        "b_ih1": u(ks[2], (3, 1, hidden_dim), b1),
        "b_hh1": u(ks[3], (3, 1, hidden_dim), b1),
        "gamma1": jnp.ones((1, hidden_dim), jnp.float32),
        "beta1": jnp.zeros((1, hidden_dim), jnp.float32),
        "w_ih2": u(ks[4], (3, hidden_dim, embedding_dim), b2),
        "w_hh2": u(ks[5], (3, embedding_dim, embedding_dim), b2),
        "b_ih2": u(ks[6], (3, 1, embedding_dim), b2),
        "b_hh2": u(ks[7], (3, 1, embedding_dim), b2),
        "gamma2": jnp.ones((1, embedding_dim), jnp.float32),
        "beta2": jnp.zeros((1, embedding_dim), jnp.float32),
    }


if __name__ == "__main__":
    batch, seq_len, n_features = 2, 8, 4
    hidden_dim, embedding_dim = 128, 2          # module defaults

    key = jax.random.PRNGKey(0)
    k_x, k_p = jax.random.split(key)
    x = jax.random.normal(k_x, (batch, seq_len, n_features), jnp.float32)
    params = init_params(k_p, n_features, hidden_dim, embedding_dim)

    fwd = jax.jit(functools.partial(encoder_gru_forward, time_chunk=4))
    out = jax.block_until_ready(fwd(x, params))

    ref = encoder_gru_reference(x, params)
    assert out.shape == (batch, 1, embedding_dim), out.shape
    assert jnp.allclose(out, ref, atol=1e-4, rtol=1e-4), (out, ref)

    print("KERNEL_OK")
</pallas_src>

<mosaic_0001>
module attributes {stable_mosaic.version = 11 : i64} {
  func.func @_encoder_gru_kernel(%arg0: i32, %arg1: memref<32x4xf32, #tpu.memory_space<vmem>>, %arg2: memref<3x4x128xf32, #tpu.memory_space<vmem>>, %arg3: memref<3x128x128xf32, #tpu.memory_space<vmem>>, %arg4: memref<3x1x128xf32, #tpu.memory_space<vmem>>, %arg5: memref<3x1x128xf32, #tpu.memory_space<vmem>>, %arg6: memref<1x128xf32, #tpu.memory_space<vmem>>, %arg7: memref<1x128xf32, #tpu.memory_space<vmem>>, %arg8: memref<3x128x2xf32, #tpu.memory_space<vmem>>, %arg9: memref<3x2x2xf32, #tpu.memory_space<vmem>>, %arg10: memref<3x1x2xf32, #tpu.memory_space<vmem>>, %arg11: memref<3x1x2xf32, #tpu.memory_space<vmem>>, %arg12: memref<1x2xf32, #tpu.memory_space<vmem>>, %arg13: memref<1x2xf32, #tpu.memory_space<vmem>>, %arg14: memref<8x2xf32, #tpu.memory_space<vmem>>, %arg15: memref<3x32x128xf32, #tpu.memory_space<vmem>>, %arg16: memref<8x128xf32, #tpu.memory_space<vmem>>, %arg17: memref<8x2xf32, #tpu.memory_space<vmem>>) attributes {dimension_semantics = [#tpu.dimension_semantics<arbitrary>], iteration_bounds = array<i64: 2>, scalar_prefetch = 0 : i64, scratch_operands = 3 : i64, tpu.core_type = #tpu.core_type<tc>, window_params = [{transform_indices = @transform_0, window_bounds = array<i64: 32, 4>}, {pipeline_mode = #tpu.pipeline_mode<synchronous>, transform_indices = @transform_1, window_bounds = array<i64: 3, 4, 128>}, {pipeline_mode = #tpu.pipeline_mode<synchronous>, transform_indices = @transform_2, window_bounds = array<i64: 3, 128, 128>}, {pipeline_mode = #tpu.pipeline_mode<synchronous>, transform_indices = @transform_3, window_bounds = array<i64: 3, 1, 128>}, {pipeline_mode = #tpu.pipeline_mode<synchronous>, transform_indices = @transform_4, window_bounds = array<i64: 3, 1, 128>}, {pipeline_mode = #tpu.pipeline_mode<synchronous>, transform_indices = @transform_5, window_bounds = array<i64: 1, 128>}, {pipeline_mode = #tpu.pipeline_mode<synchronous>, transform_indices = @transform_6, window_bounds = array<i64: 1, 128>}, {pipeline_mode = #tpu.pipeline_mode<synchronous>, transform_indices = @transform_7, window_bounds = array<i64: 3, 128, 2>}, {pipeline_mode = #tpu.pipeline_mode<synchronous>, transform_indices = @transform_8, window_bounds = array<i64: 3, 2, 2>}, {pipeline_mode = #tpu.pipeline_mode<synchronous>, transform_indices = @transform_9, window_bounds = array<i64: 3, 1, 2>}, {pipeline_mode = #tpu.pipeline_mode<synchronous>, transform_indices = @transform_10, window_bounds = array<i64: 3, 1, 2>}, {pipeline_mode = #tpu.pipeline_mode<synchronous>, transform_indices = @transform_11, window_bounds = array<i64: 1, 2>}, {pipeline_mode = #tpu.pipeline_mode<synchronous>, transform_indices = @transform_12, window_bounds = array<i64: 1, 2>}, {pipeline_mode = #tpu.pipeline_mode<synchronous>, transform_indices = @transform_13, window_bounds = array<i64: 8, 2>}]} {
    %c0_i32 = arith.constant 0 : i32
    %0 = arith.cmpi eq, %arg0, %c0_i32 : i32
    %1 = arith.extui %0 : i1 to i32
    %c0_i32_0 = arith.constant 0 : i32
    %2 = arith.cmpi ne, %1, %c0_i32_0 : i32
    scf.if %2 {
      %cst_367 = arith.constant 0.000000e+00 : f32
      %583 = vector.broadcast %cst_367 : f32 to vector<8x128xf32>
      %c0_368 = arith.constant 0 : index
      %c0_369 = arith.constant 0 : index
      %584 = vector.load %arg16[%c0_368, %c0_369] : memref<8x128xf32, #tpu.memory_space<vmem>>, vector<8x128xf32>
      tpu.vector_store %arg16[%c0_368, %c0_369], %583 {strides = array<i32>} : memref<8x128xf32, #tpu.memory_space<vmem>>, vector<8x128xf32>,
      %cst_370 = arith.constant 0.000000e+00 : f32
      %585 = vector.broadcast %cst_370 : f32 to vector<8x2xf32>
      %c0_371 = arith.constant 0 : index
      %c0_372 = arith.constant 0 : index
      %586 = vector.load %arg17[%c0_371, %c0_372] : memref<8x2xf32, #tpu.memory_space<vmem>>, vector<8x2xf32>
      tpu.vector_store %arg17[%c0_371, %c0_372], %585 {strides = array<i32>} : memref<8x2xf32, #tpu.memory_space<vmem>>, vector<8x2xf32>,
    } else {
    }
    %c0 = arith.constant 0 : index
    %c0_1 = arith.constant 0 : index
    %3 = vector.load %arg1[%c0, %c0_1] : memref<32x4xf32, #tpu.memory_space<vmem>>, vector<32x4xf32>
    %c0_2 = arith.constant 0 : index
    %c0_3 = arith.constant 0 : index
    %c0_4 = arith.constant 0 : index
    %4 = vector.load %arg2[%c0_2, %c0_3, %c0_4] : memref<3x4x128xf32, #tpu.memory_space<vmem>>, vector<1x4x128xf32>
    %5 = vector.shape_cast %4 : vector<1x4x128xf32> to vector<4x128xf32>
    %cst = arith.constant dense<0.000000e+00> : vector<32x128xf32>
    %6 = tpu.matmul %3, %5, %cst {dimension_numbers = #tpu.dot_dimension_numbers<[1], [0], [0], [1], [0, 0, 1, 1], [], []>} : vector<32x4xf32>, vector<4x128xf32>, vector<32x128xf32> -> vector<32x128xf32>
    %c0_5 = arith.constant 0 : index
    %c0_6 = arith.constant 0 : index
    %c0_7 = arith.constant 0 : index
    %7 = vector.load %arg4[%c0_5, %c0_6, %c0_7] : memref<3x1x128xf32, #tpu.memory_space<vmem>>, vector<1x1x128xf32>
    %8 = vector.shape_cast %7 : vector<1x1x128xf32> to vector<1x128xf32>
    %9 = vector.broadcast %8 : vector<1x128xf32> to vector<32x128xf32>
    %10 = arith.addf %6, %9 : vector<32x128xf32>
    %c0_8 = arith.constant 0 : index
    %c0_9 = arith.constant 0 : index
    %c0_10 = arith.constant 0 : index
    %11 = vector.load %arg15[%c0_8, %c0_9, %c0_10] : memref<3x32x128xf32, #tpu.memory_space<vmem>>, vector<1x32x128xf32>
    %12 = vector.shape_cast %11 : vector<1x32x128xf32> to vector<32x128xf32>
    %13 = vector.shape_cast %10 : vector<32x128xf32> to vector<1x32x128xf32>
    tpu.vector_store %arg15[%c0_8, %c0_9, %c0_10], %13 {strides = array<i32>} : memref<3x32x128xf32, #tpu.memory_space<vmem>>, vector<1x32x128xf32>,
    %c1 = arith.constant 1 : index
    %c0_11 = arith.constant 0 : index
    %c0_12 = arith.constant 0 : index
    %14 = vector.load %arg2[%c1, %c0_11, %c0_12] : memref<3x4x128xf32, #tpu.memory_space<vmem>>, vector<1x4x128xf32>
    %15 = vector.shape_cast %14 : vector<1x4x128xf32> to vector<4x128xf32>
    %cst_13 = arith.constant dense<0.000000e+00> : vector<32x128xf32>
    %16 = tpu.matmul %3, %15, %cst_13 {dimension_numbers = #tpu.dot_dimension_numbers<[1], [0], [0], [1], [0, 0, 1, 1], [], []>} : vector<32x4xf32>, vector<4x128xf32>, vector<32x128xf32> -> vector<32x128xf32>
    %c1_14 = arith.constant 1 : index
    %c0_15 = arith.constant 0 : index
    %c0_16 = arith.constant 0 : index
    %17 = vector.load %arg4[%c1_14, %c0_15, %c0_16] : memref<3x1x128xf32, #tpu.memory_space<vmem>>, vector<1x1x128xf32>
    %18 = vector.shape_cast %17 : vector<1x1x128xf32> to vector<1x128xf32>
    %19 = vector.broadcast %18 : vector<1x128xf32> to vector<32x128xf32>
    %20 = arith.addf %16, %19 : vector<32x128xf32>
    %c1_17 = arith.constant 1 : index
    %c0_18 = arith.constant 0 : index
    %c0_19 = arith.constant 0 : index
    %21 = vector.load %arg15[%c1_17, %c0_18, %c0_19] : memref<3x32x128xf32, #tpu.memory_space<vmem>>, vector<1x32x128xf32>
    %22 = vector.shape_cast %21 : vector<1x32x128xf32> to vector<32x128xf32>
    %23 = vector.shape_cast %20 : vector<32x128xf32> to vector<1x32x128xf32>
    tpu.vector_store %arg15[%c1_17, %c0_18, %c0_19], %23 {strides = array<i32>} : memref<3x32x128xf32, #tpu.memory_space<vmem>>, vector<1x32x128xf32>,
    %c2 = arith.constant 2 : index
    %c0_20 = arith.constant 0 : index
    %c0_21 = arith.constant 0 : index
    %24 = vector.load %arg2[%c2, %c0_20, %c0_21] : memref<3x4x128xf32, #tpu.memory_space<vmem>>, vector<1x4x128xf32>
    %25 = vector.shape_cast %24 : vector<1x4x128xf32> to vector<4x128xf32>
    %cst_22 = arith.constant dense<0.000000e+00> : vector<32x128xf32>
    %26 = tpu.matmul %3, %25, %cst_22 {dimension_numbers = #tpu.dot_dimension_numbers<[1], [0], [0], [1], [0, 0, 1, 1], [], []>} : vector<32x4xf32>, vector<4x128xf32>, vector<32x128xf32> -> vector<32x128xf32>
    %c2_23 = arith.constant 2 : index
    %c0_24 = arith.constant 0 : index
    %c0_25 = arith.constant 0 : index
    %27 = vector.load %arg4[%c2_23, %c0_24, %c0_25] : memref<3x1x128xf32, #tpu.memory_space<vmem>>, vector<1x1x128xf32>
    %28 = vector.shape_cast %27 : vector<1x1x128xf32> to vector<1x128xf32>
    %29 = vector.broadcast %28 : vector<1x128xf32> to vector<32x128xf32>
    %30 = arith.addf %26, %29 : vector<32x128xf32>
    %c2_26 = arith.constant 2 : index
    %c0_27 = arith.constant 0 : index
    %c0_28 = arith.constant 0 : index
    %31 = vector.load %arg15[%c2_26, %c0_27, %c0_28] : memref<3x32x128xf32, #tpu.memory_space<vmem>>, vector<1x32x128xf32>
    %32 = vector.shape_cast %31 : vector<1x32x128xf32> to vector<32x128xf32>
    %33 = vector.shape_cast %30 : vector<32x128xf32> to vector<1x32x128xf32>
    tpu.vector_store %arg15[%c2_26, %c0_27, %c0_28], %33 {strides = array<i32>} : memref<3x32x128xf32, #tpu.memory_space<vmem>>, vector<1x32x128xf32>,
    %c0_29 = arith.constant 0 : index
    %c0_30 = arith.constant 0 : index
    %34 = vector.load %arg16[%c0_29, %c0_30] : memref<8x128xf32, #tpu.memory_space<vmem>>, vector<8x128xf32>
    %c0_31 = arith.constant 0 : index
    %c0_32 = arith.constant 0 : index
    %35 = vector.load %arg17[%c0_31, %c0_32] : memref<8x2xf32, #tpu.memory_space<vmem>>, vector<8x2xf32>
    %c0_33 = arith.constant 0 : index
    %c0_34 = arith.constant 0 : index
    %36 = vector.load %arg6[%c0_33, %c0_34] : memref<1x128xf32, #tpu.memory_space<vmem>>, vector<1x128xf32>
    %c0_35 = arith.constant 0 : index
    %c0_36 = arith.constant 0 : index
    %37 = vector.load %arg7[%c0_35, %c0_36] : memref<1x128xf32, #tpu.memory_space<vmem>>, vector<1x128xf32>
    %c0_i32_37 = arith.constant 0 : i32
    %c8_i32 = arith.constant 8 : i32
    %38 = arith.muli %c0_i32_37, %c8_i32 : i32
    %c0_38 = arith.constant 0 : index
    %39 = arith.index_cast %38 : i32 to index
    %c0_39 = arith.constant 0 : index
    %40 = vector.load %arg15[%c0_38, %39, %c0_39] : memref<3x32x128xf32, #tpu.memory_space<vmem>>, vector<1x8x128xf32>
    %41 = vector.shape_cast %40 : vector<1x8x128xf32> to vector<8x128xf32>
    %c1_40 = arith.constant 1 : index
    %42 = arith.index_cast %38 : i32 to index
    %c0_41 = arith.constant 0 : index
    %43 = vector.load %arg15[%c1_40, %42, %c0_41] : memref<3x32x128xf32, #tpu.memory_space<vmem>>, vector<1x8x128xf32>
    %44 = vector.shape_cast %43 : vector<1x8x128xf32> to vector<8x128xf32>
    %c2_42 = arith.constant 2 : index
    %45 = arith.index_cast %38 : i32 to index
    %c0_43 = arith.constant 0 : index
    %46 = vector.load %arg15[%c2_42, %45, %c0_43] : memref<3x32x128xf32, #tpu.memory_space<vmem>>, vector<1x8x128xf32>
    %47 = vector.shape_cast %46 : vector<1x8x128xf32> to vector<8x128xf32>
    %c0_44 = arith.constant 0 : index
    %c0_45 = arith.constant 0 : index
    %c0_46 = arith.constant 0 : index
    %48 = vector.load %arg3[%c0_44, %c0_45, %c0_46] : memref<3x128x128xf32, #tpu.memory_space<vmem>>, vector<1x128x128xf32>
    %49 = vector.shape_cast %48 : vector<1x128x128xf32> to vector<128x128xf32>
    %cst_47 = arith.constant dense<0.000000e+00> : vector<8x128xf32>
    %50 = tpu.matmul %34, %49, %cst_47 {dimension_numbers = #tpu.dot_dimension_numbers<[1], [0], [0], [1], [0, 0, 1, 1], [], []>} : vector<8x128xf32>, vector<128x128xf32>, vector<8x128xf32> -> vector<8x128xf32>
    %c0_48 = arith.constant 0 : index
    %c0_49 = arith.constant 0 : index
    %c0_50 = arith.constant 0 : index
    %51 = vector.load %arg5[%c0_48, %c0_49, %c0_50] : memref<3x1x128xf32, #tpu.memory_space<vmem>>, vector<1x1x128xf32>
    %52 = vector.shape_cast %51 : vector<1x1x128xf32> to vector<1x128xf32>
    %53 = vector.broadcast %52 : vector<1x128xf32> to vector<8x128xf32>
    %54 = arith.addf %50, %53 : vector<8x128xf32>
    %c1_51 = arith.constant 1 : index
    %c0_52 = arith.constant 0 : index
    %c0_53 = arith.constant 0 : index
    %55 = vector.load %arg3[%c1_51, %c0_52, %c0_53] : memref<3x128x128xf32, #tpu.memory_space<vmem>>, vector<1x128x128xf32>
    %56 = vector.shape_cast %55 : vector<1x128x128xf32> to vector<128x128xf32>
    %cst_54 = arith.constant dense<0.000000e+00> : vector<8x128xf32>
    %57 = tpu.matmul %34, %56, %cst_54 {dimension_numbers = #tpu.dot_dimension_numbers<[1], [0], [0], [1], [0, 0, 1, 1], [], []>} : vector<8x128xf32>, vector<128x128xf32>, vector<8x128xf32> -> vector<8x128xf32>
    %c1_55 = arith.constant 1 : index
    %c0_56 = arith.constant 0 : index
    %c0_57 = arith.constant 0 : index
    %58 = vector.load %arg5[%c1_55, %c0_56, %c0_57] : memref<3x1x128xf32, #tpu.memory_space<vmem>>, vector<1x1x128xf32>
    %59 = vector.shape_cast %58 : vector<1x1x128xf32> to vector<1x128xf32>
    %60 = vector.broadcast %59 : vector<1x128xf32> to vector<8x128xf32>
    %61 = arith.addf %57, %60 : vector<8x128xf32>
    %c2_58 = arith.constant 2 : index
    %c0_59 = arith.constant 0 : index
    %c0_60 = arith.constant 0 : index
    %62 = vector.load %arg3[%c2_58, %c0_59, %c0_60] : memref<3x128x128xf32, #tpu.memory_space<vmem>>, vector<1x128x128xf32>
    %63 = vector.shape_cast %62 : vector<1x128x128xf32> to vector<128x128xf32>
    %cst_61 = arith.constant dense<0.000000e+00> : vector<8x128xf32>
    %64 = tpu.matmul %34, %63, %cst_61 {dimension_numbers = #tpu.dot_dimension_numbers<[1], [0], [0], [1], [0, 0, 1, 1], [], []>} : vector<8x128xf32>, vector<128x128xf32>, vector<8x128xf32> -> vector<8x128xf32>
    %c2_62 = arith.constant 2 : index
    %c0_63 = arith.constant 0 : index
    %c0_64 = arith.constant 0 : index
    %65 = vector.load %arg5[%c2_62, %c0_63, %c0_64] : memref<3x1x128xf32, #tpu.memory_space<vmem>>, vector<1x1x128xf32>
    %66 = vector.shape_cast %65 : vector<1x1x128xf32> to vector<1x128xf32>
    %67 = vector.broadcast %66 : vector<1x128xf32> to vector<8x128xf32>
    %68 = arith.addf %64, %67 : vector<8x128xf32>
    %69 = arith.addf %41, %54 : vector<8x128xf32>
    %70 = arith.negf %69 : vector<8x128xf32>
    %71 = math.exp %70 : vector<8x128xf32>
    %cst_65 = arith.constant 1.000000e+00 : f32
    %72 = vector.broadcast %cst_65 : f32 to vector<8x128xf32>
    %73 = arith.addf %72, %71 : vector<8x128xf32>
    %74 = arith.divf %72, %73 : vector<8x128xf32>
    %75 = arith.addf %44, %61 : vector<8x128xf32>
    %76 = arith.negf %75 : vector<8x128xf32>
    %77 = math.exp %76 : vector<8x128xf32>
    %cst_66 = arith.constant 1.000000e+00 : f32
    %78 = vector.broadcast %cst_66 : f32 to vector<8x128xf32>
    %79 = arith.addf %78, %77 : vector<8x128xf32>
    %80 = arith.divf %78, %79 : vector<8x128xf32>
    %81 = arith.mulf %74, %68 : vector<8x128xf32>
    %82 = arith.addf %47, %81 : vector<8x128xf32>
    %83 = math.tanh %82 : vector<8x128xf32>
    %cst_67 = arith.constant 1.000000e+00 : f32
    %84 = vector.broadcast %cst_67 : f32 to vector<8x128xf32>
    %85 = arith.subf %84, %80 : vector<8x128xf32>
    %86 = arith.mulf %85, %83 : vector<8x128xf32>
    %87 = arith.mulf %80, %34 : vector<8x128xf32>
    %88 = arith.addf %86, %87 : vector<8x128xf32>
    %cst_68 = arith.constant dense<0.000000e+00> : vector<8xf32>
    %89 = vector.multi_reduction <add>, %88, %cst_68 [1] : vector<8x128xf32> to vector<8xf32>
    %90 = vector.shape_cast %89 : vector<8xf32> to vector<8x1xf32>
    %cst_69 = arith.constant 1.280000e+02 : f32
    %91 = vector.broadcast %cst_69 : f32 to vector<8x1xf32>
    %92 = arith.divf %90, %91 : vector<8x1xf32>
    %93 = vector.broadcast %92 : vector<8x1xf32> to vector<8x128xf32>
    %94 = arith.subf %88, %93 : vector<8x128xf32>
    %95 = arith.mulf %94, %94 : vector<8x128xf32>
    %cst_70 = arith.constant dense<0.000000e+00> : vector<8xf32>
    %96 = vector.multi_reduction <add>, %95, %cst_70 [1] : vector<8x128xf32> to vector<8xf32>
    %97 = vector.shape_cast %96 : vector<8xf32> to vector<8x1xf32>
    %cst_71 = arith.constant 1.280000e+02 : f32
    %98 = vector.broadcast %cst_71 : f32 to vector<8x1xf32>
    %99 = arith.divf %97, %98 : vector<8x1xf32>
    %100 = vector.broadcast %92 : vector<8x1xf32> to vector<8x128xf32>
    %101 = arith.subf %88, %100 : vector<8x128xf32>
    %cst_72 = arith.constant 9.99999974E-6 : f32
    %102 = vector.broadcast %cst_72 : f32 to vector<8x1xf32>
    %103 = arith.addf %99, %102 : vector<8x1xf32>
    %104 = math.rsqrt %103 : vector<8x1xf32>
    %105 = vector.broadcast %104 : vector<8x1xf32> to vector<8x128xf32>
    %106 = arith.mulf %101, %105 : vector<8x128xf32>
    %107 = vector.broadcast %36 : vector<1x128xf32> to vector<8x128xf32>
    %108 = arith.mulf %106, %107 : vector<8x128xf32>
    %109 = vector.broadcast %37 : vector<1x128xf32> to vector<8x128xf32>
    %110 = arith.addf %108, %109 : vector<8x128xf32>
    %c0_73 = arith.constant 0 : index
    %c0_74 = arith.constant 0 : index
    %c0_75 = arith.constant 0 : index
    %111 = vector.load %arg8[%c0_73, %c0_74, %c0_75] : memref<3x128x2xf32, #tpu.memory_space<vmem>>, vector<1x128x2xf32>
    %112 = vector.shape_cast %111 : vector<1x128x2xf32> to vector<128x2xf32>
    %cst_76 = arith.constant dense<0.000000e+00> : vector<8x2xf32>
    %113 = tpu.matmul %110, %112, %cst_76 {dimension_numbers = #tpu.dot_dimension_numbers<[1], [0], [0], [1], [0, 0, 1, 1], [], []>} : vector<8x128xf32>, vector<128x2xf32>, vector<8x2xf32> -> vector<8x2xf32>
    %c0_77 = arith.constant 0 : index
    %c0_78 = arith.constant 0 : index
    %c0_79 = arith.constant 0 : index
    %114 = vector.load %arg10[%c0_77, %c0_78, %c0_79] : memref<3x1x2xf32, #tpu.memory_space<vmem>>, vector<1x1x2xf32>
    %115 = vector.shape_cast %114 : vector<1x1x2xf32> to vector<1x2xf32>
    %116 = vector.broadcast %115 : vector<1x2xf32> to vector<8x2xf32>
    %117 = arith.addf %113, %116 : vector<8x2xf32>
    %c1_80 = arith.constant 1 : index
    %c0_81 = arith.constant 0 : index
    %c0_82 = arith.constant 0 : index
    %118 = vector.load %arg8[%c1_80, %c0_81, %c0_82] : memref<3x128x2xf32, #tpu.memory_space<vmem>>, vector<1x128x2xf32>
    %119 = vector.shape_cast %118 : vector<1x128x2xf32> to vector<128x2xf32>
    %cst_83 = arith.constant dense<0.000000e+00> : vector<8x2xf32>
    %120 = tpu.matmul %110, %119, %cst_83 {dimension_numbers = #tpu.dot_dimension_numbers<[1], [0], [0], [1], [0, 0, 1, 1], [], []>} : vector<8x128xf32>, vector<128x2xf32>, vector<8x2xf32> -> vector<8x2xf32>
    %c1_84 = arith.constant 1 : index
    %c0_85 = arith.constant 0 : index
    %c0_86 = arith.constant 0 : index
    %121 = vector.load %arg10[%c1_84, %c0_85, %c0_86] : memref<3x1x2xf32, #tpu.memory_space<vmem>>, vector<1x1x2xf32>
    %122 = vector.shape_cast %121 : vector<1x1x2xf32> to vector<1x2xf32>
    %123 = vector.broadcast %122 : vector<1x2xf32> to vector<8x2xf32>
    %124 = arith.addf %120, %123 : vector<8x2xf32>
    %c2_87 = arith.constant 2 : index
    %c0_88 = arith.constant 0 : index
    %c0_89 = arith.constant 0 : index
    %125 = vector.load %arg8[%c2_87, %c0_88, %c0_89] : memref<3x128x2xf32, #tpu.memory_space<vmem>>, vector<1x128x2xf32>
    %126 = vector.shape_cast %125 : vector<1x128x2xf32> to vector<128x2xf32>
    %cst_90 = arith.constant dense<0.000000e+00> : vector<8x2xf32>
    %127 = tpu.matmul %110, %126, %cst_90 {dimension_numbers = #tpu.dot_dimension_numbers<[1], [0], [0], [1], [0, 0, 1, 1], [], []>} : vector<8x128xf32>, vector<128x2xf32>, vector<8x2xf32> -> vector<8x2xf32>
    %c2_91 = arith.constant 2 : index
    %c0_92 = arith.constant 0 : index
    %c0_93 = arith.constant 0 : index
    %128 = vector.load %arg10[%c2_91, %c0_92, %c0_93] : memref<3x1x2xf32, #tpu.memory_space<vmem>>, vector<1x1x2xf32>
    %129 = vector.shape_cast %128 : vector<1x1x2xf32> to vector<1x2xf32>
    %130 = vector.broadcast %129 : vector<1x2xf32> to vector<8x2xf32>
    %131 = arith.addf %127, %130 : vector<8x2xf32>
    %c0_94 = arith.constant 0 : index
    %c0_95 = arith.constant 0 : index
    %c0_96 = arith.constant 0 : index
    %132 = vector.load %arg9[%c0_94, %c0_95, %c0_96] : memref<3x2x2xf32, #tpu.memory_space<vmem>>, vector<1x2x2xf32>
    %133 = vector.shape_cast %132 : vector<1x2x2xf32> to vector<2x2xf32>
    %cst_97 = arith.constant dense<0.000000e+00> : vector<8x2xf32>
    %134 = tpu.matmul %35, %133, %cst_97 {dimension_numbers = #tpu.dot_dimension_numbers<[1], [0], [0], [1], [0, 0, 1, 1], [], []>} : vector<8x2xf32>, vector<2x2xf32>, vector<8x2xf32> -> vector<8x2xf32>
    %c0_98 = arith.constant 0 : index
    %c0_99 = arith.constant 0 : index
    %c0_100 = arith.constant 0 : index
    %135 = vector.load %arg11[%c0_98, %c0_99, %c0_100] : memref<3x1x2xf32, #tpu.memory_space<vmem>>, vector<1x1x2xf32>
    %136 = vector.shape_cast %135 : vector<1x1x2xf32> to vector<1x2xf32>
    %137 = vector.broadcast %136 : vector<1x2xf32> to vector<8x2xf32>
    %138 = arith.addf %134, %137 : vector<8x2xf32>
    %c1_101 = arith.constant 1 : index
    %c0_102 = arith.constant 0 : index
    %c0_103 = arith.constant 0 : index
    %139 = vector.load %arg9[%c1_101, %c0_102, %c0_103] : memref<3x2x2xf32, #tpu.memory_space<vmem>>, vector<1x2x2xf32>
    %140 = vector.shape_cast %139 : vector<1x2x2xf32> to vector<2x2xf32>
    %cst_104 = arith.constant dense<0.000000e+00> : vector<8x2xf32>
    %141 = tpu.matmul %35, %140, %cst_104 {dimension_numbers = #tpu.dot_dimension_numbers<[1], [0], [0], [1], [0, 0, 1, 1], [], []>} : vector<8x2xf32>, vector<2x2xf32>, vector<8x2xf32> -> vector<8x2xf32>
    %c1_105 = arith.constant 1 : index
    %c0_106 = arith.constant 0 : index
    %c0_107 = arith.constant 0 : index
    %142 = vector.load %arg11[%c1_105, %c0_106, %c0_107] : memref<3x1x2xf32, #tpu.memory_space<vmem>>, vector<1x1x2xf32>
    %143 = vector.shape_cast %142 : vector<1x1x2xf32> to vector<1x2xf32>
    %144 = vector.broadcast %143 : vector<1x2xf32> to vector<8x2xf32>
    %145 = arith.addf %141, %144 : vector<8x2xf32>
    %c2_108 = arith.constant 2 : index
    %c0_109 = arith.constant 0 : index
    %c0_110 = arith.constant 0 : index
    %146 = vector.load %arg9[%c2_108, %c0_109, %c0_110] : memref<3x2x2xf32, #tpu.memory_space<vmem>>, vector<1x2x2xf32>
    %147 = vector.shape_cast %146 : vector<1x2x2xf32> to vector<2x2xf32>
    %cst_111 = arith.constant dense<0.000000e+00> : vector<8x2xf32>
    %148 = tpu.matmul %35, %147, %cst_111 {dimension_numbers = #tpu.dot_dimension_numbers<[1], [0], [0], [1], [0, 0, 1, 1], [], []>} : vector<8x2xf32>, vector<2x2xf32>, vector<8x2xf32> -> vector<8x2xf32>
    %c2_112 = arith.constant 2 : index
    %c0_113 = arith.constant 0 : index
    %c0_114 = arith.constant 0 : index
    %149 = vector.load %arg11[%c2_112, %c0_113, %c0_114] : memref<3x1x2xf32, #tpu.memory_space<vmem>>, vector<1x1x2xf32>
    %150 = vector.shape_cast %149 : vector<1x1x2xf32> to vector<1x2xf32>
    %151 = vector.broadcast %150 : vector<1x2xf32> to vector<8x2xf32>
    %152 = arith.addf %148, %151 : vector<8x2xf32>
    %153 = arith.addf %117, %138 : vector<8x2xf32>
    %154 = arith.negf %153 : vector<8x2xf32>
    %155 = math.exp %154 : vector<8x2xf32>
    %cst_115 = arith.constant 1.000000e+00 : f32
    %156 = vector.broadcast %cst_115 : f32 to vector<8x2xf32>
    %157 = arith.addf %156, %155 : vector<8x2xf32>
    %158 = arith.divf %156, %157 : vector<8x2xf32>
    %159 = arith.addf %124, %145 : vector<8x2xf32>
    %160 = arith.negf %159 : vector<8x2xf32>
    %161 = math.exp %160 : vector<8x2xf32>
    %cst_116 = arith.constant 1.000000e+00 : f32
    %162 = vector.broadcast %cst_116 : f32 to vector<8x2xf32>
    %163 = arith.addf %162, %161 : vector<8x2xf32>
    %164 = arith.divf %162, %163 : vector<8x2xf32>
    %165 = arith.mulf %158, %152 : vector<8x2xf32>
    %166 = arith.addf %131, %165 : vector<8x2xf32>
    %167 = math.tanh %166 : vector<8x2xf32>
    %cst_117 = arith.constant 1.000000e+00 : f32
    %168 = vector.broadcast %cst_117 : f32 to vector<8x2xf32>
    %169 = arith.subf %168, %164 : vector<8x2xf32>
    %170 = arith.mulf %169, %167 : vector<8x2xf32>
    %171 = arith.mulf %164, %35 : vector<8x2xf32>
    %172 = arith.addf %170, %171 : vector<8x2xf32>
    %c1_i32 = arith.constant 1 : i32
    %c8_i32_118 = arith.constant 8 : i32
    %173 = arith.muli %c1_i32, %c8_i32_118 : i32
    %c0_119 = arith.constant 0 : index
    %174 = arith.index_cast %173 : i32 to index
    %c0_120 = arith.constant 0 : index
    %175 = vector.load %arg15[%c0_119, %174, %c0_120] : memref<3x32x128xf32, #tpu.memory_space<vmem>>, vector<1x8x128xf32>
    %176 = vector.shape_cast %175 : vector<1x8x128xf32> to vector<8x128xf32>
    %c1_121 = arith.constant 1 : index
    %177 = arith.index_cast %173 : i32 to index
    %c0_122 = arith.constant 0 : index
    %178 = vector.load %arg15[%c1_121, %177, %c0_122] : memref<3x32x128xf32, #tpu.memory_space<vmem>>, vector<1x8x128xf32>
    %179 = vector.shape_cast %178 : vector<1x8x128xf32> to vector<8x128xf32>
    %c2_123 = arith.constant 2 : index
    %180 = arith.index_cast %173 : i32 to index
    %c0_124 = arith.constant 0 : index
    %181 = vector.load %arg15[%c2_123, %180, %c0_124] : memref<3x32x128xf32, #tpu.memory_space<vmem>>, vector<1x8x128xf32>
    %182 = vector.shape_cast %181 : vector<1x8x128xf32> to vector<8x128xf32>
    %c0_125 = arith.constant 0 : index
    %c0_126 = arith.constant 0 : index
    %c0_127 = arith.constant 0 : index
    %183 = vector.load %arg3[%c0_125, %c0_126, %c0_127] : memref<3x128x128xf32, #tpu.memory_space<vmem>>, vector<1x128x128xf32>
    %184 = vector.shape_cast %183 : vector<1x128x128xf32> to vector<128x128xf32>
    %cst_128 = arith.constant dense<0.000000e+00> : vector<8x128xf32>
    %185 = tpu.matmul %88, %184, %cst_128 {dimension_numbers = #tpu.dot_dimension_numbers<[1], [0], [0], [1], [0, 0, 1, 1], [], []>} : vector<8x128xf32>, vector<128x128xf32>, vector<8x128xf32> -> vector<8x128xf32>
    %c0_129 = arith.constant 0 : index
    %c0_130 = arith.constant 0 : index
    %c0_131 = arith.constant 0 : index
    %186 = vector.load %arg5[%c0_129, %c0_130, %c0_131] : memref<3x1x128xf32, #tpu.memory_space<vmem>>, vector<1x1x128xf32>
    %187 = vector.shape_cast %186 : vector<1x1x128xf32> to vector<1x128xf32>
    %188 = vector.broadcast %187 : vector<1x128xf32> to vector<8x128xf32>
    %189 = arith.addf %185, %188 : vector<8x128xf32>
    %c1_132 = arith.constant 1 : index
    %c0_133 = arith.constant 0 : index
    %c0_134 = arith.constant 0 : index
    %190 = vector.load %arg3[%c1_132, %c0_133, %c0_134] : memref<3x128x128xf32, #tpu.memory_space<vmem>>, vector<1x128x128xf32>
    %191 = vector.shape_cast %190 : vector<1x128x128xf32> to vector<128x128xf32>
    %cst_135 = arith.constant dense<0.000000e+00> : vector<8x128xf32>
    %192 = tpu.matmul %88, %191, %cst_135 {dimension_numbers = #tpu.dot_dimension_numbers<[1], [0], [0], [1], [0, 0, 1, 1], [], []>} : vector<8x128xf32>, vector<128x128xf32>, vector<8x128xf32> -> vector<8x128xf32>
    %c1_136 = arith.constant 1 : index
    %c0_137 = arith.constant 0 : index
    %c0_138 = arith.constant 0 : index
    %193 = vector.load %arg5[%c1_136, %c0_137, %c0_138] : memref<3x1x128xf32, #tpu.memory_space<vmem>>, vector<1x1x128xf32>
    %194 = vector.shape_cast %193 : vector<1x1x128xf32> to vector<1x128xf32>
    %195 = vector.broadcast %194 : vector<1x128xf32> to vector<8x128xf32>
    %196 = arith.addf %192, %195 : vector<8x128xf32>
    %c2_139 = arith.constant 2 : index
    %c0_140 = arith.constant 0 : index
    %c0_141 = arith.constant 0 : index
    %197 = vector.load %arg3[%c2_139, %c0_140, %c0_141] : memref<3x128x128xf32, #tpu.memory_space<vmem>>, vector<1x128x128xf32>
    %198 = vector.shape_cast %197 : vector<1x128x128xf32> to vector<128x128xf32>
    %cst_142 = arith.constant dense<0.000000e+00> : vector<8x128xf32>
    %199 = tpu.matmul %88, %198, %cst_142 {dimension_numbers = #tpu.dot_dimension_numbers<[1], [0], [0], [1], [0, 0, 1, 1], [], []>} : vector<8x128xf32>, vector<128x128xf32>, vector<8x128xf32> -> vector<8x128xf32>
    %c2_143 = arith.constant 2 : index
    %c0_144 = arith.constant 0 : index
    %c0_145 = arith.constant 0 : index
    %200 = vector.load %arg5[%c2_143, %c0_144, %c0_145] : memref<3x1x128xf32, #tpu.memory_space<vmem>>, vector<1x1x128xf32>
    %201 = vector.shape_cast %200 : vector<1x1x128xf32> to vector<1x128xf32>
    %202 = vector.broadcast %201 : vector<1x128xf32> to vector<8x128xf32>
    %203 = arith.addf %199, %202 : vector<8x128xf32>
    %204 = arith.addf %176, %189 : vector<8x128xf32>
    %205 = arith.negf %204 : vector<8x128xf32>
    %206 = math.exp %205 : vector<8x128xf32>
    %cst_146 = arith.constant 1.000000e+00 : f32
    %207 = vector.broadcast %cst_146 : f32 to vector<8x128xf32>
    %208 = arith.addf %207, %206 : vector<8x128xf32>
    %209 = arith.divf %207, %208 : vector<8x128xf32>
    %210 = arith.addf %179, %196 : vector<8x128xf32>
    %211 = arith.negf %210 : vector<8x128xf32>
    %212 = math.exp %211 : vector<8x128xf32>
    %cst_147 = arith.constant 1.000000e+00 : f32
    %213 = vector.broadcast %cst_147 : f32 to vector<8x128xf32>
    %214 = arith.addf %213, %212 : vector<8x128xf32>
    %215 = arith.divf %213, %214 : vector<8x128xf32>
    %216 = arith.mulf %209, %203 : vector<8x128xf32>
    %217 = arith.addf %182, %216 : vector<8x128xf32>
    %218 = math.tanh %217 : vector<8x128xf32>
    %cst_148 = arith.constant 1.000000e+00 : f32
    %219 = vector.broadcast %cst_148 : f32 to vector<8x128xf32>
    %220 = arith.subf %219, %215 : vector<8x128xf32>
    %221 = arith.mulf %220, %218 : vector<8x128xf32>
    %222 = arith.mulf %215, %88 : vector<8x128xf32>
    %223 = arith.addf %221, %222 : vector<8x128xf32>
    %cst_149 = arith.constant dense<0.000000e+00> : vector<8xf32>
    %224 = vector.multi_reduction <add>, %223, %cst_149 [1] : vector<8x128xf32> to vector<8xf32>
    %225 = vector.shape_cast %224 : vector<8xf32> to vector<8x1xf32>
    %cst_150 = arith.constant 1.280000e+02 : f32
    %226 = vector.broadcast %cst_150 : f32 to vector<8x1xf32>
    %227 = arith.divf %225, %226 : vector<8x1xf32>
    %228 = vector.broadcast %227 : vector<8x1xf32> to vector<8x128xf32>
    %229 = arith.subf %223, %228 : vector<8x128xf32>
    %230 = arith.mulf %229, %229 : vector<8x128xf32>
    %cst_151 = arith.constant dense<0.000000e+00> : vector<8xf32>
    %231 = vector.multi_reduction <add>, %230, %cst_151 [1] : vector<8x128xf32> to vector<8xf32>
    %232 = vector.shape_cast %231 : vector<8xf32> to vector<8x1xf32>
    %cst_152 = arith.constant 1.280000e+02 : f32
    %233 = vector.broadcast %cst_152 : f32 to vector<8x1xf32>
    %234 = arith.divf %232, %233 : vector<8x1xf32>
    %235 = vector.broadcast %227 : vector<8x1xf32> to vector<8x128xf32>
    %236 = arith.subf %223, %235 : vector<8x128xf32>
    %cst_153 = arith.constant 9.99999974E-6 : f32
    %237 = vector.broadcast %cst_153 : f32 to vector<8x1xf32>
    %238 = arith.addf %234, %237 : vector<8x1xf32>
    %239 = math.rsqrt %238 : vector<8x1xf32>
    %240 = vector.broadcast %239 : vector<8x1xf32> to vector<8x128xf32>
    %241 = arith.mulf %236, %240 : vector<8x128xf32>
    %242 = vector.broadcast %36 : vector<1x128xf32> to vector<8x128xf32>
    %243 = arith.mulf %241, %242 : vector<8x128xf32>
    %244 = vector.broadcast %37 : vector<1x128xf32> to vector<8x128xf32>
    %245 = arith.addf %243, %244 : vector<8x128xf32>
    %c0_154 = arith.constant 0 : index
    %c0_155 = arith.constant 0 : index
    %c0_156 = arith.constant 0 : index
    %246 = vector.load %arg8[%c0_154, %c0_155, %c0_156] : memref<3x128x2xf32, #tpu.memory_space<vmem>>, vector<1x128x2xf32>
    %247 = vector.shape_cast %246 : vector<1x128x2xf32> to vector<128x2xf32>
    %cst_157 = arith.constant dense<0.000000e+00> : vector<8x2xf32>
    %248 = tpu.matmul %245, %247, %cst_157 {dimension_numbers = #tpu.dot_dimension_numbers<[1], [0], [0], [1], [0, 0, 1, 1], [], []>} : vector<8x128xf32>, vector<128x2xf32>, vector<8x2xf32> -> vector<8x2xf32>
    %c0_158 = arith.constant 0 : index
    %c0_159 = arith.constant 0 : index
    %c0_160 = arith.constant 0 : index
    %249 = vector.load %arg10[%c0_158, %c0_159, %c0_160] : memref<3x1x2xf32, #tpu.memory_space<vmem>>, vector<1x1x2xf32>
    %250 = vector.shape_cast %249 : vector<1x1x2xf32> to vector<1x2xf32>
    %251 = vector.broadcast %250 : vector<1x2xf32> to vector<8x2xf32>
    %252 = arith.addf %248, %251 : vector<8x2xf32>
    %c1_161 = arith.constant 1 : index
    %c0_162 = arith.constant 0 : index
    %c0_163 = arith.constant 0 : index
    %253 = vector.load %arg8[%c1_161, %c0_162, %c0_163] : memref<3x128x2xf32, #tpu.memory_space<vmem>>, vector<1x128x2xf32>
    %254 = vector.shape_cast %253 : vector<1x128x2xf32> to vector<128x2xf32>
    %cst_164 = arith.constant dense<0.000000e+00> : vector<8x2xf32>
    %255 = tpu.matmul %245, %254, %cst_164 {dimension_numbers = #tpu.dot_dimension_numbers<[1], [0], [0], [1], [0, 0, 1, 1], [], []>} : vector<8x128xf32>, vector<128x2xf32>, vector<8x2xf32> -> vector<8x2xf32>
    %c1_165 = arith.constant 1 : index
    %c0_166 = arith.constant 0 : index
    %c0_167 = arith.constant 0 : index
    %256 = vector.load %arg10[%c1_165, %c0_166, %c0_167] : memref<3x1x2xf32, #tpu.memory_space<vmem>>, vector<1x1x2xf32>
    %257 = vector.shape_cast %256 : vector<1x1x2xf32> to vector<1x2xf32>
    %258 = vector.broadcast %257 : vector<1x2xf32> to vector<8x2xf32>
    %259 = arith.addf %255, %258 : vector<8x2xf32>
    %c2_168 = arith.constant 2 : index
    %c0_169 = arith.constant 0 : index
    %c0_170 = arith.constant 0 : index
    %260 = vector.load %arg8[%c2_168, %c0_169, %c0_170] : memref<3x128x2xf32, #tpu.memory_space<vmem>>, vector<1x128x2xf32>
    %261 = vector.shape_cast %260 : vector<1x128x2xf32> to vector<128x2xf32>
    %cst_171 = arith.constant dense<0.000000e+00> : vector<8x2xf32>
    %262 = tpu.matmul %245, %261, %cst_171 {dimension_numbers = #tpu.dot_dimension_numbers<[1], [0], [0], [1], [0, 0, 1, 1], [], []>} : vector<8x128xf32>, vector<128x2xf32>, vector<8x2xf32> -> vector<8x2xf32>
    %c2_172 = arith.constant 2 : index
    %c0_173 = arith.constant 0 : index
    %c0_174 = arith.constant 0 : index
    %263 = vector.load %arg10[%c2_172, %c0_173, %c0_174] : memref<3x1x2xf32, #tpu.memory_space<vmem>>, vector<1x1x2xf32>
    %264 = vector.shape_cast %263 : vector<1x1x2xf32> to vector<1x2xf32>
    %265 = vector.broadcast %264 : vector<1x2xf32> to vector<8x2xf32>
    %266 = arith.addf %262, %265 : vector<8x2xf32>
    %c0_175 = arith.constant 0 : index
    %c0_176 = arith.constant 0 : index
    %c0_177 = arith.constant 0 : index
    %267 = vector.load %arg9[%c0_175, %c0_176, %c0_177] : memref<3x2x2xf32, #tpu.memory_space<vmem>>, vector<1x2x2xf32>
    %268 = vector.shape_cast %267 : vector<1x2x2xf32> to vector<2x2xf32>
    %cst_178 = arith.constant dense<0.000000e+00> : vector<8x2xf32>
    %269 = tpu.matmul %172, %268, %cst_178 {dimension_numbers = #tpu.dot_dimension_numbers<[1], [0], [0], [1], [0, 0, 1, 1], [], []>} : vector<8x2xf32>, vector<2x2xf32>, vector<8x2xf32> -> vector<8x2xf32>
    %c0_179 = arith.constant 0 : index
    %c0_180 = arith.constant 0 : index
    %c0_181 = arith.constant 0 : index
    %270 = vector.load %arg11[%c0_179, %c0_180, %c0_181] : memref<3x1x2xf32, #tpu.memory_space<vmem>>, vector<1x1x2xf32>
    %271 = vector.shape_cast %270 : vector<1x1x2xf32> to vector<1x2xf32>
    %272 = vector.broadcast %271 : vector<1x2xf32> to vector<8x2xf32>
    %273 = arith.addf %269, %272 : vector<8x2xf32>
    %c1_182 = arith.constant 1 : index
    %c0_183 = arith.constant 0 : index
    %c0_184 = arith.constant 0 : index
    %274 = vector.load %arg9[%c1_182, %c0_183, %c0_184] : memref<3x2x2xf32, #tpu.memory_space<vmem>>, vector<1x2x2xf32>
    %275 = vector.shape_cast %274 : vector<1x2x2xf32> to vector<2x2xf32>
    %cst_185 = arith.constant dense<0.000000e+00> : vector<8x2xf32>
    %276 = tpu.matmul %172, %275, %cst_185 {dimension_numbers = #tpu.dot_dimension_numbers<[1], [0], [0], [1], [0, 0, 1, 1], [], []>} : vector<8x2xf32>, vector<2x2xf32>, vector<8x2xf32> -> vector<8x2xf32>
    %c1_186 = arith.constant 1 : index
    %c0_187 = arith.constant 0 : index
    %c0_188 = arith.constant 0 : index
    %277 = vector.load %arg11[%c1_186, %c0_187, %c0_188] : memref<3x1x2xf32, #tpu.memory_space<vmem>>, vector<1x1x2xf32>
    %278 = vector.shape_cast %277 : vector<1x1x2xf32> to vector<1x2xf32>
    %279 = vector.broadcast %278 : vector<1x2xf32> to vector<8x2xf32>
    %280 = arith.addf %276, %279 : vector<8x2xf32>
    %c2_189 = arith.constant 2 : index
    %c0_190 = arith.constant 0 : index
    %c0_191 = arith.constant 0 : index
    %281 = vector.load %arg9[%c2_189, %c0_190, %c0_191] : memref<3x2x2xf32, #tpu.memory_space<vmem>>, vector<1x2x2xf32>
    %282 = vector.shape_cast %281 : vector<1x2x2xf32> to vector<2x2xf32>
    %cst_192 = arith.constant dense<0.000000e+00> : vector<8x2xf32>
    %283 = tpu.matmul %172, %282, %cst_192 {dimension_numbers = #tpu.dot_dimension_numbers<[1], [0], [0], [1], [0, 0, 1, 1], [], []>} : vector<8x2xf32>, vector<2x2xf32>, vector<8x2xf32> -> vector<8x2xf32>
    %c2_193 = arith.constant 2 : index
    %c0_194 = arith.constant 0 : index
    %c0_195 = arith.constant 0 : index
    %284 = vector.load %arg11[%c2_193, %c0_194, %c0_195] : memref<3x1x2xf32, #tpu.memory_space<vmem>>, vector<1x1x2xf32>
    %285 = vector.shape_cast %284 : vector<1x1x2xf32> to vector<1x2xf32>
    %286 = vector.broadcast %285 : vector<1x2xf32> to vector<8x2xf32>
    %287 = arith.addf %283, %286 : vector<8x2xf32>
    %288 = arith.addf %252, %273 : vector<8x2xf32>
    %289 = arith.negf %288 : vector<8x2xf32>
    %290 = math.exp %289 : vector<8x2xf32>
    %cst_196 = arith.constant 1.000000e+00 : f32
    %291 = vector.broadcast %cst_196 : f32 to vector<8x2xf32>
    %292 = arith.addf %291, %290 : vector<8x2xf32>
    %293 = arith.divf %291, %292 : vector<8x2xf32>
    %294 = arith.addf %259, %280 : vector<8x2xf32>
    %295 = arith.negf %294 : vector<8x2xf32>
    %296 = math.exp %295 : vector<8x2xf32>
    %cst_197 = arith.constant 1.000000e+00 : f32
    %297 = vector.broadcast %cst_197 : f32 to vector<8x2xf32>
    %298 = arith.addf %297, %296 : vector<8x2xf32>
    %299 = arith.divf %297, %298 : vector<8x2xf32>
    %300 = arith.mulf %293, %287 : vector<8x2xf32>
    %301 = arith.addf %266, %300 : vector<8x2xf32>
    %302 = math.tanh %301 : vector<8x2xf32>
    %cst_198 = arith.constant 1.000000e+00 : f32
    %303 = vector.broadcast %cst_198 : f32 to vector<8x2xf32>
    %304 = arith.subf %303, %299 : vector<8x2xf32>
    %305 = arith.mulf %304, %302 : vector<8x2xf32>
    %306 = arith.mulf %299, %172 : vector<8x2xf32>
    %307 = arith.addf %305, %306 : vector<8x2xf32>
    %c2_i32 = arith.constant 2 : i32
    %c8_i32_199 = arith.constant 8 : i32
    %308 = arith.muli %c2_i32, %c8_i32_199 : i32
    %c0_200 = arith.constant 0 : index
    %309 = arith.index_cast %308 : i32 to index
    %c0_201 = arith.constant 0 : index
    %310 = vector.load %arg15[%c0_200, %309, %c0_201] : memref<3x32x128xf32, #tpu.memory_space<vmem>>, vector<1x8x128xf32>
    %311 = vector.shape_cast %310 : vector<1x8x128xf32> to vector<8x128xf32>
    %c1_202 = arith.constant 1 : index
    %312 = arith.index_cast %308 : i32 to index
    %c0_203 = arith.constant 0 : index
    %313 = vector.load %arg15[%c1_202, %312, %c0_203] : memref<3x32x128xf32, #tpu.memory_space<vmem>>, vector<1x8x128xf32>
    %314 = vector.shape_cast %313 : vector<1x8x128xf32> to vector<8x128xf32>
    %c2_204 = arith.constant 2 : index
    %315 = arith.index_cast %308 : i32 to index
    %c0_205 = arith.constant 0 : index
    %316 = vector.load %arg15[%c2_204, %315, %c0_205] : memref<3x32x128xf32, #tpu.memory_space<vmem>>, vector<1x8x128xf32>
    %317 = vector.shape_cast %316 : vector<1x8x128xf32> to vector<8x128xf32>
    %c0_206 = arith.constant 0 : index
    %c0_207 = arith.constant 0 : index
    %c0_208 = arith.constant 0 : index
    %318 = vector.load %arg3[%c0_206, %c0_207, %c0_208] : memref<3x128x128xf32, #tpu.memory_space<vmem>>, vector<1x128x128xf32>
    %319 = vector.shape_cast %318 : vector<1x128x128xf32> to vector<128x128xf32>
    %cst_209 = arith.constant dense<0.000000e+00> : vector<8x128xf32>
    %320 = tpu.matmul %223, %319, %cst_209 {dimension_numbers = #tpu.dot_dimension_numbers<[1], [0], [0], [1], [0, 0, 1, 1], [], []>} : vector<8x128xf32>, vector<128x128xf32>, vector<8x128xf32> -> vector<8x128xf32>
    %c0_210 = arith.constant 0 : index
    %c0_211 = arith.constant 0 : index
    %c0_212 = arith.constant 0 : index
    %321 = vector.load %arg5[%c0_210, %c0_211, %c0_212] : memref<3x1x128xf32, #tpu.memory_space<vmem>>, vector<1x1x128xf32>
    %322 = vector.shape_cast %321 : vector<1x1x128xf32> to vector<1x128xf32>
    %323 = vector.broadcast %322 : vector<1x128xf32> to vector<8x128xf32>
    %324 = arith.addf %320, %323 : vector<8x128xf32>
    %c1_213 = arith.constant 1 : index
    %c0_214 = arith.constant 0 : index
    %c0_215 = arith.constant 0 : index
    %325 = vector.load %arg3[%c1_213, %c0_214, %c0_215] : memref<3x128x128xf32, #tpu.memory_space<vmem>>, vector<1x128x128xf32>
    %326 = vector.shape_cast %325 : vector<1x128x128xf32> to vector<128x128xf32>
    %cst_216 = arith.constant dense<0.000000e+00> : vector<8x128xf32>
    %327 = tpu.matmul %223, %326, %cst_216 {dimension_numbers = #tpu.dot_dimension_numbers<[1], [0], [0], [1], [0, 0, 1, 1], [], []>} : vector<8x128xf32>, vector<128x128xf32>, vector<8x128xf32> -> vector<8x128xf32>
    %c1_217 = arith.constant 1 : index
    %c0_218 = arith.constant 0 : index
    %c0_219 = arith.constant 0 : index
    %328 = vector.load %arg5[%c1_217, %c0_218, %c0_219] : memref<3x1x128xf32, #tpu.memory_space<vmem>>, vector<1x1x128xf32>
    %329 = vector.shape_cast %328 : vector<1x1x128xf32> to vector<1x128xf32>
    %330 = vector.broadcast %329 : vector<1x128xf32> to vector<8x128xf32>
    %331 = arith.addf %327, %330 : vector<8x128xf32>
    %c2_220 = arith.constant 2 : index
    %c0_221 = arith.constant 0 : index
    %c0_222 = arith.constant 0 : index
    %332 = vector.load %arg3[%c2_220, %c0_221, %c0_222] : memref<3x128x128xf32, #tpu.memory_space<vmem>>, vector<1x128x128xf32>
    %333 = vector.shape_cast %332 : vector<1x128x128xf32> to vector<128x128xf32>
    %cst_223 = arith.constant dense<0.000000e+00> : vector<8x128xf32>
    %334 = tpu.matmul %223, %333, %cst_223 {dimension_numbers = #tpu.dot_dimension_numbers<[1], [0], [0], [1], [0, 0, 1, 1], [], []>} : vector<8x128xf32>, vector<128x128xf32>, vector<8x128xf32> -> vector<8x128xf32>
    %c2_224 = arith.constant 2 : index
    %c0_225 = arith.constant 0 : index
    %c0_226 = arith.constant 0 : index
    %335 = vector.load %arg5[%c2_224, %c0_225, %c0_226] : memref<3x1x128xf32, #tpu.memory_space<vmem>>, vector<1x1x128xf32>
    %336 = vector.shape_cast %335 : vector<1x1x128xf32> to vector<1x128xf32>
    %337 = vector.broadcast %336 : vector<1x128xf32> to vector<8x128xf32>
    %338 = arith.addf %334, %337 : vector<8x128xf32>
    %339 = arith.addf %311, %324 : vector<8x128xf32>
    %340 = arith.negf %339 : vector<8x128xf32>
    %341 = math.exp %340 : vector<8x128xf32>
    %cst_227 = arith.constant 1.000000e+00 : f32
    %342 = vector.broadcast %cst_227 : f32 to vector<8x128xf32>
    %343 = arith.addf %342, %341 : vector<8x128xf32>
    %344 = arith.divf %342, %343 : vector<8x128xf32>
    %345 = arith.addf %314, %331 : vector<8x128xf32>
    %346 = arith.negf %345 : vector<8x128xf32>
    %347 = math.exp %346 : vector<8x128xf32>
    %cst_228 = arith.constant 1.000000e+00 : f32
    %348 = vector.broadcast %cst_228 : f32 to vector<8x128xf32>
    %349 = arith.addf %348, %347 : vector<8x128xf32>
    %350 = arith.divf %348, %349 : vector<8x128xf32>
    %351 = arith.mulf %344, %338 : vector<8x128xf32>
    %352 = arith.addf %317, %351 : vector<8x128xf32>
    %353 = math.tanh %352 : vector<8x128xf32>
    %cst_229 = arith.constant 1.000000e+00 : f32
    %354 = vector.broadcast %cst_229 : f32 to vector<8x128xf32>
    %355 = arith.subf %354, %350 : vector<8x128xf32>
    %356 = arith.mulf %355, %353 : vector<8x128xf32>
    %357 = arith.mulf %350, %223 : vector<8x128xf32>
    %358 = arith.addf %356, %357 : vector<8x128xf32>
    %cst_230 = arith.constant dense<0.000000e+00> : vector<8xf32>
    %359 = vector.multi_reduction <add>, %358, %cst_230 [1] : vector<8x128xf32> to vector<8xf32>
    %360 = vector.shape_cast %359 : vector<8xf32> to vector<8x1xf32>
    %cst_231 = arith.constant 1.280000e+02 : f32
    %361 = vector.broadcast %cst_231 : f32 to vector<8x1xf32>
    %362 = arith.divf %360, %361 : vector<8x1xf32>
    %363 = vector.broadcast %362 : vector<8x1xf32> to vector<8x128xf32>
    %364 = arith.subf %358, %363 : vector<8x128xf32>
    %365 = arith.mulf %364, %364 : vector<8x128xf32>
    %cst_232 = arith.constant dense<0.000000e+00> : vector<8xf32>
    %366 = vector.multi_reduction <add>, %365, %cst_232 [1] : vector<8x128xf32> to vector<8xf32>
    %367 = vector.shape_cast %366 : vector<8xf32> to vector<8x1xf32>
    %cst_233 = arith.constant 1.280000e+02 : f32
    %368 = vector.broadcast %cst_233 : f32 to vector<8x1xf32>
    %369 = arith.divf %367, %368 : vector<8x1xf32>
    %370 = vector.broadcast %362 : vector<8x1xf32> to vector<8x128xf32>
    %371 = arith.subf %358, %370 : vector<8x128xf32>
    %cst_234 = arith.constant 9.99999974E-6 : f32
    %372 = vector.broadcast %cst_234 : f32 to vector<8x1xf32>
    %373 = arith.addf %369, %372 : vector<8x1xf32>
    %374 = math.rsqrt %373 : vector<8x1xf32>
    %375 = vector.broadcast %374 : vector<8x1xf32> to vector<8x128xf32>
    %376 = arith.mulf %371, %375 : vector<8x128xf32>
    %377 = vector.broadcast %36 : vector<1x128xf32> to vector<8x128xf32>
    %378 = arith.mulf %376, %377 : vector<8x128xf32>
    %379 = vector.broadcast %37 : vector<1x128xf32> to vector<8x128xf32>
    %380 = arith.addf %378, %379 : vector<8x128xf32>
    %c0_235 = arith.constant 0 : index
    %c0_236 = arith.constant 0 : index
    %c0_237 = arith.constant 0 : index
    %381 = vector.load %arg8[%c0_235, %c0_236, %c0_237] : memref<3x128x2xf32, #tpu.memory_space<vmem>>, vector<1x128x2xf32>
    %382 = vector.shape_cast %381 : vector<1x128x2xf32> to vector<128x2xf32>
    %cst_238 = arith.constant dense<0.000000e+00> : vector<8x2xf32>
    %383 = tpu.matmul %380, %382, %cst_238 {dimension_numbers = #tpu.dot_dimension_numbers<[1], [0], [0], [1], [0, 0, 1, 1], [], []>} : vector<8x128xf32>, vector<128x2xf32>, vector<8x2xf32> -> vector<8x2xf32>
    %c0_239 = arith.constant 0 : index
    %c0_240 = arith.constant 0 : index
    %c0_241 = arith.constant 0 : index
    %384 = vector.load %arg10[%c0_239, %c0_240, %c0_241] : memref<3x1x2xf32, #tpu.memory_space<vmem>>, vector<1x1x2xf32>
    %385 = vector.shape_cast %384 : vector<1x1x2xf32> to vector<1x2xf32>
    %386 = vector.broadcast %385 : vector<1x2xf32> to vector<8x2xf32>
    %387 = arith.addf %383, %386 : vector<8x2xf32>
    %c1_242 = arith.constant 1 : index
    %c0_243 = arith.constant 0 : index
    %c0_244 = arith.constant 0 : index
    %388 = vector.load %arg8[%c1_242, %c0_243, %c0_244] : memref<3x128x2xf32, #tpu.memory_space<vmem>>, vector<1x128x2xf32>
    %389 = vector.shape_cast %388 : vector<1x128x2xf32> to vector<128x2xf32>
    %cst_245 = arith.constant dense<0.000000e+00> : vector<8x2xf32>
    %390 = tpu.matmul %380, %389, %cst_245 {dimension_numbers = #tpu.dot_dimension_numbers<[1], [0], [0], [1], [0, 0, 1, 1], [], []>} : vector<8x128xf32>, vector<128x2xf32>, vector<8x2xf32> -> vector<8x2xf32>
    %c1_246 = arith.constant 1 : index
    %c0_247 = arith.constant 0 : index
    %c0_248 = arith.constant 0 : index
    %391 = vector.load %arg10[%c1_246, %c0_247, %c0_248] : memref<3x1x2xf32, #tpu.memory_space<vmem>>, vector<1x1x2xf32>
    %392 = vector.shape_cast %391 : vector<1x1x2xf32> to vector<1x2xf32>
    %393 = vector.broadcast %392 : vector<1x2xf32> to vector<8x2xf32>
    %394 = arith.addf %390, %393 : vector<8x2xf32>
    %c2_249 = arith.constant 2 : index
    %c0_250 = arith.constant 0 : index
    %c0_251 = arith.constant 0 : index
    %395 = vector.load %arg8[%c2_249, %c0_250, %c0_251] : memref<3x128x2xf32, #tpu.memory_space<vmem>>, vector<1x128x2xf32>
    %396 = vector.shape_cast %395 : vector<1x128x2xf32> to vector<128x2xf32>
    %cst_252 = arith.constant dense<0.000000e+00> : vector<8x2xf32>
    %397 = tpu.matmul %380, %396, %cst_252 {dimension_numbers = #tpu.dot_dimension_numbers<[1], [0], [0], [1], [0, 0, 1, 1], [], []>} : vector<8x128xf32>, vector<128x2xf32>, vector<8x2xf32> -> vector<8x2xf32>
    %c2_253 = arith.constant 2 : index
    %c0_254 = arith.constant 0 : index
    %c0_255 = arith.constant 0 : index
    %398 = vector.load %arg10[%c2_253, %c0_254, %c0_255] : memref<3x1x2xf32, #tpu.memory_space<vmem>>, vector<1x1x2xf32>
    %399 = vector.shape_cast %398 : vector<1x1x2xf32> to vector<1x2xf32>
    %400 = vector.broadcast %399 : vector<1x2xf32> to vector<8x2xf32>
    %401 = arith.addf %397, %400 : vector<8x2xf32>
    %c0_256 = arith.constant 0 : index
    %c0_257 = arith.constant 0 : index
    %c0_258 = arith.constant 0 : index
    %402 = vector.load %arg9[%c0_256, %c0_257, %c0_258] : memref<3x2x2xf32, #tpu.memory_space<vmem>>, vector<1x2x2xf32>
    %403 = vector.shape_cast %402 : vector<1x2x2xf32> to vector<2x2xf32>
    %cst_259 = arith.constant dense<0.000000e+00> : vector<8x2xf32>
    %404 = tpu.matmul %307, %403, %cst_259 {dimension_numbers = #tpu.dot_dimension_numbers<[1], [0], [0], [1], [0, 0, 1, 1], [], []>} : vector<8x2xf32>, vector<2x2xf32>, vector<8x2xf32> -> vector<8x2xf32>
    %c0_260 = arith.constant 0 : index
    %c0_261 = arith.constant 0 : index
    %c0_262 = arith.constant 0 : index
    %405 = vector.load %arg11[%c0_260, %c0_261, %c0_262] : memref<3x1x2xf32, #tpu.memory_space<vmem>>, vector<1x1x2xf32>
    %406 = vector.shape_cast %405 : vector<1x1x2xf32> to vector<1x2xf32>
    %407 = vector.broadcast %406 : vector<1x2xf32> to vector<8x2xf32>
    %408 = arith.addf %404, %407 : vector<8x2xf32>
    %c1_263 = arith.constant 1 : index
    %c0_264 = arith.constant 0 : index
    %c0_265 = arith.constant 0 : index
    %409 = vector.load %arg9[%c1_263, %c0_264, %c0_265] : memref<3x2x2xf32, #tpu.memory_space<vmem>>, vector<1x2x2xf32>
    %410 = vector.shape_cast %409 : vector<1x2x2xf32> to vector<2x2xf32>
    %cst_266 = arith.constant dense<0.000000e+00> : vector<8x2xf32>
    %411 = tpu.matmul %307, %410, %cst_266 {dimension_numbers = #tpu.dot_dimension_numbers<[1], [0], [0], [1], [0, 0, 1, 1], [], []>} : vector<8x2xf32>, vector<2x2xf32>, vector<8x2xf32> -> vector<8x2xf32>
    %c1_267 = arith.constant 1 : index
    %c0_268 = arith.constant 0 : index
    %c0_269 = arith.constant 0 : index
    %412 = vector.load %arg11[%c1_267, %c0_268, %c0_269] : memref<3x1x2xf32, #tpu.memory_space<vmem>>, vector<1x1x2xf32>
    %413 = vector.shape_cast %412 : vector<1x1x2xf32> to vector<1x2xf32>
    %414 = vector.broadcast %413 : vector<1x2xf32> to vector<8x2xf32>
    %415 = arith.addf %411, %414 : vector<8x2xf32>
    %c2_270 = arith.constant 2 : index
    %c0_271 = arith.constant 0 : index
    %c0_272 = arith.constant 0 : index
    %416 = vector.load %arg9[%c2_270, %c0_271, %c0_272] : memref<3x2x2xf32, #tpu.memory_space<vmem>>, vector<1x2x2xf32>
    %417 = vector.shape_cast %416 : vector<1x2x2xf32> to vector<2x2xf32>
    %cst_273 = arith.constant dense<0.000000e+00> : vector<8x2xf32>
    %418 = tpu.matmul %307, %417, %cst_273 {dimension_numbers = #tpu.dot_dimension_numbers<[1], [0], [0], [1], [0, 0, 1, 1], [], []>} : vector<8x2xf32>, vector<2x2xf32>, vector<8x2xf32> -> vector<8x2xf32>
    %c2_274 = arith.constant 2 : index
    %c0_275 = arith.constant 0 : index
    %c0_276 = arith.constant 0 : index
    %419 = vector.load %arg11[%c2_274, %c0_275, %c0_276] : memref<3x1x2xf32, #tpu.memory_space<vmem>>, vector<1x1x2xf32>
    %420 = vector.shape_cast %419 : vector<1x1x2xf32> to vector<1x2xf32>
    %421 = vector.broadcast %420 : vector<1x2xf32> to vector<8x2xf32>
    %422 = arith.addf %418, %421 : vector<8x2xf32>
    %423 = arith.addf %387, %408 : vector<8x2xf32>
    %424 = arith.negf %423 : vector<8x2xf32>
    %425 = math.exp %424 : vector<8x2xf32>
    %cst_277 = arith.constant 1.000000e+00 : f32
    %426 = vector.broadcast %cst_277 : f32 to vector<8x2xf32>
    %427 = arith.addf %426, %425 : vector<8x2xf32>
    %428 = arith.divf %426, %427 : vector<8x2xf32>
    %429 = arith.addf %394, %415 : vector<8x2xf32>
    %430 = arith.negf %429 : vector<8x2xf32>
    %431 = math.exp %430 : vector<8x2xf32>
    %cst_278 = arith.constant 1.000000e+00 : f32
    %432 = vector.broadcast %cst_278 : f32 to vector<8x2xf32>
    %433 = arith.addf %432, %431 : vector<8x2xf32>
    %434 = arith.divf %432, %433 : vector<8x2xf32>
    %435 = arith.mulf %428, %422 : vector<8x2xf32>
    %436 = arith.addf %401, %435 : vector<8x2xf32>
    %437 = math.tanh %436 : vector<8x2xf32>
    %cst_279 = arith.constant 1.000000e+00 : f32
    %438 = vector.broadcast %cst_279 : f32 to vector<8x2xf32>
    %439 = arith.subf %438, %434 : vector<8x2xf32>
    %440 = arith.mulf %439, %437 : vector<8x2xf32>
    %441 = arith.mulf %434, %307 : vector<8x2xf32>
    %442 = arith.addf %440, %441 : vector<8x2xf32>
    %c3_i32 = arith.constant 3 : i32
    %c8_i32_280 = arith.constant 8 : i32
    %443 = arith.muli %c3_i32, %c8_i32_280 : i32
    %c0_281 = arith.constant 0 : index
    %444 = arith.index_cast %443 : i32 to index
    %c0_282 = arith.constant 0 : index
    %445 = vector.load %arg15[%c0_281, %444, %c0_282] : memref<3x32x128xf32, #tpu.memory_space<vmem>>, vector<1x8x128xf32>
    %446 = vector.shape_cast %445 : vector<1x8x128xf32> to vector<8x128xf32>
    %c1_283 = arith.constant 1 : index
    %447 = arith.index_cast %443 : i32 to index
    %c0_284 = arith.constant 0 : index
    %448 = vector.load %arg15[%c1_283, %447, %c0_284] : memref<3x32x128xf32, #tpu.memory_space<vmem>>, vector<1x8x128xf32>
    %449 = vector.shape_cast %448 : vector<1x8x128xf32> to vector<8x128xf32>
    %c2_285 = arith.constant 2 : index
    %450 = arith.index_cast %443 : i32 to index
    %c0_286 = arith.constant 0 : index
    %451 = vector.load %arg15[%c2_285, %450, %c0_286] : memref<3x32x128xf32, #tpu.memory_space<vmem>>, vector<1x8x128xf32>
    %452 = vector.shape_cast %451 : vector<1x8x128xf32> to vector<8x128xf32>
    %c0_287 = arith.constant 0 : index
    %c0_288 = arith.constant 0 : index
    %c0_289 = arith.constant 0 : index
    %453 = vector.load %arg3[%c0_287, %c0_288, %c0_289] : memref<3x128x128xf32, #tpu.memory_space<vmem>>, vector<1x128x128xf32>
    %454 = vector.shape_cast %453 : vector<1x128x128xf32> to vector<128x128xf32>
    %cst_290 = arith.constant dense<0.000000e+00> : vector<8x128xf32>
    %455 = tpu.matmul %358, %454, %cst_290 {dimension_numbers = #tpu.dot_dimension_numbers<[1], [0], [0], [1], [0, 0, 1, 1], [], []>} : vector<8x128xf32>, vector<128x128xf32>, vector<8x128xf32> -> vector<8x128xf32>
    %c0_291 = arith.constant 0 : index
    %c0_292 = arith.constant 0 : index
    %c0_293 = arith.constant 0 : index
    %456 = vector.load %arg5[%c0_291, %c0_292, %c0_293] : memref<3x1x128xf32, #tpu.memory_space<vmem>>, vector<1x1x128xf32>
    %457 = vector.shape_cast %456 : vector<1x1x128xf32> to vector<1x128xf32>
    %458 = vector.broadcast %457 : vector<1x128xf32> to vector<8x128xf32>
    %459 = arith.addf %455, %458 : vector<8x128xf32>
    %c1_294 = arith.constant 1 : index
    %c0_295 = arith.constant 0 : index
    %c0_296 = arith.constant 0 : index
    %460 = vector.load %arg3[%c1_294, %c0_295, %c0_296] : memref<3x128x128xf32, #tpu.memory_space<vmem>>, vector<1x128x128xf32>
    %461 = vector.shape_cast %460 : vector<1x128x128xf32> to vector<128x128xf32>
    %cst_297 = arith.constant dense<0.000000e+00> : vector<8x128xf32>
    %462 = tpu.matmul %358, %461, %cst_297 {dimension_numbers = #tpu.dot_dimension_numbers<[1], [0], [0], [1], [0, 0, 1, 1], [], []>} : vector<8x128xf32>, vector<128x128xf32>, vector<8x128xf32> -> vector<8x128xf32>
    %c1_298 = arith.constant 1 : index
    %c0_299 = arith.constant 0 : index
    %c0_300 = arith.constant 0 : index
    %463 = vector.load %arg5[%c1_298, %c0_299, %c0_300] : memref<3x1x128xf32, #tpu.memory_space<vmem>>, vector<1x1x128xf32>
    %464 = vector.shape_cast %463 : vector<1x1x128xf32> to vector<1x128xf32>
    %465 = vector.broadcast %464 : vector<1x128xf32> to vector<8x128xf32>
    %466 = arith.addf %462, %465 : vector<8x128xf32>
    %c2_301 = arith.constant 2 : index
    %c0_302 = arith.constant 0 : index
    %c0_303 = arith.constant 0 : index
    %467 = vector.load %arg3[%c2_301, %c0_302, %c0_303] : memref<3x128x128xf32, #tpu.memory_space<vmem>>, vector<1x128x128xf32>
    %468 = vector.shape_cast %467 : vector<1x128x128xf32> to vector<128x128xf32>
    %cst_304 = arith.constant dense<0.000000e+00> : vector<8x128xf32>
    %469 = tpu.matmul %358, %468, %cst_304 {dimension_numbers = #tpu.dot_dimension_numbers<[1], [0], [0], [1], [0, 0, 1, 1], [], []>} : vector<8x128xf32>, vector<128x128xf32>, vector<8x128xf32> -> vector<8x128xf32>
    %c2_305 = arith.constant 2 : index
    %c0_306 = arith.constant 0 : index
    %c0_307 = arith.constant 0 : index
    %470 = vector.load %arg5[%c2_305, %c0_306, %c0_307] : memref<3x1x128xf32, #tpu.memory_space<vmem>>, vector<1x1x128xf32>
    %471 = vector.shape_cast %470 : vector<1x1x128xf32> to vector<1x128xf32>
    %472 = vector.broadcast %471 : vector<1x128xf32> to vector<8x128xf32>
    %473 = arith.addf %469, %472 : vector<8x128xf32>
    %474 = arith.addf %446, %459 : vector<8x128xf32>
    %475 = arith.negf %474 : vector<8x128xf32>
    %476 = math.exp %475 : vector<8x128xf32>
    %cst_308 = arith.constant 1.000000e+00 : f32
    %477 = vector.broadcast %cst_308 : f32 to vector<8x128xf32>
    %478 = arith.addf %477, %476 : vector<8x128xf32>
    %479 = arith.divf %477, %478 : vector<8x128xf32>
    %480 = arith.addf %449, %466 : vector<8x128xf32>
    %481 = arith.negf %480 : vector<8x128xf32>
    %482 = math.exp %481 : vector<8x128xf32>
    %cst_309 = arith.constant 1.000000e+00 : f32
    %483 = vector.broadcast %cst_309 : f32 to vector<8x128xf32>
    %484 = arith.addf %483, %482 : vector<8x128xf32>
    %485 = arith.divf %483, %484 : vector<8x128xf32>
    %486 = arith.mulf %479, %473 : vector<8x128xf32>
    %487 = arith.addf %452, %486 : vector<8x128xf32>
    %488 = math.tanh %487 : vector<8x128xf32>
    %cst_310 = arith.constant 1.000000e+00 : f32
    %489 = vector.broadcast %cst_310 : f32 to vector<8x128xf32>
    %490 = arith.subf %489, %485 : vector<8x128xf32>
    %491 = arith.mulf %490, %488 : vector<8x128xf32>
    %492 = arith.mulf %485, %358 : vector<8x128xf32>
    %493 = arith.addf %491, %492 : vector<8x128xf32>
    %cst_311 = arith.constant dense<0.000000e+00> : vector<8xf32>
    %494 = vector.multi_reduction <add>, %493, %cst_311 [1] : vector<8x128xf32> to vector<8xf32>
    %495 = vector.shape_cast %494 : vector<8xf32> to vector<8x1xf32>
    %cst_312 = arith.constant 1.280000e+02 : f32
    %496 = vector.broadcast %cst_312 : f32 to vector<8x1xf32>
    %497 = arith.divf %495, %496 : vector<8x1xf32>
    %498 = vector.broadcast %497 : vector<8x1xf32> to vector<8x128xf32>
    %499 = arith.subf %493, %498 : vector<8x128xf32>
    %500 = arith.mulf %499, %499 : vector<8x128xf32>
    %cst_313 = arith.constant dense<0.000000e+00> : vector<8xf32>
    %501 = vector.multi_reduction <add>, %500, %cst_313 [1] : vector<8x128xf32> to vector<8xf32>
    %502 = vector.shape_cast %501 : vector<8xf32> to vector<8x1xf32>
    %cst_314 = arith.constant 1.280000e+02 : f32
    %503 = vector.broadcast %cst_314 : f32 to vector<8x1xf32>
    %504 = arith.divf %502, %503 : vector<8x1xf32>
    %505 = vector.broadcast %497 : vector<8x1xf32> to vector<8x128xf32>
    %506 = arith.subf %493, %505 : vector<8x128xf32>
    %cst_315 = arith.constant 9.99999974E-6 : f32
    %507 = vector.broadcast %cst_315 : f32 to vector<8x1xf32>
    %508 = arith.addf %504, %507 : vector<8x1xf32>
    %509 = math.rsqrt %508 : vector<8x1xf32>
    %510 = vector.broadcast %509 : vector<8x1xf32> to vector<8x128xf32>
    %511 = arith.mulf %506, %510 : vector<8x128xf32>
    %512 = vector.broadcast %36 : vector<1x128xf32> to vector<8x128xf32>
    %513 = arith.mulf %511, %512 : vector<8x128xf32>
    %514 = vector.broadcast %37 : vector<1x128xf32> to vector<8x128xf32>
    %515 = arith.addf %513, %514 : vector<8x128xf32>
    %c0_316 = arith.constant 0 : index
    %c0_317 = arith.constant 0 : index
    %c0_318 = arith.constant 0 : index
    %516 = vector.load %arg8[%c0_316, %c0_317, %c0_318] : memref<3x128x2xf32, #tpu.memory_space<vmem>>, vector<1x128x2xf32>
    %517 = vector.shape_cast %516 : vector<1x128x2xf32> to vector<128x2xf32>
    %cst_319 = arith.constant dense<0.000000e+00> : vector<8x2xf32>
    %518 = tpu.matmul %515, %517, %cst_319 {dimension_numbers = #tpu.dot_dimension_numbers<[1], [0], [0], [1], [0, 0, 1, 1], [], []>} : vector<8x128xf32>, vector<128x2xf32>, vector<8x2xf32> -> vector<8x2xf32>
    %c0_320 = arith.constant 0 : index
    %c0_321 = arith.constant 0 : index
    %c0_322 = arith.constant 0 : index
    %519 = vector.load %arg10[%c0_320, %c0_321, %c0_322] : memref<3x1x2xf32, #tpu.memory_space<vmem>>, vector<1x1x2xf32>
    %520 = vector.shape_cast %519 : vector<1x1x2xf32> to vector<1x2xf32>
    %521 = vector.broadcast %520 : vector<1x2xf32> to vector<8x2xf32>
    %522 = arith.addf %518, %521 : vector<8x2xf32>
    %c1_323 = arith.constant 1 : index
    %c0_324 = arith.constant 0 : index
    %c0_325 = arith.constant 0 : index
    %523 = vector.load %arg8[%c1_323, %c0_324, %c0_325] : memref<3x128x2xf32, #tpu.memory_space<vmem>>, vector<1x128x2xf32>
    %524 = vector.shape_cast %523 : vector<1x128x2xf32> to vector<128x2xf32>
    %cst_326 = arith.constant dense<0.000000e+00> : vector<8x2xf32>
    %525 = tpu.matmul %515, %524, %cst_326 {dimension_numbers = #tpu.dot_dimension_numbers<[1], [0], [0], [1], [0, 0, 1, 1], [], []>} : vector<8x128xf32>, vector<128x2xf32>, vector<8x2xf32> -> vector<8x2xf32>
    %c1_327 = arith.constant 1 : index
    %c0_328 = arith.constant 0 : index
    %c0_329 = arith.constant 0 : index
    %526 = vector.load %arg10[%c1_327, %c0_328, %c0_329] : memref<3x1x2xf32, #tpu.memory_space<vmem>>, vector<1x1x2xf32>
    %527 = vector.shape_cast %526 : vector<1x1x2xf32> to vector<1x2xf32>
    %528 = vector.broadcast %527 : vector<1x2xf32> to vector<8x2xf32>
    %529 = arith.addf %525, %528 : vector<8x2xf32>
    %c2_330 = arith.constant 2 : index
    %c0_331 = arith.constant 0 : index
    %c0_332 = arith.constant 0 : index
    %530 = vector.load %arg8[%c2_330, %c0_331, %c0_332] : memref<3x128x2xf32, #tpu.memory_space<vmem>>, vector<1x128x2xf32>
    %531 = vector.shape_cast %530 : vector<1x128x2xf32> to vector<128x2xf32>
    %cst_333 = arith.constant dense<0.000000e+00> : vector<8x2xf32>
    %532 = tpu.matmul %515, %531, %cst_333 {dimension_numbers = #tpu.dot_dimension_numbers<[1], [0], [0], [1], [0, 0, 1, 1], [], []>} : vector<8x128xf32>, vector<128x2xf32>, vector<8x2xf32> -> vector<8x2xf32>
    %c2_334 = arith.constant 2 : index
    %c0_335 = arith.constant 0 : index
    %c0_336 = arith.constant 0 : index
    %533 = vector.load %arg10[%c2_334, %c0_335, %c0_336] : memref<3x1x2xf32, #tpu.memory_space<vmem>>, vector<1x1x2xf32>
    %534 = vector.shape_cast %533 : vector<1x1x2xf32> to vector<1x2xf32>
    %535 = vector.broadcast %534 : vector<1x2xf32> to vector<8x2xf32>
    %536 = arith.addf %532, %535 : vector<8x2xf32>
    %c0_337 = arith.constant 0 : index
    %c0_338 = arith.constant 0 : index
    %c0_339 = arith.constant 0 : index
    %537 = vector.load %arg9[%c0_337, %c0_338, %c0_339] : memref<3x2x2xf32, #tpu.memory_space<vmem>>, vector<1x2x2xf32>
    %538 = vector.shape_cast %537 : vector<1x2x2xf32> to vector<2x2xf32>
    %cst_340 = arith.constant dense<0.000000e+00> : vector<8x2xf32>
    %539 = tpu.matmul %442, %538, %cst_340 {dimension_numbers = #tpu.dot_dimension_numbers<[1], [0], [0], [1], [0, 0, 1, 1], [], []>} : vector<8x2xf32>, vector<2x2xf32>, vector<8x2xf32> -> vector<8x2xf32>
    %c0_341 = arith.constant 0 : index
    %c0_342 = arith.constant 0 : index
    %c0_343 = arith.constant 0 : index
    %540 = vector.load %arg11[%c0_341, %c0_342, %c0_343] : memref<3x1x2xf32, #tpu.memory_space<vmem>>, vector<1x1x2xf32>
    %541 = vector.shape_cast %540 : vector<1x1x2xf32> to vector<1x2xf32>
    %542 = vector.broadcast %541 : vector<1x2xf32> to vector<8x2xf32>
    %543 = arith.addf %539, %542 : vector<8x2xf32>
    %c1_344 = arith.constant 1 : index
    %c0_345 = arith.constant 0 : index
    %c0_346 = arith.constant 0 : index
    %544 = vector.load %arg9[%c1_344, %c0_345, %c0_346] : memref<3x2x2xf32, #tpu.memory_space<vmem>>, vector<1x2x2xf32>
    %545 = vector.shape_cast %544 : vector<1x2x2xf32> to vector<2x2xf32>
    %cst_347 = arith.constant dense<0.000000e+00> : vector<8x2xf32>
    %546 = tpu.matmul %442, %545, %cst_347 {dimension_numbers = #tpu.dot_dimension_numbers<[1], [0], [0], [1], [0, 0, 1, 1], [], []>} : vector<8x2xf32>, vector<2x2xf32>, vector<8x2xf32> -> vector<8x2xf32>
    %c1_348 = arith.constant 1 : index
    %c0_349 = arith.constant 0 : index
    %c0_350 = arith.constant 0 : index
    %547 = vector.load %arg11[%c1_348, %c0_349, %c0_350] : memref<3x1x2xf32, #tpu.memory_space<vmem>>, vector<1x1x2xf32>
    %548 = vector.shape_cast %547 : vector<1x1x2xf32> to vector<1x2xf32>
    %549 = vector.broadcast %548 : vector<1x2xf32> to vector<8x2xf32>
    %550 = arith.addf %546, %549 : vector<8x2xf32>
    %c2_351 = arith.constant 2 : index
    %c0_352 = arith.constant 0 : index
    %c0_353 = arith.constant 0 : index
    %551 = vector.load %arg9[%c2_351, %c0_352, %c0_353] : memref<3x2x2xf32, #tpu.memory_space<vmem>>, vector<1x2x2xf32>
    %552 = vector.shape_cast %551 : vector<1x2x2xf32> to vector<2x2xf32>
    %cst_354 = arith.constant dense<0.000000e+00> : vector<8x2xf32>
    %553 = tpu.matmul %442, %552, %cst_354 {dimension_numbers = #tpu.dot_dimension_numbers<[1], [0], [0], [1], [0, 0, 1, 1], [], []>} : vector<8x2xf32>, vector<2x2xf32>, vector<8x2xf32> -> vector<8x2xf32>
    %c2_355 = arith.constant 2 : index
    %c0_356 = arith.constant 0 : index
    %c0_357 = arith.constant 0 : index
    %554 = vector.load %arg11[%c2_355, %c0_356, %c0_357] : memref<3x1x2xf32, #tpu.memory_space<vmem>>, vector<1x1x2xf32>
    %555 = vector.shape_cast %554 : vector<1x1x2xf32> to vector<1x2xf32>
    %556 = vector.broadcast %555 : vector<1x2xf32> to vector<8x2xf32>
    %557 = arith.addf %553, %556 : vector<8x2xf32>
    %558 = arith.addf %522, %543 : vector<8x2xf32>
    %559 = arith.negf %558 : vector<8x2xf32>
    %560 = math.exp %559 : vector<8x2xf32>
    %cst_358 = arith.constant 1.000000e+00 : f32
    %561 = vector.broadcast %cst_358 : f32 to vector<8x2xf32>
    %562 = arith.addf %561, %560 : vector<8x2xf32>
    %563 = arith.divf %561, %562 : vector<8x2xf32>
    %564 = arith.addf %529, %550 : vector<8x2xf32>
    %565 = arith.negf %564 : vector<8x2xf32>
    %566 = math.exp %565 : vector<8x2xf32>
    %cst_359 = arith.constant 1.000000e+00 : f32
    %567 = vector.broadcast %cst_359 : f32 to vector<8x2xf32>
    %568 = arith.addf %567, %566 : vector<8x2xf32>
    %569 = arith.divf %567, %568 : vector<8x2xf32>
    %570 = arith.mulf %563, %557 : vector<8x2xf32>
    %571 = arith.addf %536, %570 : vector<8x2xf32>
    %572 = math.tanh %571 : vector<8x2xf32>
    %cst_360 = arith.constant 1.000000e+00 : f32
    %573 = vector.broadcast %cst_360 : f32 to vector<8x2xf32>
    %574 = arith.subf %573, %569 : vector<8x2xf32>
    %575 = arith.mulf %574, %572 : vector<8x2xf32>
    %576 = arith.mulf %569, %442 : vector<8x2xf32>
    %577 = arith.addf %575, %576 : vector<8x2xf32>
    %c4_i32 = arith.constant 4 : i32
    %c0_361 = arith.constant 0 : index
    %c0_362 = arith.constant 0 : index
    %578 = vector.load %arg16[%c0_361, %c0_362] : memref<8x128xf32, #tpu.memory_space<vmem>>, vector<8x128xf32>
    tpu.vector_store %arg16[%c0_361, %c0_362], %493 {strides = array<i32>} : memref<8x128xf32, #tpu.memory_space<vmem>>, vector<8x128xf32>,
    %c0_363 = arith.constant 0 : index
    %c0_364 = arith.constant 0 : index
    %579 = vector.load %arg17[%c0_363, %c0_364] : memref<8x2xf32, #tpu.memory_space<vmem>>, vector<8x2xf32>
    tpu.vector_store %arg17[%c0_363, %c0_364], %577 {strides = array<i32>} : memref<8x2xf32, #tpu.memory_space<vmem>>, vector<8x2xf32>,
    %c1_i32_365 = arith.constant 1 : i32
    %580 = arith.cmpi eq, %arg0, %c1_i32_365 : i32
    %581 = arith.extui %580 : i1 to i32
    %c0_i32_366 = arith.constant 0 : i32
    %582 = arith.cmpi ne, %581, %c0_i32_366 : i32
    scf.if %582 {
      %cst_367 = arith.constant dense<0.000000e+00> : vector<8xf32>
      %583 = vector.multi_reduction <add>, %577, %cst_367 [1] : vector<8x2xf32> to vector<8xf32>
      %584 = vector.shape_cast %583 : vector<8xf32> to vector<8x1xf32>
      %cst_368 = arith.constant 2.000000e+00 : f32
      %585 = vector.broadcast %cst_368 : f32 to vector<8x1xf32>
      %586 = arith.divf %584, %585 : vector<8x1xf32>
      %587 = vector.broadcast %586 : vector<8x1xf32> to vector<8x2xf32>
      %588 = arith.subf %577, %587 : vector<8x2xf32>
      %589 = arith.mulf %588, %588 : vector<8x2xf32>
      %cst_369 = arith.constant dense<0.000000e+00> : vector<8xf32>
      %590 = vector.multi_reduction <add>, %589, %cst_369 [1] : vector<8x2xf32> to vector<8xf32>
      %591 = vector.shape_cast %590 : vector<8xf32> to vector<8x1xf32>
      %cst_370 = arith.constant 2.000000e+00 : f32
      %592 = vector.broadcast %cst_370 : f32 to vector<8x1xf32>
      %593 = arith.divf %591, %592 : vector<8x1xf32>
      %594 = vector.broadcast %586 : vector<8x1xf32> to vector<8x2xf32>
      %595 = arith.subf %577, %594 : vector<8x2xf32>
      %cst_371 = arith.constant 9.99999974E-6 : f32
      %596 = vector.broadcast %cst_371 : f32 to vector<8x1xf32>
      %597 = arith.addf %593, %596 : vector<8x1xf32>
      %598 = math.rsqrt %597 : vector<8x1xf32>
      %599 = vector.broadcast %598 : vector<8x1xf32> to vector<8x2xf32>
      %600 = arith.mulf %595, %599 : vector<8x2xf32>
      %c0_372 = arith.constant 0 : index
      %c0_373 = arith.constant 0 : index
      %601 = vector.load %arg12[%c0_372, %c0_373] : memref<1x2xf32, #tpu.memory_space<vmem>>, vector<1x2xf32>
      %602 = vector.broadcast %601 : vector<1x2xf32> to vector<8x2xf32>
      %603 = arith.mulf %600, %602 : vector<8x2xf32>
      %c0_374 = arith.constant 0 : index
      %c0_375 = arith.constant 0 : index
      %604 = vector.load %arg13[%c0_374, %c0_375] : memref<1x2xf32, #tpu.memory_space<vmem>>, vector<1x2xf32>
      %605 = vector.broadcast %604 : vector<1x2xf32> to vector<8x2xf32>
      %606 = arith.addf %603, %605 : vector<8x2xf32>
      %c0_376 = arith.constant 0 : index
      %c0_377 = arith.constant 0 : index
      %607 = vector.load %arg14[%c0_376, %c0_377] : memref<8x2xf32, #tpu.memory_space<vmem>>, vector<8x2xf32>
      tpu.vector_store %arg14[%c0_376, %c0_377], %606 {strides = array<i32>} : memref<8x2xf32, #tpu.memory_space<vmem>>, vector<8x2xf32>,
    } else {
    }
    return
  }
  func.func @transform_0(%arg0: i32) -> (i32, i32) {
    %c0_i32 = arith.constant 0 : i32
    %c0_i32_0 = arith.constant 0 : i32
    return %arg0, %c0_i32 : i32, i32
  }
  func.func @transform_1(%arg0: i32) -> (i32, i32, i32) {
    %c0_i32 = arith.constant 0 : i32
    %c0_i32_0 = arith.constant 0 : i32
    %c0_i32_1 = arith.constant 0 : i32
    %c0_i32_2 = arith.constant 0 : i32
    return %c0_i32, %c0_i32_0, %c0_i32_1 : i32, i32, i32
  }
  func.func @transform_2(%arg0: i32) -> (i32, i32, i32) {
    %c0_i32 = arith.constant 0 : i32
    %c0_i32_0 = arith.constant 0 : i32
    %c0_i32_1 = arith.constant 0 : i32
    %c0_i32_2 = arith.constant 0 : i32
    return %c0_i32, %c0_i32_0, %c0_i32_1 : i32, i32, i32
  }
  func.func @transform_3(%arg0: i32) -> (i32, i32, i32) {
    %c0_i32 = arith.constant 0 : i32
    %c0_i32_0 = arith.constant 0 : i32
    %c0_i32_1 = arith.constant 0 : i32
    %c0_i32_2 = arith.constant 0 : i32
    return %c0_i32, %c0_i32_0, %c0_i32_1 : i32, i32, i32
  }
  func.func @transform_4(%arg0: i32) -> (i32, i32, i32) {
    %c0_i32 = arith.constant 0 : i32
    %c0_i32_0 = arith.constant 0 : i32
    %c0_i32_1 = arith.constant 0 : i32
    %c0_i32_2 = arith.constant 0 : i32
    return %c0_i32, %c0_i32_0, %c0_i32_1 : i32, i32, i32
  }
  func.func @transform_5(%arg0: i32) -> (i32, i32) {
    %c0_i32 = arith.constant 0 : i32
    %c0_i32_0 = arith.constant 0 : i32
    %c0_i32_1 = arith.constant 0 : i32
    return %c0_i32, %c0_i32_0 : i32, i32
  }
  func.func @transform_6(%arg0: i32) -> (i32, i32) {
    %c0_i32 = arith.constant 0 : i32
    %c0_i32_0 = arith.constant 0 : i32
    %c0_i32_1 = arith.constant 0 : i32
    return %c0_i32, %c0_i32_0 : i32, i32
  }
  func.func @transform_7(%arg0: i32) -> (i32, i32, i32) {
    %c0_i32 = arith.constant 0 : i32
    %c0_i32_0 = arith.constant 0 : i32
    %c0_i32_1 = arith.constant 0 : i32
    %c0_i32_2 = arith.constant 0 : i32
    return %c0_i32, %c0_i32_0, %c0_i32_1 : i32, i32, i32
  }
  func.func @transform_8(%arg0: i32) -> (i32, i32, i32) {
    %c0_i32 = arith.constant 0 : i32
    %c0_i32_0 = arith.constant 0 : i32
    %c0_i32_1 = arith.constant 0 : i32
    %c0_i32_2 = arith.constant 0 : i32
    return %c0_i32, %c0_i32_0, %c0_i32_1 : i32, i32, i32
  }
  func.func @transform_9(%arg0: i32) -> (i32, i32, i32) {
    %c0_i32 = arith.constant 0 : i32
    %c0_i32_0 = arith.constant 0 : i32
    %c0_i32_1 = arith.constant 0 : i32
    %c0_i32_2 = arith.constant 0 : i32
    return %c0_i32, %c0_i32_0, %c0_i32_1 : i32, i32, i32
  }
  func.func @transform_10(%arg0: i32) -> (i32, i32, i32) {
    %c0_i32 = arith.constant 0 : i32
    %c0_i32_0 = arith.constant 0 : i32
    %c0_i32_1 = arith.constant 0 : i32
    %c0_i32_2 = arith.constant 0 : i32
    return %c0_i32, %c0_i32_0, %c0_i32_1 : i32, i32, i32
  }
  func.func @transform_11(%arg0: i32) -> (i32, i32) {
    %c0_i32 = arith.constant 0 : i32
    %c0_i32_0 = arith.constant 0 : i32
    %c0_i32_1 = arith.constant 0 : i32
    return %c0_i32, %c0_i32_0 : i32, i32
  }
  func.func @transform_12(%arg0: i32) -> (i32, i32) {
    %c0_i32 = arith.constant 0 : i32
    %c0_i32_0 = arith.constant 0 : i32
    %c0_i32_1 = arith.constant 0 : i32
    return %c0_i32, %c0_i32_0 : i32, i32
  }
  func.func @transform_13(%arg0: i32) -> (i32, i32) {
    %c0_i32 = arith.constant 0 : i32
    %c0_i32_0 = arith.constant 0 : i32
    %c0_i32_1 = arith.constant 0 : i32
    return %c0_i32, %c0_i32_0 : i32, i32
  }
}

</mosaic_0001>

<bundles_post_ra>
// kernel: encoder_gru_forward.1
= control target key start
LH: loop header
LB: loop body
LE: loop exit
PB: predicated region body
PF: predicated region fallthrough
CT: control target
= control target key end

     0   :  { %s6118_s25 = smov 0   ;;  %s7290_s0 = inlined_call_operand.vmem [shape: f32[64,4], index: 0, kind: input, shape index: {}]   ;;  %s7291_s1 = inlined_call_operand.vmem [shape: f32[3,4,128], index: 1, kind: input, shape index: {}]   ;;  %s7292_s2 = inlined_call_operand.vmem [shape: f32[3,128,128], index: 2, kind: input, shape index: {}]   ;;  %s7293_s3 = inlined_call_operand.vmem [shape: f32[3,1,128], index: 3, kind: input, shape index: {}]   ;;  %s7294_s4 = inlined_call_operand.vmem [shape: f32[3,1,128], index: 4, kind: input, shape index: {}]   ;;  %s7295_s5 = inlined_call_operand.vmem [shape: f32[1,128], index: 5, kind: input, shape index: {}]   ;;  %s7296_s6 = inlined_call_operand.vmem [shape: f32[1,128], index: 6, kind: input, shape index: {}]   ;;  %s7297_s7 = inlined_call_operand.vmem [shape: f32[3,128,2], index: 7, kind: input, shape index: {}]   ;;  %s7298_s8 = inlined_call_operand.vmem [shape: f32[3,2,2], index: 8, kind: input, shape index: {}]   ;;  %s7299_s9 = inlined_call_operand.vmem [shape: f32[3,1,2], index: 9, kind: input, shape index: {}]   ;;  %s7300_s10 = inlined_call_operand.vmem [shape: f32[3,1,2], index: 10, kind: input, shape index: {}]   ;;  %s7301_s11 = inlined_call_operand.vmem [shape: f32[1,2], index: 11, kind: input, shape index: {}]   ;;  %s7302_s12 = inlined_call_operand.vmem [shape: f32[1,2], index: 12, kind: input, shape index: {}]   ;;  %s7303_s13 = inlined_call_operand.vmem [shape: f32[8,2], index: 13, kind: output, shape index: {}]  }
   0x1 LB: > { %s6124_s26 = sadd.s32 4294967295, %s6042_s25   ;;  %p3793_p0 = scmp.ge.s32.totalorder %s6042_s25, 1  ;;  %s6042_s25 = sphi %s6118_s25, %s23_s25  }
   0x2   : > { %p383_p1 = scmp.lt.s32.totalorder %s6042_s25, 3 }
   0x4   : > { %p384_p2 = pnand %p3793_p0, %p383_p1 }
   0x6   : > { %387 = sbr.rel (%p384_p2) target bundleno = 3159 (0xc57), region = 72 }
   0xd   : > { %s3794_s27 = sshll.u32 %s6124_s26, 2  ;;  %p3796_p4 = scmp.ne.s32.totalorder %s6124_s26, 0 }
   0xe   : > { %p423_p3 = scmp.lt.s32.totalorder %s3794_s27, 7  ;;  %vm433_vm0 = vcmask (!%p3796_p4), 15360   ;;  %v6044_v0 = vmov (!%p3796_p4), 0.0  }
   0xf   : > { %431 = sbr.rel (%p3796_p4) target bundleno = 22 (0x16), region = 76  ;;  %432 = vst [vmem:[#allocation3] sm:$0xff] (!%p3796_p4), %v6044_v0  ;;  %434 = vst.msk [vmem:[#allocation4] sm:$0xff] (!%p3796_p4), %vm433_vm0, %v6044_v0 }
  0x10   : > { %s7415_s27 = smov (!%p423_p3, %s3794_s27), 7 }
  0x11   : > { %s3795_s28 = sshll.u32 %s7415_s27, 3 }
  0x12   : > { %s6132_s14 = scalar_lea.vmem %s7290_s0, %s3795_s28 }
  0x16 PF: > { %v439_v1 = vld [vmem:[%s7291_s1] sm:$0xf]  ;;  %vm460_vm1 = vcmask 1043456   ;;  %v3803_v2 = vld [vmem:[%s7291_s1 + $0x4] sm:$0xf]  ;;  %vm447_vm2 = vcmask 31744  }
  0x17   : > { %v435_v3 = vld [vmem:[%s6132_s14] sm:$0xff]  ;;  %4394 = vmatprep.subr.msk.mxu0 %vm460_vm1, %v439_v1  ;;  %4402 = vmatprep.subr.msk.mxu1 %vm460_vm1, %v3803_v2  ;;  %v436_v4 = vld [vmem:[%s6132_s14 + $0x8] sm:$0xff]  ;;  %v437_v8 = vld [vmem:[%s6132_s14 + $0x10] sm:$0xff]  ;;  %v7306_v12 = vmov 0.0|0.0   ;;  %vm6046_vm3 = vmmov 0   ;;  %v7304_v25 = vmov 0.0  }
  0x18   : > { %v766_v5 = vld [vmem:[%s7292_s2] sm:$0xff]  ;;  %v767_v6 = vld [vmem:[%s7292_s2 + $0x8] sm:$0xff]  ;;  %4395 = vmatpush3.msk.msra.mxu0 %vm460_vm1, %v439_v1  ;;  %4396 = vmatprep.mubr.msk.f32.mxu0 %vm447_vm2, %v435_v3  ;;  %v768_v10 = vld [vmem:[%s7292_s2 + $0x10] sm:$0xff]  ;;  %vm1391_vm4 = vcmask 1041408   ;;  %vm1387_vm5 = vcmask 15360   ;;  %p3942_p5 = scmp.ne.s32.totalorder %s6124_s26, 1 }
  0x19   : > { %v6153_v7 = vpack.c.bf16 %v767_v6, %v766_v5  ;;  %4403 = vmatpush3.msk.msra.mxu1 %vm460_vm1, %v3803_v2  ;;  %4404 = vmatprep.mubr.msk.f32.mxu1 %vm447_vm2, %v435_v3  ;;  %v3811_v9 = vld [vmem:[%s7291_s1 + $0x8] sm:$0xf]  ;;  %v769_v11 = vld [vmem:[%s7292_s2 + $0x18] sm:$0xff]  ;;  %v3820_v15 = vld [vmem:[%s7292_s2 + $0x80] sm:$0xff] }
  0x1a   : > { %4397 = vmatmul.mubr.msk.f32.vlgmr.msra.gmra.mrb[0].mxu0 %vm447_vm2, %v436_v4  ;;  %4405 = vmatmul.mubr.msk.f32.vlgmr.msra.gmra.mrb[0].mxu1 %vm447_vm2, %v436_v4  ;;  %v438_v13 = vld [vmem:[%s6132_s14 + $0x18] sm:$0xff]  ;;  %v6174_v14 = vpack.c.bf16 %v769_v11, %v768_v10  ;;  %v3821_v16 = vld [vmem:[%s7292_s2 + $0x88] sm:$0xff]  ;;  %v770_v17 = vld [vmem:[%s7292_s2 + $0x20] sm:$0xff] }
  0x1b   : > { %7346 = vst [vmem:[#allocation5_spill] sm:$0xff] %v6153_v7  ;;  %5318 = vmatprep.subr.bf16.mxu1 %v7306_v12  ;;  %4399 = vmatprep.mubr.msk.f32.mxu0 %vm447_vm2, %v437_v8  ;;  %v771_v18 = vld [vmem:[%s7292_s2 + $0x28] sm:$0xff]  ;;  %v6193_v19 = vpack.c.bf16 %v3821_v16, %v3820_v15  ;;  %v3822_v21 = vld [vmem:[%s7292_s2 + $0x90] sm:$0xff]  ;;  %v3823_v22 = vld [vmem:[%s7292_s2 + $0x98] sm:$0xff] }
  0x1c   : > { %5320 = vmatpush3.bf16.msra.mxu1 %v6153_v7  ;;  %4410 = vmatprep.subr.msk.mxu0 %vm460_vm1, %v3811_v9  ;;  %7347 = vst [vmem:[#allocation6_spill] sm:$0xff] %v6174_v14  ;;  %v6197_v20 = vpack.c.bf16 %v771_v18, %v770_v17  ;;  %v772_v23 = vld [vmem:[%s7292_s2 + $0x30] sm:$0xff]  ;;  %v773_v24 = vld [vmem:[%s7292_s2 + $0x38] sm:$0xff]  ;;  %v6217_v26 = vpack.c.bf16 %v3823_v22, %v3822_v21  ;;  %v3824_v28 = vld [vmem:[%s7292_s2 + $0xa0] sm:$0xff] }
  0x1d   : > { %5321 = vmatprep.subr.bf16.mxu1 %v7306_v12  ;;  %4411 = vmatpush3.msk.msra.mxu0 %vm460_vm1, %v3811_v9  ;;  %v6222_v27 = vpack.c.bf16 %v773_v24, %v772_v23  ;;  %v3825_v29 = vld [vmem:[%s7292_s2 + $0xa8] sm:$0xff]  ;;  %v774_v30 = vld [vmem:[%s7292_s2 + $0x40] sm:$0xff]  ;;  %v3826_v34 = vld [vmem:[%s7292_s2 + $0xb0] sm:$0xff] }
  0x1e   : > { %4400 = vmatmul.mubr.msk.f32.gmra.mrb[2].mxu0 %vm447_vm2, %v438_v13  ;;  %5342 = vmatprep.subr.bf16.mxu0 %v7306_v12  ;;  %v775_v31 = vld [vmem:[%s7292_s2 + $0x48] sm:$0xff]  ;;  %v6239_v32 = vpack.c.bf16 %v3825_v29, %v3824_v28  ;;  %v3827_v35 = vld [vmem:[%s7292_s2 + $0xb8] sm:$0xff]  ;;  %v776_v36 = vld [vmem:[%s7292_s2 + $0x50] sm:$0xff] }
  0x1f   : > { %4412 = vmatprep.mubr.msk.f32.mxu0 %vm447_vm2, %v435_v3  ;;  %4407 = vmatprep.mubr.msk.f32.mxu1 %vm447_vm2, %v437_v8  ;;  %v6245_v33 = vpack.c.bf16 %v775_v31, %v774_v30  ;;  %v777_v37 = vld [vmem:[%s7292_s2 + $0x58] sm:$0xff]  ;;  %v6261_v38 = vpack.c.bf16 %v3827_v35, %v3826_v34  ;;  %v3828_v40 = vld [vmem:[%s7292_s2 + $0xc0] sm:$0xff]  ;;  %v3829_v41 = vld [vmem:[%s7292_s2 + $0xc8] sm:$0xff] }
  0x20   : > { %5323 = vmatpush3.bf16.msra.mxu1 %v6174_v14  ;;  %v6265_v39 = vpack.c.bf16 %v777_v37, %v776_v36  ;;  %v778_v42 = vld [vmem:[%s7292_s2 + $0x60] sm:$0xff]  ;;  %v779_v43 = vld [vmem:[%s7292_s2 + $0x68] sm:$0xff]  ;;  %v6281_v44 = vpack.c.bf16 %v3829_v41, %v3828_v40  ;;  %v3830_v46 = vld [vmem:[%s7292_s2 + $0xd0] sm:$0xff] }
  0x21   : > { %5324 = vmatprep.subr.bf16.mxu1 %v7306_v12  ;;  %4408 = vmatmul.mubr.msk.f32.gmra.mrb[2].mxu1 %vm447_vm2, %v438_v13  ;;  %v6285_v45 = vpack.c.bf16 %v779_v43, %v778_v42  ;;  %v3831_v47 = vld [vmem:[%s7292_s2 + $0xd8] sm:$0xff]  ;;  %v780_v48 = vld [vmem:[%s7292_s2 + $0x70] sm:$0xff]  ;;  %v3832_v52 = vld [vmem:[%s7292_s2 + $0xe0] sm:$0xff] }
  0x22   : > { %4413 = vmatmul.mubr.msk.f32.vlgmr.msra.gmra.mrb[4].mxu0 %vm447_vm2, %v436_v4  ;;  %4450 = vmatprep.mubr.msk.f32.mxu1 %vm6046_vm3, %v7304_v25  ;;  %v781_v49 = vld [vmem:[%s7292_s2 + $0x78] sm:$0xff]  ;;  %v6301_v50 = vpack.c.bf16 %v3831_v47, %v3830_v46  ;;  %v3833_v53 = vld [vmem:[%s7292_s2 + $0xe8] sm:$0xff]  ;;  %v3838_v54 = vld [vmem:[%s7292_s2 + $0x100] sm:$0xff] }
  0x23   : > { %5344 = vmatpush3.bf16.msra.mxu0 %v6193_v19  ;;  %4415 = vmatprep.mubr.msk.f32.mxu0 %vm447_vm2, %v437_v8  ;;  %v6305_v51 = vpack.c.bf16 %v781_v49, %v780_v48  ;;  %v3839_v55 = vld [vmem:[%s7292_s2 + $0x108] sm:$0xff]  ;;  %v6321_v56 = vpack.c.bf16 %v3833_v53, %v3832_v52  ;;  %v6325_v57 = vld [vmem:[#allocation3] sm:$0xff]  ;;  %v3834_v59 = vld [vmem:[%s7292_s2 + $0xf0] sm:$0xff] }
  0x24   : > { %5326 = vmatpush3.bf16.msra.mxu1 %v6197_v20  ;;  %5345 = vmatprep.subr.bf16.mxu0 %v7306_v12  ;;  %v6327_v58 = vpack.c.bf16 %v3839_v55, %v3838_v54  ;;  %v3835_v60 = vld [vmem:[%s7292_s2 + $0xf8] sm:$0xff]  ;;  %v3840_v61 = vld [vmem:[%s7292_s2 + $0x110] sm:$0xff]  ;;  %v3842_v1 = vld [vmem:[%s7292_s2 + $0x120] sm:$0xff] }
  0x25   : > { %5327 = vmatprep.subr.bf16.mxu1 %v7306_v12  ;;  %v3841_v62 = vld [vmem:[%s7292_s2 + $0x118] sm:$0xff]  ;;  %v6344_v63 = vpack.c.bf16 %v3835_v60, %v3834_v59  ;;  %v3843_v2 = vld [vmem:[%s7292_s2 + $0x128] sm:$0xff]  ;;  %v3844_v4 = vld [vmem:[%s7292_s2 + $0x130] sm:$0xff] }
  0x26   : > { %4416 = vmatmul.mubr.msk.f32.gmra.mrb[6].mxu0 %vm447_vm2, %v438_v13  ;;  %v6348_v0 = vpack.c.bf16 %v3841_v62, %v3840_v61  ;;  %v6361_v3 = vpack.c.bf16 %v3843_v2, %v3842_v1  ;;  %v3845_v5 = vld [vmem:[%s7292_s2 + $0x138] sm:$0xff]  ;;  %v3846_v8 = vld [vmem:[%s7292_s2 + $0x140] sm:$0xff]  ;;  %v3847_v9 = vld [vmem:[%s7292_s2 + $0x148] sm:$0xff] }
  0x27   : > { %5347 = vmatpush3.bf16.msra.mxu0 %v6217_v26  ;;  %4485 = vmatprep.mubr.msk.f32.mxu0 %vm6046_vm3, %v7304_v25  ;;  %v6375_v6 = vpack.c.bf16 %v3845_v5, %v3844_v4  ;;  %v6385_v10 = vpack.c.bf16 %v3847_v9, %v3846_v8  ;;  %v3848_v11 = vld [vmem:[%s7292_s2 + $0x150] sm:$0xff]  ;;  %v3849_v13 = vld [vmem:[%s7292_s2 + $0x158] sm:$0xff]  ;;  %v3850_v16 = vld [vmem:[%s7292_s2 + $0x160] sm:$0xff] }
  0x28   : > { %5329 = vmatpush3.bf16.msra.mxu1 %v6222_v27  ;;  %5348 = vmatprep.subr.bf16.mxu0 %v7306_v12  ;;  %7348 = vst [vmem:[#allocation7_spill] sm:$0xff] %v6348_v0  ;;  %7349 = vst [vmem:[#allocation8_spill] sm:$0xff] %v6361_v3  ;;  %v6395_v15 = vpack.c.bf16 %v3849_v13, %v3848_v11  ;;  %v3851_v17 = vld [vmem:[%s7292_s2 + $0x168] sm:$0xff]  ;;  %v3852_v21 = vld [vmem:[%s7292_s2 + $0x170] sm:$0xff] }
  0x29   : > { %5330 = vmatprep.subr.bf16.mxu1 %v7306_v12  ;;  %7350 = vst [vmem:[#allocation9_spill] sm:$0xff] %v6375_v6  ;;  %7351 = vst [vmem:[#allocation10_spill] sm:$0xff] %v6385_v10  ;;  %v6405_v18 = vpack.c.bf16 %v3851_v17, %v3850_v16  ;;  %v3853_v22 = vld [vmem:[%s7292_s2 + $0x178] sm:$0xff]  ;;  %v3805_v24 = vld [vmem:[%s7293_s3 + $0x1] ss:$0 sm:$0xff] }
  0x2a   : > { %7352 = vst [vmem:[#allocation11_spill] sm:$0xff] %v6395_v15  ;;  %v6415_v23 = vpack.c.bf16 %v3853_v22, %v3852_v21  ;;  %v3797_v28 = vld [vmem:[%s7293_s3] ss:$0 sm:$0xff]  ;;  %v3813_v43 = vld [vmem:[%s7293_s3 + $0x2] ss:$0 sm:$0xff] }
  0x2b   : > { %5350 = vmatpush3.bf16.msra.mxu0 %v6239_v32  ;;  %7353 = vst [vmem:[#allocation12_spill] sm:$0xff] %v6405_v18  ;;  %v6453_v62 = vld [vmem:[%s7294_s4] ss:$0 sm:$0xff]  ;;  %v6459_v11 = vld [vmem:[%s7294_s4 + $0x1] ss:$0 sm:$0xff] }
  0x2c   : > { %5332 = vmatpush3.bf16.msra.mxu1 %v6245_v33  ;;  %5351 = vmatprep.subr.bf16.mxu0 %v7306_v12  ;;  %7354 = vst [vmem:[#allocation13_spill] sm:$0xff] %v6415_v23 }
  0x2d   : > { %5333 = vmatprep.subr.bf16.mxu1 %v7306_v12 }
  0x2f   : > { %5353 = vmatpush3.bf16.msra.mxu0 %v6261_v38 }
  0x30   : > { %5335 = vmatpush3.bf16.msra.mxu1 %v6265_v39  ;;  %5354 = vmatprep.subr.bf16.mxu0 %v7306_v12 }
  0x31   : > { %5336 = vmatprep.subr.bf16.mxu1 %v7306_v12 }
  0x33   : > { %5356 = vmatpush3.bf16.msra.mxu0 %v6281_v44 }
  0x34   : > { %5338 = vmatpush3.bf16.msra.mxu1 %v6285_v45  ;;  %5357 = vmatprep.subr.bf16.mxu0 %v7306_v12 }
  0x35   : > { %5339 = vmatprep.subr.bf16.mxu1 %v7306_v12 }
  0x37   : > { %5359 = vmatpush3.bf16.msra.mxu0 %v6301_v50 }
  0x38   : > { %5341 = vmatpush3.bf16.msra.mxu1 %v6305_v51  ;;  %5360 = vmatprep.subr.bf16.mxu0 %v7306_v12 }
  0x39   : > { %5366 = vmatprep.subr.bf16.mxu1 %v7306_v12 }
  0x3b   : > { %4451 = vmatmul.mubr.f32.vlgmr.msra.gmra.mrb[4].mxu1 %v6325_v57  ;;  %5362 = vmatpush3.bf16.msra.mxu0 %v6321_v56 }
  0x3c   : > { %5368 = vmatpush3.bf16.msra.mxu1 %v6327_v58  ;;  %5363 = vmatprep.subr.bf16.mxu0 %v7306_v12 }
  0x3d   : > { %5369 = vmatprep.subr.bf16.mxu1 %v7306_v12  ;;  %4520 = vmatprep.mubr.msk.f32.mxu1 %vm6046_vm3, %v7304_v25 }
  0x3f   : > { %5365 = vmatpush3.bf16.msra.mxu0 %v6344_v63 }
  0x40   : > { %5371 = vmatpush3.bf16.msra.mxu1 %v6348_v0  ;;  %5390 = vmatprep.subr.bf16.mxu0 %v7306_v12 }
  0x41   : > { %5372 = vmatprep.subr.bf16.mxu1 %v7306_v12 }
  0x42   : > { %4486 = vmatmul.mubr.f32.vlgmr.msra.gmra.mrb[8].mxu0 %v6325_v57 }
  0x43   : > { %4555 = vmatprep.mubr.msk.f32.mxu0 %vm6046_vm3, %v7304_v25 }
  0x44   : > { %5374 = vmatpush3.bf16.msra.mxu1 %v6361_v3 }
  0x45   : > { %5375 = vmatprep.subr.bf16.mxu1 %v7306_v12 }
  0x48   : > { %5377 = vmatpush3.bf16.msra.mxu1 %v6375_v6 }
  0x49   : > { %5378 = vmatprep.subr.bf16.mxu1 %v7306_v12 }
  0x4c   : > { %5380 = vmatpush3.bf16.msra.mxu1 %v6385_v10 }
  0x4d   : > { %5381 = vmatprep.subr.bf16.mxu1 %v7306_v12 }
  0x50   : > { %5383 = vmatpush3.bf16.msra.mxu1 %v6395_v15 }
  0x51   : > { %5384 = vmatprep.subr.bf16.mxu1 %v7306_v12 }
  0x54   : > { %5386 = vmatpush3.bf16.msra.mxu1 %v6405_v18 }
  0x55   : > { %5387 = vmatprep.subr.bf16.mxu1 %v7306_v12 }
  0x58   : > { %5389 = vmatpush3.bf16.msra.mxu1 %v6415_v23 }
  0x59   : > { %5414 = vmatprep.subr.bf16.mxu1 %v7306_v12 }
  0x5b   : > { %4521 = vmatmul.mubr.f32.vlgmr.msra.gmra.mrb[6].mxu1 %v6325_v57 }
  0x5c   : > { %4590 = vmatprep.mubr.msk.f32.mxu1 %vm6046_vm3, %v7304_v25 }
  0xed   : > { %v4406_v29 = vpop.f32.mrb[0].mxu1  ;;  %v4398_v30 = vpop.f32.mrb[0].mxu0 }
  0xee   : > { %v6429_v31 = vadd.f32 %v4406_v29, %v3805_v24  ;;  %v632_v34 = vpop.f32.mrb[1].mxu1  ;;  %v6431_v35 = vadd.f32 %v4398_v30, %v3797_v28  ;;  %v530_v36 = vpop.f32.mrb[1].mxu0 }
  0xef   : > { %v531_v2 = vadd.f32 %v3797_v28, %v530_v36  ;;  %v633_v16 = vadd.f32 %v3805_v24, %v632_v34 }
  0xf1   : > { %v4401_v37 = vpop.f32.mrb[2].mxu0 }
  0xf2   : > { %v6433_v40 = vadd.f32 %v4401_v37, %v3797_v28  ;;  %v540_v41 = vpop.f32.mrb[3].mxu0  ;;  %v6465_v37 = vld [vmem:[%s7294_s4 + $0x2] ss:$0 sm:$0xff] }
  0xf3   : > { %v6435_v42 = vadd.f32 %v3797_v28, %v540_v41 }
  0xf4   : > { %7355 = vst [vmem:[#allocation14_spill] sm:$0xff] %v6433_v40  ;;  %v4409_v46 = vpop.f32.mrb[2].mxu1  ;;  %v6694_v40 = vld [vmem:[%s7298_s8 + $0x4] sm:$0x3] }
  0xf5   : > { %7356 = vst [vmem:[#allocation15_spill] sm:$0xff] %v6435_v42  ;;  %v4414_v47 = vpop.f32.mrb[4].mxu0  ;;  %v6440_v48 = vadd.f32 %v4409_v46, %v3805_v24  ;;  %v642_v49 = vpop.f32.mrb[3].mxu1  ;;  %v3888_v42 = vld [vmem:[%s7297_s7 + $0x148] sm:$0xff] }
  0xf6   : > { %v6442_v52 = vadd.f32 %v4414_v47, %v3813_v43  ;;  %v735_v53 = vpop.f32.mrb[5].mxu0  ;;  %v6444_v54 = vadd.f32 %v3805_v24, %v642_v49 }
  0xf7   : > { %7357 = vst [vmem:[#allocation16_spill] sm:$0xff] %v6440_v48  ;;  %v736_v49 = vadd.f32 %v3813_v43, %v735_v53  ;;  %v3861_v53 = vld [vmem:[%s7297_s7 + $0x80] sm:$0xff]  ;;  %v3885_v48 = vld [vmem:[%s7297_s7 + $0x130] sm:$0xff] }
  0xf8   : > { %7358 = vst [vmem:[#allocation17_spill] sm:$0xff] %v6444_v54  ;;  %v3890_v54 = vld [vmem:[%s7297_s7 + $0x158] sm:$0xff] }
  0xf9   : > { %v4417_v55 = vpop.f32.mrb[6].mxu0 }
  0xfa   : > { %v6446_v59 = vadd.f32 %v4417_v55, %v3813_v43  ;;  %v745_v60 = vpop.f32.mrb[7].mxu0 }
  0xfb   : > { %v6448_v61 = vadd.f32 %v3813_v43, %v745_v60  ;;  %v1097_v43 = vld [vmem:[%s7297_s7 + $0x8] sm:$0xff] }
  0xfc   : > { %7359 = vst [vmem:[#allocation18_spill] sm:$0xff] %v6446_v59  ;;  %v3884_v59 = vld [vmem:[%s7297_s7 + $0x128] sm:$0xff] }
  0xfd   : > { %7360 = vst [vmem:[#allocation19_spill] sm:$0xff] %v6448_v61  ;;  %v3886_v61 = vld [vmem:[%s7297_s7 + $0x138] sm:$0xff] }
 0x10e   : > { %v855_v1 = vpop.f32.mrb[4].mxu1 }
 0x10f   : > { %v856_v4 = vadd.f32 %v6453_v62, %v855_v1  ;;  %v4452_v5 = vpop.f32.mrb[5].mxu1 }
 0x111   : > { %v1049_v8 = vadd.f32 %v856_v4, %v531_v2 }
 0x113   : > { %v3856_v9 = vmul.f32 -1.442695, %v1049_v8 }
 0x115   : > { %5938 = vpow2.f32 %v3856_v9  ;;  %v950_v13 = vpop.f32.mrb[8].mxu0 }
 0x116   : > { %v951_v17 = vadd.f32 %v6459_v11, %v950_v13  ;;  %v4487_v21 = vpop.f32.mrb[9].mxu0  ;;  %v1096_v13 = vld [vmem:[%s7297_s7] sm:$0xff] }
 0x117   : > { %v1099_v21 = vld [vmem:[%s7297_s7 + $0x18] sm:$0xff] }
 0x118   : > { %v1056_v22 = vadd.f32 %v951_v17, %v633_v16  ;;  %v6481_v16 = vpack.c.bf16 %v1097_v43, %v1096_v13  ;;  %v1098_v17 = vld [vmem:[%s7297_s7 + $0x10] sm:$0xff]  ;;  %v3868_v43 = vld [vmem:[%s7297_s7 + $0xb8] sm:$0xff] }
 0x119   : > { %v3867_v13 = vld [vmem:[%s7297_s7 + $0xb0] sm:$0xff] }
 0x11a   : > { %v3857_v29 = vmul.f32 -1.442695, %v1056_v22  ;;  %5392 = vmatpush3.bf16.msra.mxu0 %v6481_v16 }
 0x11b   : > { %5393 = vmatprep.subr.bf16.mxu0 %v7306_v12 }
 0x11c   : > { %5940 = vpow2.f32 %v3857_v29  ;;  %v3863_v29 = vld [vmem:[%s7297_s7 + $0x90] sm:$0xff] }
 0x11f   : > { %v5939_v30 = vpop.eup %5938 }
 0x120   : > { %v1053_v28 = vadd.f32 1.0, %v5939_v30  ;;  %v3864_v30 = vld [vmem:[%s7297_s7 + $0x98] sm:$0xff] }
 0x122   : > { %5942 = vrcp.f32 %v1053_v28  ;;  %v6501_v28 = vpack.c.bf16 %v1099_v21, %v1098_v17  ;;  %v1105_v17 = vld [vmem:[%s7297_s7 + $0x48] sm:$0xff] }
 0x124   : > { %5395 = vmatpush3.bf16.msra.mxu0 %v6501_v28 }
 0x125   : > { %5396 = vmatprep.subr.bf16.mxu0 %v7306_v12 }
 0x126   : > { %v5941_v36 = vpop.eup %5940 }
 0x127   : > { %v1060_v41 = vadd.f32 1.0, %v5941_v36  ;;  %v6505_v36 = vpack.c.bf16 %v3864_v30, %v3863_v29  ;;  %v3869_v29 = vld [vmem:[%s7297_s7 + $0xc0] sm:$0xff]  ;;  %v3870_v30 = vld [vmem:[%s7297_s7 + $0xc8] sm:$0xff] }
 0x129   : > { %5944 = vrcp.f32 %v1060_v41  ;;  %7362 = vst [vmem:[#allocation21_spill] sm:$0xff] %v6505_v36  ;;  %v1100_v41 = vld [vmem:[%s7297_s7 + $0x20] sm:$0xff] }
 0x12c   : > { %v5943_v34 = vpop.eup %5942 }
 0x12e   : > { %v1045_v46 = vpop.f32.mrb[6].mxu1 }
 0x12f   : > { %v1046_v47 = vadd.f32 %v6465_v37, %v1045_v46  ;;  %v4522_v24 = vpop.f32.mrb[7].mxu1  ;;  %v1101_v46 = vld [vmem:[%s7297_s7 + $0x28] sm:$0xff] }
 0x130   : > { %v3866_v24 = vld [vmem:[%s7297_s7 + $0xa8] sm:$0xff] }
 0x131   : > { %v1063_v55 = vmul.f32 %v5943_v34, %v1046_v47  ;;  %v3865_v47 = vld [vmem:[%s7297_s7 + $0xa0] sm:$0xff]  ;;  %v6521_v34 = vpack.c.bf16 %v1101_v46, %v1100_v41  ;;  %v6567_v41 = vpack.c.bf16 %v3870_v30, %v3869_v29  ;;  %v1106_v46 = vld [vmem:[%s7297_s7 + $0x50] sm:$0xff]  ;;  %v1111_v30 = vld [vmem:[%s7297_s7 + $0x78] sm:$0xff] }
 0x132   : > { %v1110_v29 = vld [vmem:[%s7297_s7 + $0x70] sm:$0xff] }
 0x133   : > { %v1064_v60 = vadd.f32 %v1063_v55, %v736_v49  ;;  %v5945_v1 = vpop.eup %5944  ;;  %v6525_v49 = vpack.c.bf16 %v3866_v24, %v3865_v47  ;;  %5398 = vmatpush3.bf16.msra.mxu0 %v6521_v34  ;;  %7365 = vst [vmem:[#allocation24_spill] sm:$0xff] %v6567_v41  ;;  %v1107_v47 = vld [vmem:[%s7297_s7 + $0x58] sm:$0xff]  ;;  %v3871_v24 = vld [vmem:[%s7297_s7 + $0xd0] sm:$0xff] }
 0x134   : > { %v1066_v2 = vsub.f32 1.0, %v5945_v1  ;;  %v1068_v5 = vmul.f32 %v5945_v1, %v6325_v57  ;;  %v3862_v57 = vld [vmem:[%s7297_s7 + $0x88] sm:$0xff]  ;;  %5399 = vmatprep.subr.bf16.mxu0 %v7306_v12 }
 0x135   : > { %5946 = vtanh.f32 %v1064_v60  ;;  %v6492_v22 = vpack.c.bf16 %v3862_v57, %v3861_v53  ;;  %7363 = vst [vmem:[#allocation22_spill] sm:$0xff] %v6525_v49  ;;  %v6547_v53 = vpack.c.bf16 %v3868_v43, %v3867_v13  ;;  %v1104_v57 = vld [vmem:[%s7297_s7 + $0x40] sm:$0xff]  ;;  %v3874_v43 = vld [vmem:[%s7297_s7 + $0xe8] sm:$0xff] }
 0x136   : > { %v6558_v21 = vpack.c.bf16 %v1105_v17, %v1104_v57  ;;  %v3873_v13 = vld [vmem:[%s7297_s7 + $0xe0] sm:$0xff] }
 0x137   : > { %7361 = vst [vmem:[#allocation20_spill] sm:$0xff] %v6492_v22  ;;  %5416 = vmatpush3.bf16.msra.mxu1 %v6492_v22  ;;  %7364 = vst [vmem:[#allocation23_spill] sm:$0xff] %v6547_v53  ;;  %v6606_v17 = vpack.c.bf16 %v3874_v43, %v3873_v13 }
 0x138   : > { %5417 = vmatprep.subr.bf16.mxu1 %v7306_v12 }
 0x139   : > { %7367 = vst [vmem:[#allocation26_spill] sm:$0xff] %v6606_v17 }
 0x13b   : > { %5419 = vmatpush3.bf16.msra.mxu1 %v6505_v36 }
 0x13c   : > { %5420 = vmatprep.subr.bf16.mxu1 %v7306_v12 }
 0x13f   : > { %v5947_v4 = vpop.eup %5946  ;;  %5422 = vmatpush3.bf16.msra.mxu1 %v6525_v49 }
 0x140   : > { %v1067_v8 = vmul.f32 %v5947_v4, %v1066_v2  ;;  %5423 = vmatprep.subr.bf16.mxu1 %v7306_v12  ;;  %v1102_v4 = vld [vmem:[%s7297_s7 + $0x30] sm:$0xff] }
 0x142   : > { %v6469_v9 = vadd.f32 %v1068_v5, %v1067_v8  ;;  %v1103_v5 = vld [vmem:[%s7297_s7 + $0x38] sm:$0xff] }
 0x143   : > { %v6539_v8 = vpack.c.bf16 %v1103_v5, %v1102_v4  ;;  %5425 = vmatpush3.bf16.msra.mxu1 %v6547_v53  ;;  %v1108_v4 = vld [vmem:[%s7297_s7 + $0x60] sm:$0xff]  ;;  %v1109_v5 = vld [vmem:[%s7297_s7 + $0x68] sm:$0xff] }
 0x144   : > { %1070 = vadd.xlane.f32.xlu0 %v6469_v9  ;;  %5426 = vmatprep.subr.bf16.mxu1 %v7306_v12  ;;  %v6602_v57 = vpack.c.bf16 %v1109_v5, %v1108_v4 }
 0x145   : > { %5401 = vmatpush3.bf16.msra.mxu0 %v6539_v8 }
 0x146   : > { %5402 = vmatprep.subr.bf16.mxu0 %v7306_v12 }
 0x147   : > { %5428 = vmatpush3.bf16.msra.mxu1 %v6567_v41 }
 0x148   : > { %5429 = vmatprep.subr.bf16.mxu1 %v7306_v12 }
 0x149   : > { %5404 = vmatpush3.bf16.msra.mxu0 %v6558_v21 }
 0x14a   : > { %5405 = vmatprep.subr.bf16.mxu0 %v7306_v12 }
 0x1d1   : > { %v1071_v55 = vpop.xlane.xlu0 %1070 }
 0x1d2   : > { %v1073_v60 = vmul.f32 0.0078125, %v1071_v55  ;;  %v6579_v55 = vpack.c.bf16 %v1107_v47, %v1106_v46  ;;  %v3875_v46 = vld [vmem:[%s7297_s7 + $0xf0] sm:$0xff]  ;;  %v3876_v47 = vld [vmem:[%s7297_s7 + $0xf8] sm:$0xff] }
 0x1d4   : > { %v1074_v1 = vsub.f32 %v6469_v9, %v1073_v60  ;;  %v3872_v60 = vld [vmem:[%s7297_s7 + $0xd8] sm:$0xff]  ;;  %5407 = vmatpush3.bf16.msra.mxu0 %v6579_v55 }
 0x1d5   : > { %5408 = vmatprep.subr.bf16.mxu0 %v7306_v12 }
 0x1d6   : > { %v1075_v2 = vmul.f32 %v1074_v1, %v1074_v1 }
 0x1d8   : > { %1076 = vadd.xlane.f32.xlu0 %v1075_v2  ;;  %v6586_v2 = vpack.c.bf16 %v3872_v60, %v3871_v24  ;;  %5410 = vmatpush3.bf16.msra.mxu0 %v6602_v57  ;;  %v6622_v24 = vpack.c.bf16 %v1111_v30, %v1110_v29  ;;  %v6626_v60 = vpack.c.bf16 %v3876_v47, %v3875_v46  ;;  %v6636_v29 = vld [vmem:[%s7295_s5] ss:$0 sm:$0xff]  ;;  %v3880_v47 = vld [vmem:[%s7297_s7 + $0x108] sm:$0xff] }
 0x1d9   : > { %5411 = vmatprep.subr.bf16.mxu0 %v7306_v12  ;;  %v3879_v46 = vld [vmem:[%s7297_s7 + $0x100] sm:$0xff] }
 0x1da   : > { %7366 = vst [vmem:[#allocation25_spill] sm:$0xff] %v6586_v2  ;;  %5431 = vmatpush3.bf16.msra.mxu1 %v6586_v2  ;;  %7368 = vst [vmem:[#allocation27_spill] sm:$0xff] %v6622_v24 }
 0x1db   : > { %5432 = vmatprep.subr.bf16.mxu1 %v7306_v12  ;;  %7369 = vst [vmem:[#allocation28_spill] sm:$0xff] %v6626_v60 }
 0x1dc   : > { %5413 = vmatpush3.bf16.msra.mxu0 %v6622_v24 }
 0x1dd   : > { %5438 = vmatprep.subr.bf16.mxu0 %v7306_v12 }
 0x1de   : > { %5434 = vmatpush3.bf16.msra.mxu1 %v6606_v17 }
 0x1df   : > { %5435 = vmatprep.subr.bf16.mxu1 %v7306_v12  ;;  %v6664_v12 = vld [vmem:[%s7298_s8 + $0x2] sm:$0x3] }
 0x1e2   : > { %5437 = vmatpush3.bf16.msra.mxu1 %v6626_v60 }
 0x1e3   : > { %4633 = vmatprep.subr.mxu1 %v7304_v25 }
 0x265   : > { %v1077_v4 = vpop.xlane.xlu0 %1076 }
 0x266   : > { %v1078_v5 = vmul.f32 0.0078125, %v1077_v4  ;;  %v6647_v4 = vld [vmem:[%s7296_s6] ss:$0 sm:$0xff] }
 0x268   : > { %v1079_v13 = vadd.f32 1e-05, %v1078_v5 }
 0x26a   : > { %5948 = vrsqrt.f32 %v1079_v13  ;;  %v6650_v13 = vpack.c.bf16 %v3880_v47, %v3879_v46  ;;  %v7370_v46 = vmov 0.0|0.0   ;;  %v7371_v47 = vmov 0.0  }
 0x274   : > { %v5949_v43 = vpop.eup %5948 }
 0x275   : > { %v1081_v30 = vmul.f32 %v5949_v43, %v1074_v1  ;;  %v3881_v1 = vld [vmem:[%s7297_s7 + $0x110] sm:$0xff]  ;;  %v3882_v43 = vld [vmem:[%s7297_s7 + $0x118] sm:$0xff] }
 0x277   : > { %v1088_v5 = vmul.f32 %v6636_v29, %v1081_v30  ;;  %v6669_v30 = vpack.c.bf16 %v3882_v43, %v3881_v1  ;;  %v6688_v43 = vld [vmem:[#allocation4] sm:$0xff] }
 0x279   : > { %v6653_v25 = vadd.f32 %v6647_v4, %v1088_v5  ;;  %v3883_v5 = vld [vmem:[%s7297_s7 + $0x120] sm:$0xff] }
 0x27a   : > { %v6686_v1 = vpack.c.bf16 %v3884_v59, %v3883_v5  ;;  %v6707_v59 = vpack.c.bf16 %v3886_v61, %v3885_v48  ;;  %v3887_v5 = vld [vmem:[%s7297_s7 + $0x140] sm:$0xff]  ;;  %v3889_v61 = vld [vmem:[%s7297_s7 + $0x150] sm:$0xff] }
 0x27b   : > { %4556 = vmatmul.mubr.f32.vlgmr.msra.gmra.mrb[10].mxu0 %v6653_v25  ;;  %4591 = vmatmul.mubr.f32.vlgmr.msra.gmra.mrb[8].mxu1 %v6653_v25  ;;  %v6723_v48 = vpack.c.bf16 %v3888_v42, %v3887_v5  ;;  %v6737_v42 = vpack.c.bf16 %v3890_v54, %v3889_v61  ;;  %v3891_v5 = vld [vmem:[%s7297_s7 + $0x160] sm:$0xff]  ;;  %v3893_v54 = vld [vmem:[%s7297_s7 + $0x170] sm:$0xff]  ;;  %v3894_v61 = vld [vmem:[%s7297_s7 + $0x178] sm:$0xff] }
 0x27c   : > { %5440 = vmatpush3.bf16.msra.mxu0 %v6650_v13  ;;  %4634 = vmatpush3.msk.msra.mxu1 %vm1391_vm4, %v6664_v12 }
 0x27d   : > { %5441 = vmatprep.subr.bf16.mxu0 %v7370_v46  ;;  %4635 = vmatprep.mubr.msk.f32.mxu1 %vm6046_vm3, %v7371_v47  ;;  %7372 = vst [vmem:[#allocation29_spill] sm:$0xff] %v6723_v48 }
 0x27e   : > { %4638 = vmatprep.subr.mxu1 %v7371_v47  ;;  %4625 = vmatprep.mubr.msk.f32.mxu0 %vm6046_vm3, %v7371_v47 }
 0x280   : > { %5443 = vmatpush3.bf16.msra.mxu0 %v6669_v30 }
 0x281   : > { %5444 = vmatprep.subr.bf16.mxu0 %v7370_v46 }
 0x283   : > { %4636 = vmatmul.mubr.msk.f32.vlgmr.msra.gmra.mrb[8].mxu1 %vm1387_vm5, %v6688_v43 }
 0x284   : > { %5446 = vmatpush3.bf16.msra.mxu0 %v6686_v1  ;;  %4639 = vmatpush3.msk.msra.mxu1 %vm1391_vm4, %v6694_v40 }
 0x285   : > { %5447 = vmatprep.subr.bf16.mxu0 %v7370_v46  ;;  %4640 = vmatprep.mubr.msk.f32.mxu1 %vm6046_vm3, %v7371_v47 }
 0x286   : > { %5462 = vmatprep.subr.bf16.mxu1 %v7370_v46 }
 0x287   : > { %4641 = vmatmul.mubr.msk.f32.vlgmr.msra.gmra.mrb[10].mxu1 %vm1387_vm5, %v6688_v43 }
 0x288   : > { %5449 = vmatpush3.bf16.msra.mxu0 %v6707_v59  ;;  %5464 = vmatpush3.bf16.msra.mxu1 %v6153_v7  ;;  %v3892_v7 = vld [vmem:[%s7297_s7 + $0x168] sm:$0xff] }
 0x289   : > { %5450 = vmatprep.subr.bf16.mxu0 %v7370_v46  ;;  %5465 = vmatprep.subr.bf16.mxu1 %v7370_v46 }
 0x28a   : > { %4675 = vmatprep.mubr.msk.f32.mxu1 %vm6046_vm3, %v7371_v47 }
 0x28c   : > { %5452 = vmatpush3.bf16.msra.mxu0 %v6723_v48  ;;  %5467 = vmatpush3.bf16.msra.mxu1 %v6174_v14  ;;  %v6749_v48 = vpack.c.bf16 %v3892_v7, %v3891_v5  ;;  %v6761_v14 = vpack.c.bf16 %v3894_v61, %v3893_v54  ;;  %v6772_v7 = vld [vmem:[%s7298_s8] sm:$0x3] }
 0x28d   : > { %5453 = vmatprep.subr.bf16.mxu0 %v7370_v46  ;;  %5468 = vmatprep.subr.bf16.mxu1 %v7370_v46 }
 0x290   : > { %5455 = vmatpush3.bf16.msra.mxu0 %v6737_v42  ;;  %5470 = vmatpush3.bf16.msra.mxu1 %v6197_v20 }
 0x291   : > { %5456 = vmatprep.subr.bf16.mxu0 %v7370_v46  ;;  %5471 = vmatprep.subr.bf16.mxu1 %v7370_v46 }
 0x294   : > { %5458 = vmatpush3.bf16.msra.mxu0 %v6749_v48  ;;  %5473 = vmatpush3.bf16.msra.mxu1 %v6222_v27 }
 0x295   : > { %5459 = vmatprep.subr.bf16.mxu0 %v7370_v46  ;;  %5474 = vmatprep.subr.bf16.mxu1 %v7370_v46 }
 0x298   : > { %5461 = vmatpush3.bf16.msra.mxu0 %v6761_v14  ;;  %5476 = vmatpush3.bf16.msra.mxu1 %v6245_v33 }
 0x299   : > { %4628 = vmatprep.subr.mxu0 %v7371_v47  ;;  %5477 = vmatprep.subr.bf16.mxu1 %v7370_v46 }
 0x29b   : > { %4626 = vmatmul.mubr.f32.vlgmr.msra.gmra.mrb[12].mxu0 %v6653_v25 }
 0x29c   : > { %4629 = vmatpush3.msk.msra.mxu0 %vm1391_vm4, %v6772_v7  ;;  %5479 = vmatpush3.bf16.msra.mxu1 %v6265_v39 }
 0x29d   : > { %4630 = vmatprep.mubr.msk.f32.mxu0 %vm6046_vm3, %v7371_v47  ;;  %5486 = vmatprep.subr.bf16.mxu0 %v7370_v46 }
 0x29e   : > { %5480 = vmatprep.subr.bf16.mxu1 %v7370_v46 }
 0x29f   : > { %4631 = vmatmul.mubr.msk.f32.vlgmr.msra.gmra.mrb[10].mxu0 %vm1387_vm5, %v6688_v43 }
 0x2a0   : > { %5488 = vmatpush3.bf16.msra.mxu0 %v6193_v19  ;;  %5482 = vmatpush3.bf16.msra.mxu1 %v6285_v45 }
 0x2a1   : > { %5489 = vmatprep.subr.bf16.mxu0 %v7370_v46  ;;  %5483 = vmatprep.subr.bf16.mxu1 %v7370_v46 }
 0x2a2   : > { %4710 = vmatprep.mubr.msk.f32.mxu0 %vm6046_vm3, %v7371_v47 }
 0x2a4   : > { %5491 = vmatpush3.bf16.msra.mxu0 %v6217_v26  ;;  %5485 = vmatpush3.bf16.msra.mxu1 %v6305_v51 }
 0x2a5   : > { %5492 = vmatprep.subr.bf16.mxu0 %v7370_v46  ;;  %5510 = vmatprep.subr.bf16.mxu1 %v7370_v46 }
 0x2a7   : > { %4676 = vmatmul.mubr.f32.vlgmr.msra.gmra.mrb[12].mxu1 %v6469_v9 }
 0x2a8   : > { %5494 = vmatpush3.bf16.msra.mxu0 %v6239_v32  ;;  %5512 = vmatpush3.bf16.msra.mxu1 %v6327_v58 }
 0x2a9   : > { %5495 = vmatprep.subr.bf16.mxu0 %v7370_v46  ;;  %5513 = vmatprep.subr.bf16.mxu1 %v7370_v46 }
 0x2aa   : > { %4745 = vmatprep.mubr.msk.f32.mxu1 %vm6046_vm3, %v7371_v47 }
 0x2ac   : > { %5497 = vmatpush3.bf16.msra.mxu0 %v6261_v38  ;;  %5515 = vmatpush3.bf16.msra.mxu1 %v6348_v0 }
 0x2ad   : > { %5498 = vmatprep.subr.bf16.mxu0 %v7370_v46  ;;  %5516 = vmatprep.subr.bf16.mxu1 %v7370_v46 }
 0x2b0   : > { %5500 = vmatpush3.bf16.msra.mxu0 %v6281_v44  ;;  %5518 = vmatpush3.bf16.msra.mxu1 %v6361_v3 }
 0x2b1   : > { %5501 = vmatprep.subr.bf16.mxu0 %v7370_v46  ;;  %5519 = vmatprep.subr.bf16.mxu1 %v7370_v46 }
 0x2b4   : > { %5503 = vmatpush3.bf16.msra.mxu0 %v6301_v50  ;;  %5521 = vmatpush3.bf16.msra.mxu1 %v6375_v6 }
 0x2b5   : > { %5504 = vmatprep.subr.bf16.mxu0 %v7370_v46  ;;  %5522 = vmatprep.subr.bf16.mxu1 %v7370_v46 }
 0x2b8   : > { %5506 = vmatpush3.bf16.msra.mxu0 %v6321_v56  ;;  %5524 = vmatpush3.bf16.msra.mxu1 %v6385_v10 }
 0x2b9   : > { %5507 = vmatprep.subr.bf16.mxu0 %v7370_v46  ;;  %5525 = vmatprep.subr.bf16.mxu1 %v7370_v46 }
 0x2bc   : > { %5509 = vmatpush3.bf16.msra.mxu0 %v6344_v63  ;;  %5527 = vmatpush3.bf16.msra.mxu1 %v6395_v15 }
 0x2bd   : > { %5528 = vmatprep.subr.bf16.mxu1 %v7370_v46  ;;  %5534 = vmatprep.subr.bf16.mxu0 %v7370_v46 }
 0x2bf   : > { %4711 = vmatmul.mubr.f32.vlgmr.msra.gmra.mrb[14].mxu0 %v6469_v9 }
 0x2c0   : > { %5530 = vmatpush3.bf16.msra.mxu1 %v6405_v18  ;;  %5536 = vmatpush3.bf16.msra.mxu0 %v6481_v16 }
 0x2c1   : > { %5531 = vmatprep.subr.bf16.mxu1 %v7370_v46  ;;  %5537 = vmatprep.subr.bf16.mxu0 %v7370_v46 }
 0x2c2   : > { %4780 = vmatprep.mubr.msk.f32.mxu0 %vm6046_vm3, %v7371_v47 }
 0x2c4   : > { %5533 = vmatpush3.bf16.msra.mxu1 %v6415_v23  ;;  %5539 = vmatpush3.bf16.msra.mxu0 %v6501_v28 }
 0x2c5   : > { %5558 = vmatprep.subr.bf16.mxu1 %v7370_v46  ;;  %5540 = vmatprep.subr.bf16.mxu0 %v7370_v46 }
 0x2c7   : > { %4746 = vmatmul.mubr.f32.vlgmr.msra.gmra.mrb[14].mxu1 %v6469_v9 }
 0x2c8   : > { %5560 = vmatpush3.bf16.msra.mxu1 %v6492_v22  ;;  %5542 = vmatpush3.bf16.msra.mxu0 %v6521_v34 }
 0x2c9   : > { %5561 = vmatprep.subr.bf16.mxu1 %v7370_v46  ;;  %5543 = vmatprep.subr.bf16.mxu0 %v7370_v46 }
 0x2ca   : > { %4815 = vmatprep.mubr.msk.f32.mxu1 %vm6046_vm3, %v7371_v47 }
 0x2cc   : > { %5563 = vmatpush3.bf16.msra.mxu1 %v6505_v36  ;;  %5545 = vmatpush3.bf16.msra.mxu0 %v6539_v8 }
 0x2cd   : > { %5564 = vmatprep.subr.bf16.mxu1 %v7370_v46  ;;  %5546 = vmatprep.subr.bf16.mxu0 %v7370_v46 }
 0x2d0   : > { %5566 = vmatpush3.bf16.msra.mxu1 %v6525_v49  ;;  %5548 = vmatpush3.bf16.msra.mxu0 %v6558_v21 }
 0x2d1   : > { %5567 = vmatprep.subr.bf16.mxu1 %v7370_v46  ;;  %5549 = vmatprep.subr.bf16.mxu0 %v7370_v46 }
 0x2d4   : > { %5569 = vmatpush3.bf16.msra.mxu1 %v6547_v53  ;;  %5551 = vmatpush3.bf16.msra.mxu0 %v6579_v55 }
 0x2d5   : > { %5570 = vmatprep.subr.bf16.mxu1 %v7370_v46  ;;  %5552 = vmatprep.subr.bf16.mxu0 %v7370_v46 }
 0x2d8   : > { %5572 = vmatpush3.bf16.msra.mxu1 %v6567_v41  ;;  %5554 = vmatpush3.bf16.msra.mxu0 %v6602_v57  ;;  %v3897_v41 = vld [vmem:[%s7300_s10] ss:$0 sm:$0xff] }
 0x2d9   : > { %5573 = vmatprep.subr.bf16.mxu1 %v7370_v46  ;;  %5555 = vmatprep.subr.bf16.mxu0 %v7370_v46 }
 0x2dc   : > { %5575 = vmatpush3.bf16.msra.mxu1 %v6586_v2  ;;  %5557 = vmatpush3.bf16.msra.mxu0 %v6622_v24  ;;  %v3860_v2 = vld [vmem:[%s7299_s9] ss:$0 sm:$0xff] }
 0x2dd   : > { %5576 = vmatprep.subr.bf16.mxu1 %v7370_v46  ;;  %5582 = vmatprep.subr.bf16.mxu0 %v7370_v46  ;;  %v6875_v49 = vadd.f32 %v3897_v41, %v3860_v2 }
 0x2e0   : > { %5578 = vmatpush3.bf16.msra.mxu1 %v6606_v17  ;;  %v3878_v17 = vld [vmem:[%s7299_s9 + $0x1] ss:$0 sm:$0xff] }
 0x2e1   : > { %5579 = vmatprep.subr.bf16.mxu1 %v7370_v46 }
 0x2e4   : > { %5581 = vmatpush3.bf16.msra.mxu1 %v6626_v60  ;;  %v3902_v60 = vld [vmem:[%s7300_s10 + $0x1] ss:$0 sm:$0xff] }
 0x2e5   : > { %4858 = vmatprep.subr.mxu1 %v7371_v47 }
 0x356   : > { %v1544_v25 = vpop.f32.mrb[8].mxu1 }
 0x357   : > { %v4637_v5 = vpop.f32.mrb[9].mxu1 }
 0x35a   : > { %v1627_v54 = vpop.f32.mrb[10].mxu1 }
 0x35b   : > { %v4642_v61 = vpop.f32.mrb[11].mxu1 }
 0x35c   : > { %v6877_v61 = vadd.f32 %v3902_v60, %v3878_v17 }
 0x35e   : > { %v5897_v15 = vadd.f32 %v6877_v61, %v1544_v25 }
 0x360   : > { %v3911_v10 = vmul.f32 -1.442695, %v5897_v15 }
 0x36e   : > { %v1375_v53 = vpop.f32.mrb[12].mxu0 }
 0x36f   : > { %v4627_v5 = vpop.f32.mrb[13].mxu0 }
 0x372   : > { %v1461_v36 = vpop.f32.mrb[10].mxu0 }
 0x373   : > { %v5895_v22 = vadd.f32 %v6875_v49, %v1461_v36  ;;  %v4632_v23 = vpop.f32.mrb[11].mxu0 }
 0x374   : > { %v6886_v23 = vld [vmem:[%s7300_s10 + $0x2] ss:$0 sm:$0xff] }
 0x375   : > { %v3910_v18 = vmul.f32 -1.442695, %v5895_v22 }
 0x377   : > { %5950 = vpow2.f32 %v3910_v18 }
 0x378   : > { %5952 = vpow2.f32 %v3911_v10 }
 0x37a   : > { %v1721_v6 = vpop.f32.mrb[12].mxu1 }
 0x37b   : > { %v1722_v3 = vadd.f32 %v6453_v62, %v1721_v6  ;;  %v4677_v24 = vpop.f32.mrb[13].mxu1  ;;  %v6891_v6 = vld [vmem:[%s7299_s9 + $0x2] ss:$0 sm:$0xff] }
 0x37d   : > { %v1865_v0 = vadd.f32 %v1722_v3, %v6431_v35  ;;  %v1628_v3 = vadd.f32 %v6886_v23, %v1627_v54  ;;  %v1376_v35 = vadd.f32 %v6891_v6, %v1375_v53 }
 0x37f   : > { %v3912_v41 = vmul.f32 -1.442695, %v1865_v0 }
 0x381   : > { %v5951_v2 = vpop.eup %5950  ;;  %5954 = vpow2.f32 %v3912_v41 }
 0x382   : > { %v1635_v17 = vadd.f32 1.0, %v5951_v2  ;;  %v5953_v60 = vpop.eup %5952 }
 0x383   : > { %v1642_v15 = vadd.f32 1.0, %v5953_v60 }
 0x384   : > { %5956 = vrcp.f32 %v1635_v17 }
 0x385   : > { %5958 = vrcp.f32 %v1642_v15 }
 0x38b   : > { %v5955_v18 = vpop.eup %5954 }
 0x38c   : > { %v1869_v10 = vadd.f32 1.0, %v5955_v18 }
 0x38e   : > { %v5957_v0 = vpop.eup %5956  ;;  %5960 = vrcp.f32 %v1869_v10 }
 0x38f   : > { %v1645_v62 = vmul.f32 %v5957_v0, %v1628_v3  ;;  %v5959_v2 = vpop.eup %5958 }
 0x390   : > { %v1648_v15 = vsub.f32 1.0, %v5959_v2  ;;  %v1650_v10 = vmul.f32 %v5959_v2, %v6688_v43 }
 0x391   : > { %v1646_v22 = vadd.f32 %v1645_v62, %v1376_v35 }
 0x392   : > { %v1791_v36 = vpop.f32.mrb[14].mxu0 }
 0x393   : > { %5962 = vtanh.f32 %v1646_v22  ;;  %v1792_v24 = vadd.f32 %v6459_v11, %v1791_v36  ;;  %v4712_v25 = vpop.f32.mrb[15].mxu0 }
 0x395   : > { %v1872_v5 = vadd.f32 %v1792_v24, %v6429_v31 }
 0x397   : > { %v3913_v41 = vmul.f32 -1.442695, %v1872_v5 }
 0x398   : > { %v5961_v18 = vpop.eup %5960 }
 0x399   : > { %5964 = vpow2.f32 %v3913_v41 }
 0x39a   : > { %v1861_v17 = vpop.f32.mrb[14].mxu1 }
 0x39b   : > { %v1862_v54 = vadd.f32 %v6465_v37, %v1861_v17  ;;  %v4747_v60 = vpop.f32.mrb[15].mxu1 }
 0x39d   : > { %v5963_v53 = vpop.eup %5962  ;;  %v1879_v3 = vmul.f32 %v5961_v18, %v1862_v54 }
 0x39e   : > { %v1649_v0 = vmul.f32 %v5963_v53, %v1648_v15 }
 0x39f   : > { %v1880_v35 = vadd.f32 %v1879_v3, %v6442_v52 }
 0x3a0   : > { %v6900_v62 = vadd.f32 %v1650_v10, %v1649_v0  ;;  %v7373_v0 = vld [vmem:[#allocation29_spill] sm:$0xff] }
 0x3a1   : > { %v7374_v10 = vld [vmem:[#allocation5_spill] sm:$0xff] }
 0x3a3   : > { %v5965_v22 = vpop.eup %5964 }
 0x3a4   : > { %v1876_v31 = vadd.f32 1.0, %v5965_v22  ;;  %v7376_v22 = vld [vmem:[#allocation7_spill] sm:$0xff] }
 0x3a6   : > { %5966 = vrcp.f32 %v1876_v31  ;;  %v7377_v31 = vld [vmem:[#allocation27_spill] sm:$0xff] }
 0x3a7   : > { %5968 = vtanh.f32 %v1880_v35  ;;  %v7375_v35 = vld [vmem:[#allocation6_spill] sm:$0xff] }
 0x3b0   : > { %v5967_v36 = vpop.eup %5966 }
 0x3b1   : > { %v1882_v24 = vsub.f32 1.0, %v5967_v36  ;;  %v5969_v25 = vpop.eup %5968  ;;  %v1884_v37 = vmul.f32 %v5967_v36, %v6469_v9  ;;  %v7378_v36 = vld [vmem:[#allocation8_spill] sm:$0xff] }
 0x3b3   : > { %v1883_v5 = vmul.f32 %v5969_v25, %v1882_v24  ;;  %v7379_v24 = vld [vmem:[#allocation9_spill] sm:$0xff]  ;;  %v7380_v25 = vld [vmem:[#allocation10_spill] sm:$0xff] }
 0x3b5   : > { %v6903_v41 = vadd.f32 %v1884_v37, %v1883_v5  ;;  %v7381_v37 = vld [vmem:[#allocation11_spill] sm:$0xff]  ;;  %v7382_v5 = vld [vmem:[#allocation12_spill] sm:$0xff] }
 0x3b7   : > { %1886 = vadd.xlane.f32.xlu1 %v6903_v41 }
 0x444   : > { %v1887_v17 = vpop.xlane.xlu1 %1886 }
 0x445   : > { %v1888_v43 = vmul.f32 0.0078125, %v1887_v17  ;;  %v7383_v17 = vld [vmem:[#allocation13_spill] sm:$0xff] }
 0x447   : > { %v1889_v52 = vsub.f32 %v6903_v41, %v1888_v43  ;;  %v7384_v43 = vld [vmem:[#allocation20_spill] sm:$0xff] }
 0x449   : > { %v1890_v2 = vmul.f32 %v1889_v52, %v1889_v52 }
 0x44b   : > { %1891 = vadd.xlane.f32.xlu1 %v1890_v2  ;;  %v7386_v2 = vld [vmem:[#allocation22_spill] sm:$0xff] }
 0x4d8   : > { %v1892_v54 = vpop.xlane.xlu1 %1891 }
 0x4d9   : > { %v1893_v60 = vmul.f32 0.0078125, %v1892_v54  ;;  %v7387_v54 = vld [vmem:[#allocation23_spill] sm:$0xff] }
 0x4db   : > { %v1894_v18 = vadd.f32 1e-05, %v1893_v60  ;;  %v7388_v60 = vld [vmem:[#allocation24_spill] sm:$0xff] }
 0x4dd   : > { %5970 = vrsqrt.f32 %v1894_v18  ;;  %v7389_v18 = vld [vmem:[#allocation25_spill] sm:$0xff] }
 0x4e7   : > { %v5971_v15 = vpop.eup %5970 }
 0x4e8   : > { %v1896_v53 = vmul.f32 %v5971_v15, %v1889_v52  ;;  %v7385_v52 = vld [vmem:[#allocation21_spill] sm:$0xff]  ;;  %v7390_v15 = vld [vmem:[#allocation26_spill] sm:$0xff] }
 0x4ea   : > { %v1897_v3 = vmul.f32 %v6636_v29, %v1896_v53  ;;  %v7391_v53 = vld [vmem:[#allocation28_spill] sm:$0xff] }
 0x4ec   : > { %v1898_v9 = vadd.f32 %v6647_v4, %v1897_v3 }
 0x4ee   : > { %4781 = vmatmul.mubr.f32.vlgmr.msra.gmra.mrb[16].mxu0 %v1898_v9  ;;  %4816 = vmatmul.mubr.f32.vlgmr.msra.gmra.mrb[16].mxu1 %v1898_v9 }
 0x4ef   : > { %5584 = vmatpush3.bf16.msra.mxu0 %v6650_v13  ;;  %4859 = vmatpush3.msk.msra.mxu1 %vm1391_vm4, %v6664_v12 }
 0x4f0   : > { %5585 = vmatprep.subr.bf16.mxu0 %v7370_v46  ;;  %4860 = vmatprep.mubr.msk.f32.mxu1 %vm6046_vm3, %v7371_v47 }
 0x4f1   : > { %4863 = vmatprep.subr.mxu1 %v7371_v47  ;;  %4850 = vmatprep.mubr.msk.f32.mxu0 %vm6046_vm3, %v7371_v47 }
 0x4f3   : > { %5587 = vmatpush3.bf16.msra.mxu0 %v6669_v30 }
 0x4f4   : > { %5588 = vmatprep.subr.bf16.mxu0 %v7370_v46 }
 0x4f6   : > { %4861 = vmatmul.mubr.msk.f32.vlgmr.msra.gmra.mrb[16].mxu1 %vm1387_vm5, %v6900_v62 }
 0x4f7   : > { %5590 = vmatpush3.bf16.msra.mxu0 %v6686_v1  ;;  %4864 = vmatpush3.msk.msra.mxu1 %vm1391_vm4, %v6694_v40 }
 0x4f8   : > { %5591 = vmatprep.subr.bf16.mxu0 %v7370_v46  ;;  %4865 = vmatprep.mubr.msk.f32.mxu1 %vm6046_vm3, %v7371_v47 }
 0x4f9   : > { %5630 = vmatprep.subr.bf16.mxu1 %v7370_v46 }
 0x4fa   : > { %4866 = vmatmul.mubr.msk.f32.vlgmr.msra.gmra.mrb[18].mxu1 %vm1387_vm5, %v6900_v62 }
 0x4fb   : > { %5593 = vmatpush3.bf16.msra.mxu0 %v6707_v59  ;;  %5632 = vmatpush3.bf16.msra.mxu1 %v6193_v19 }
 0x4fc   : > { %5594 = vmatprep.subr.bf16.mxu0 %v7370_v46  ;;  %5633 = vmatprep.subr.bf16.mxu1 %v7370_v46 }
 0x4fd   : > { %4935 = vmatprep.mubr.msk.f32.mxu1 %vm6046_vm3, %v7371_v47 }
 0x4ff   : > { %5596 = vmatpush3.bf16.msra.mxu0 %v7373_v0  ;;  %5635 = vmatpush3.bf16.msra.mxu1 %v6217_v26 }
 0x500   : > { %5597 = vmatprep.subr.bf16.mxu0 %v7370_v46  ;;  %5636 = vmatprep.subr.bf16.mxu1 %v7370_v46 }
 0x503   : > { %5599 = vmatpush3.bf16.msra.mxu0 %v6737_v42  ;;  %5638 = vmatpush3.bf16.msra.mxu1 %v6239_v32 }
 0x504   : > { %5600 = vmatprep.subr.bf16.mxu0 %v7370_v46  ;;  %5639 = vmatprep.subr.bf16.mxu1 %v7370_v46 }
 0x507   : > { %5602 = vmatpush3.bf16.msra.mxu0 %v6749_v48  ;;  %5641 = vmatpush3.bf16.msra.mxu1 %v6261_v38 }
 0x508   : > { %5603 = vmatprep.subr.bf16.mxu0 %v7370_v46  ;;  %5642 = vmatprep.subr.bf16.mxu1 %v7370_v46 }
 0x50b   : > { %5605 = vmatpush3.bf16.msra.mxu0 %v6761_v14  ;;  %5644 = vmatpush3.bf16.msra.mxu1 %v6281_v44 }
 0x50c   : > { %4853 = vmatprep.subr.mxu0 %v7371_v47  ;;  %5645 = vmatprep.subr.bf16.mxu1 %v7370_v46 }
 0x50e   : > { %4851 = vmatmul.mubr.f32.vlgmr.msra.gmra.mrb[18].mxu0 %v1898_v9 }
 0x50f   : > { %4854 = vmatpush3.msk.msra.mxu0 %vm1391_vm4, %v6772_v7  ;;  %5647 = vmatpush3.bf16.msra.mxu1 %v6301_v50 }
 0x510   : > { %4855 = vmatprep.mubr.msk.f32.mxu0 %vm6046_vm3, %v7371_v47  ;;  %5606 = vmatprep.subr.bf16.mxu0 %v7370_v46 }
 0x511   : > { %5648 = vmatprep.subr.bf16.mxu1 %v7370_v46 }
 0x512   : > { %4856 = vmatmul.mubr.msk.f32.vlgmr.msra.gmra.mrb[16].mxu0 %vm1387_vm5, %v6900_v62 }
 0x513   : > { %5608 = vmatpush3.bf16.msra.mxu0 %v7374_v10  ;;  %5650 = vmatpush3.bf16.msra.mxu1 %v6321_v56 }
 0x514   : > { %5609 = vmatprep.subr.bf16.mxu0 %v7370_v46  ;;  %5651 = vmatprep.subr.bf16.mxu1 %v7370_v46 }
 0x515   : > { %4900 = vmatprep.mubr.msk.f32.mxu0 %vm6046_vm3, %v7371_v47 }
 0x517   : > { %5611 = vmatpush3.bf16.msra.mxu0 %v7375_v35  ;;  %5653 = vmatpush3.bf16.msra.mxu1 %v6344_v63 }
 0x518   : > { %5612 = vmatprep.subr.bf16.mxu0 %v7370_v46  ;;  %5678 = vmatprep.subr.bf16.mxu1 %v7370_v46 }
 0x51a   : > { %4936 = vmatmul.mubr.f32.vlgmr.msra.gmra.mrb[20].mxu1 %v6903_v41 }
 0x51b   : > { %5614 = vmatpush3.bf16.msra.mxu0 %v6197_v20  ;;  %5680 = vmatpush3.bf16.msra.mxu1 %v6481_v16 }
 0x51c   : > { %5615 = vmatprep.subr.bf16.mxu0 %v7370_v46  ;;  %5681 = vmatprep.subr.bf16.mxu1 %v7370_v46 }
 0x51d   : > { %5005 = vmatprep.mubr.msk.f32.mxu1 %vm6046_vm3, %v7371_v47 }
 0x51f   : > { %5617 = vmatpush3.bf16.msra.mxu0 %v6222_v27  ;;  %5683 = vmatpush3.bf16.msra.mxu1 %v6501_v28 }
 0x520   : > { %5618 = vmatprep.subr.bf16.mxu0 %v7370_v46  ;;  %5684 = vmatprep.subr.bf16.mxu1 %v7370_v46 }
 0x523   : > { %5620 = vmatpush3.bf16.msra.mxu0 %v6245_v33  ;;  %5686 = vmatpush3.bf16.msra.mxu1 %v6521_v34 }
 0x524   : > { %5621 = vmatprep.subr.bf16.mxu0 %v7370_v46  ;;  %5687 = vmatprep.subr.bf16.mxu1 %v7370_v46 }
 0x527   : > { %5623 = vmatpush3.bf16.msra.mxu0 %v6265_v39  ;;  %5689 = vmatpush3.bf16.msra.mxu1 %v6539_v8 }
 0x528   : > { %5624 = vmatprep.subr.bf16.mxu0 %v7370_v46  ;;  %5690 = vmatprep.subr.bf16.mxu1 %v7370_v46 }
 0x52b   : > { %5626 = vmatpush3.bf16.msra.mxu0 %v6285_v45  ;;  %5692 = vmatpush3.bf16.msra.mxu1 %v6558_v21 }
 0x52c   : > { %5627 = vmatprep.subr.bf16.mxu0 %v7370_v46  ;;  %5693 = vmatprep.subr.bf16.mxu1 %v7370_v46 }
 0x52f   : > { %5629 = vmatpush3.bf16.msra.mxu0 %v6305_v51  ;;  %5695 = vmatpush3.bf16.msra.mxu1 %v6579_v55 }
 0x530   : > { %5654 = vmatprep.subr.bf16.mxu0 %v7370_v46  ;;  %5696 = vmatprep.subr.bf16.mxu1 %v7370_v46 }
 0x532   : > { %4901 = vmatmul.mubr.f32.vlgmr.msra.gmra.mrb[20].mxu0 %v6903_v41 }
 0x533   : > { %5656 = vmatpush3.bf16.msra.mxu0 %v6327_v58  ;;  %4970 = vmatprep.mubr.msk.f32.mxu0 %vm6046_vm3, %v7371_v47 }
 0x534   : > { %5657 = vmatprep.subr.bf16.mxu0 %v7370_v46  ;;  %5698 = vmatpush3.bf16.msra.mxu1 %v6602_v57 }
 0x535   : > { %5699 = vmatprep.subr.bf16.mxu1 %v7370_v46 }
 0x537   : > { %5659 = vmatpush3.bf16.msra.mxu0 %v7376_v22 }
 0x538   : > { %5660 = vmatprep.subr.bf16.mxu0 %v7370_v46  ;;  %5701 = vmatpush3.bf16.msra.mxu1 %v7377_v31 }
 0x539   : > { %5726 = vmatprep.subr.bf16.mxu1 %v7370_v46 }
 0x53b   : > { %5662 = vmatpush3.bf16.msra.mxu0 %v7378_v36  ;;  %v7392_v36 = vld [vmem:[#allocation17_spill] sm:$0xff] }
 0x53c   : > { %5663 = vmatprep.subr.bf16.mxu0 %v7370_v46 }
 0x53f   : > { %5665 = vmatpush3.bf16.msra.mxu0 %v7379_v24 }
 0x540   : > { %5666 = vmatprep.subr.bf16.mxu0 %v7370_v46 }
 0x543   : > { %5668 = vmatpush3.bf16.msra.mxu0 %v7380_v25 }
 0x544   : > { %5669 = vmatprep.subr.bf16.mxu0 %v7370_v46 }
 0x547   : > { %5671 = vmatpush3.bf16.msra.mxu0 %v7381_v37 }
 0x548   : > { %5672 = vmatprep.subr.bf16.mxu0 %v7370_v46 }
 0x54b   : > { %5674 = vmatpush3.bf16.msra.mxu0 %v7382_v5 }
 0x54c   : > { %5675 = vmatprep.subr.bf16.mxu0 %v7370_v46 }
 0x54f   : > { %5677 = vmatpush3.bf16.msra.mxu0 %v7383_v17 }
 0x550   : > { %5702 = vmatprep.subr.bf16.mxu0 %v7370_v46 }
 0x552   : > { %4971 = vmatmul.mubr.f32.vlgmr.msra.gmra.mrb[22].mxu0 %v6903_v41 }
 0x553   : > { %5704 = vmatpush3.bf16.msra.mxu0 %v7384_v43  ;;  %5040 = vmatprep.mubr.msk.f32.mxu0 %vm6046_vm3, %v7371_v47 }
 0x554   : > { %5705 = vmatprep.subr.bf16.mxu0 %v7370_v46 }
 0x557   : > { %5707 = vmatpush3.bf16.msra.mxu0 %v7385_v52 }
 0x558   : > { %5708 = vmatprep.subr.bf16.mxu0 %v7370_v46 }
 0x55b   : > { %5710 = vmatpush3.bf16.msra.mxu0 %v7386_v2 }
 0x55c   : > { %5711 = vmatprep.subr.bf16.mxu0 %v7370_v46 }
 0x55f   : > { %5713 = vmatpush3.bf16.msra.mxu0 %v7387_v54 }
 0x560   : > { %5714 = vmatprep.subr.bf16.mxu0 %v7370_v46 }
 0x563   : > { %5716 = vmatpush3.bf16.msra.mxu0 %v7388_v60 }
 0x564   : > { %5717 = vmatprep.subr.bf16.mxu0 %v7370_v46 }
 0x567   : > { %5719 = vmatpush3.bf16.msra.mxu0 %v7389_v18 }
 0x568   : > { %5720 = vmatprep.subr.bf16.mxu0 %v7370_v46 }
 0x56b   : > { %5722 = vmatpush3.bf16.msra.mxu0 %v7390_v15 }
 0x56c   : > { %5723 = vmatprep.subr.bf16.mxu0 %v7370_v46 }
 0x56f   : > { %5725 = vmatpush3.bf16.msra.mxu0 %v7391_v53 }
 0x570   : > { %5083 = vmatprep.subr.mxu0 %v7371_v47 }
 0x5c9   : > { %v2248_v3 = vpop.f32.mrb[16].mxu1 }
 0x5ca   : > { %v4862_v9 = vpop.f32.mrb[17].mxu1  ;;  %v5901_v37 = vadd.f32 %v6877_v61, %v2248_v3 }
 0x5cc   : > { %v3921_v15 = vmul.f32 -1.442695, %v5901_v37 }
 0x5cd   : > { %v2318_v54 = vpop.f32.mrb[18].mxu1 }
 0x5ce   : > { %v4867_v2 = vpop.f32.mrb[19].mxu1 }
 0x5e1   : > { %v2105_v52 = vpop.f32.mrb[18].mxu0 }
 0x5e2   : > { %v4852_v60 = vpop.f32.mrb[19].mxu0 }
 0x5e5   : > { %v2178_v43 = vpop.f32.mrb[16].mxu0 }
 0x5e6   : > { %v5899_v17 = vadd.f32 %v6875_v49, %v2178_v43  ;;  %v4857_v18 = vpop.f32.mrb[17].mxu0  ;;  %v2319_v43 = vadd.f32 %v6886_v23, %v2318_v54 }
 0x5e8   : > { %v3920_v5 = vmul.f32 -1.442695, %v5899_v17  ;;  %v2106_v17 = vadd.f32 %v6891_v6, %v2105_v52 }
 0x5ea   : > { %5972 = vpow2.f32 %v3920_v5 }
 0x5eb   : > { %5974 = vpow2.f32 %v3921_v15 }
 0x5ed   : > { %v2482_v25 = vpop.f32.mrb[20].mxu1 }
 0x5ee   : > { %v2483_v53 = vadd.f32 %v6459_v11, %v2482_v25  ;;  %v4937_v24 = vpop.f32.mrb[21].mxu1  ;;  %v7050_v11 = vld [vmem:[%s7294_s4] ss:$0 sm:$0xff] }
 0x5ef   : > { %v7393_v25 = vld [vmem:[#allocation15_spill] sm:$0xff] }
 0x5f0   : > { %v2563_v31 = vadd.f32 %v2483_v53, %v7392_v36 }
 0x5f4   : > { %v5973_v9 = vpop.eup %5972 }
 0x5f5   : > { %v2326_v2 = vadd.f32 1.0, %v5973_v9  ;;  %v5975_v60 = vpop.eup %5974 }
 0x5f6   : > { %v2333_v22 = vadd.f32 1.0, %v5975_v60  ;;  %v3923_v60 = vmul.f32 -1.442695, %v2563_v31  ;;  %v7394_v31 = vld [vmem:[#allocation19_spill] sm:$0xff] }
 0x5f7   : > { %5976 = vrcp.f32 %v2326_v2 }
 0x5f8   : > { %5978 = vrcp.f32 %v2333_v22 }
 0x601   : > { %v5977_v18 = vpop.eup %5976 }
 0x602   : > { %v2336_v5 = vmul.f32 %v5977_v18, %v2319_v43  ;;  %v5979_v54 = vpop.eup %5978 }
 0x603   : > { %v2339_v22 = vsub.f32 1.0, %v5979_v54  ;;  %v2341_v2 = vmul.f32 %v5979_v54, %v6900_v62 }
 0x604   : > { %v2337_v37 = vadd.f32 %v2336_v5, %v2106_v17 }
 0x605   : > { %v2412_v3 = vpop.f32.mrb[20].mxu0 }
 0x606   : > { %5980 = vtanh.f32 %v2337_v37  ;;  %v2413_v36 = vadd.f32 %v7050_v11, %v2412_v3  ;;  %v4902_v24 = vpop.f32.mrb[21].mxu0 }
 0x608   : > { %v2556_v15 = vadd.f32 %v2413_v36, %v7393_v25  ;;  %v7060_v36 = vld [vmem:[%s7294_s4 + $0x2] ss:$0 sm:$0xff] }
 0x60a   : > { %v3922_v53 = vmul.f32 -1.442695, %v2556_v15 }
 0x60c   : > { %5982 = vpow2.f32 %v3922_v53 }
 0x60d   : > { %5984 = vpow2.f32 %v3923_v60 }
 0x610   : > { %v5981_v9 = vpop.eup %5980 }
 0x611   : > { %v2340_v52 = vmul.f32 %v5981_v9, %v2339_v22 }
 0x613   : > { %v7055_v43 = vadd.f32 %v2341_v2, %v2340_v52 }
 0x616   : > { %v5983_v18 = vpop.eup %5982 }
 0x617   : > { %v2560_v17 = vadd.f32 1.0, %v5983_v18  ;;  %v5985_v5 = vpop.eup %5984 }
 0x618   : > { %v2567_v37 = vadd.f32 1.0, %v5985_v5 }
 0x619   : > { %5986 = vrcp.f32 %v2560_v17 }
 0x61a   : > { %5988 = vrcp.f32 %v2567_v37 }
 0x623   : > { %v5987_v15 = vpop.eup %5986 }
 0x624   : > { %v5989_v54 = vpop.eup %5988 }
 0x625   : > { %v2552_v3 = vpop.f32.mrb[22].mxu0  ;;  %v2573_v22 = vsub.f32 1.0, %v5989_v54  ;;  %v2575_v52 = vmul.f32 %v5989_v54, %v6903_v41 }
 0x626   : > { %v2553_v24 = vadd.f32 %v7060_v36, %v2552_v3  ;;  %v4972_v25 = vpop.f32.mrb[23].mxu0 }
 0x628   : > { %v2570_v62 = vmul.f32 %v5987_v15, %v2553_v24 }
 0x62a   : > { %v2571_v53 = vadd.f32 %v2570_v62, %v7394_v31 }
 0x62c   : > { %5990 = vtanh.f32 %v2571_v53  ;;  %v6028_v53 = vld [vmem:[%s7294_s4 + $0x1] ss:$0 sm:$0xff] }
 0x636   : > { %v5991_v9 = vpop.eup %5990 }
 0x637   : > { %v2574_v2 = vmul.f32 %v5991_v9, %v2573_v22  ;;  %v7411_v9 = vld [vmem:[#allocation16_spill] sm:$0xff] }
 0x639   : > { %v7065_v60 = vadd.f32 %v2575_v52, %v2574_v2 }
 0x63b   : > { %2577 = vadd.xlane.f32.xlu0 %v7065_v60 }
 0x6c8   : > { %v2578_v18 = vpop.xlane.xlu0 %2577 }
 0x6c9   : > { %v2579_v17 = vmul.f32 0.0078125, %v2578_v18 }
 0x6cb   : > { %v2580_v5 = vsub.f32 %v7065_v60, %v2579_v17 }
 0x6cd   : > { %v2581_v3 = vmul.f32 %v2580_v5, %v2580_v5 }
 0x6cf   : > { %2582 = vadd.xlane.f32.xlu1 %v2581_v3 }
 0x75c   : > { %v2583_v37 = vpop.xlane.xlu1 %2582 }
 0x75d   : > { %v2584_v24 = vmul.f32 0.0078125, %v2583_v37 }
 0x75f   : > { %v2585_v25 = vadd.f32 1e-05, %v2584_v24 }
 0x761   : > { %5992 = vrsqrt.f32 %v2585_v25 }
 0x76b   : > { %v5993_v15 = vpop.eup %5992 }
 0x76c   : > { %v2587_v62 = vmul.f32 %v5993_v15, %v2580_v5 }
 0x76e   : > { %v2588_v31 = vmul.f32 %v6636_v29, %v2587_v62 }
 0x770   : > { %v2589_v41 = vadd.f32 %v6647_v4, %v2588_v31 }
 0x772   : > { %5006 = vmatmul.mubr.f32.vlgmr.msra.gmra.mrb[22].mxu1 %v2589_v41  ;;  %5041 = vmatmul.mubr.f32.vlgmr.msra.gmra.mrb[24].mxu0 %v2589_v41 }
 0x773   : > { %5728 = vmatpush3.bf16.msra.mxu1 %v6650_v13  ;;  %5084 = vmatpush3.msk.msra.mxu0 %vm1391_vm4, %v6664_v12  ;;  %v7395_v12 = vld [vmem:[#allocation7_spill] sm:$0xff] }
 0x774   : > { %5729 = vmatprep.subr.bf16.mxu1 %v7370_v46  ;;  %5085 = vmatprep.mubr.msk.f32.mxu0 %vm6046_vm3, %v7371_v47 }
 0x775   : > { %5088 = vmatprep.subr.mxu0 %v7371_v47  ;;  %5075 = vmatprep.mubr.msk.f32.mxu1 %vm6046_vm3, %v7371_v47 }
 0x777   : > { %5731 = vmatpush3.bf16.msra.mxu1 %v6669_v30 }
 0x778   : > { %5732 = vmatprep.subr.bf16.mxu1 %v7370_v46 }
 0x77a   : > { %5086 = vmatmul.mubr.msk.f32.vlgmr.msra.gmra.mrb[24].mxu0 %vm1387_vm5, %v7055_v43 }
 0x77b   : > { %5734 = vmatpush3.bf16.msra.mxu1 %v6686_v1  ;;  %5089 = vmatpush3.msk.msra.mxu0 %vm1391_vm4, %v6694_v40 }
 0x77c   : > { %5735 = vmatprep.subr.bf16.mxu1 %v7370_v46  ;;  %5090 = vmatprep.mubr.msk.f32.mxu0 %vm6046_vm3, %v7371_v47 }
 0x77d   : > { %5774 = vmatprep.subr.bf16.mxu0 %v7370_v46 }
 0x77e   : > { %5091 = vmatmul.mubr.msk.f32.vlgmr.msra.gmra.mrb[26].mxu0 %vm1387_vm5, %v7055_v43 }
 0x77f   : > { %5737 = vmatpush3.bf16.msra.mxu1 %v6707_v59  ;;  %5776 = vmatpush3.bf16.msra.mxu0 %v6193_v19  ;;  %v7396_v19 = vld [vmem:[#allocation27_spill] sm:$0xff] }
 0x780   : > { %5738 = vmatprep.subr.bf16.mxu1 %v7370_v46  ;;  %5777 = vmatprep.subr.bf16.mxu0 %v7370_v46 }
 0x781   : > { %5160 = vmatprep.mubr.msk.f32.mxu0 %vm6046_vm3, %v7371_v47 }
 0x783   : > { %5740 = vmatpush3.bf16.msra.mxu1 %v7373_v0  ;;  %5779 = vmatpush3.bf16.msra.mxu0 %v6217_v26  ;;  %v7398_v26 = vld [vmem:[#allocation9_spill] sm:$0xff] }
 0x784   : > { %5741 = vmatprep.subr.bf16.mxu1 %v7370_v46  ;;  %5780 = vmatprep.subr.bf16.mxu0 %v7370_v46 }
 0x787   : > { %5743 = vmatpush3.bf16.msra.mxu1 %v6737_v42  ;;  %5782 = vmatpush3.bf16.msra.mxu0 %v6239_v32  ;;  %v7400_v32 = vld [vmem:[#allocation11_spill] sm:$0xff] }
 0x788   : > { %5744 = vmatprep.subr.bf16.mxu1 %v7370_v46  ;;  %5783 = vmatprep.subr.bf16.mxu0 %v7370_v46 }
 0x78b   : > { %5746 = vmatpush3.bf16.msra.mxu1 %v6749_v48  ;;  %5785 = vmatpush3.bf16.msra.mxu0 %v6261_v38  ;;  %v7402_v38 = vld [vmem:[#allocation13_spill] sm:$0xff] }
 0x78c   : > { %5747 = vmatprep.subr.bf16.mxu1 %v7370_v46  ;;  %5786 = vmatprep.subr.bf16.mxu0 %v7370_v46 }
 0x78f   : > { %5749 = vmatpush3.bf16.msra.mxu1 %v6761_v14  ;;  %5788 = vmatpush3.bf16.msra.mxu0 %v6281_v44  ;;  %v7404_v44 = vld [vmem:[#allocation21_spill] sm:$0xff] }
 0x790   : > { %5078 = vmatprep.subr.mxu1 %v7371_v47  ;;  %5789 = vmatprep.subr.bf16.mxu0 %v7370_v46 }
 0x792   : > { %5076 = vmatmul.mubr.f32.vlgmr.msra.gmra.mrb[24].mxu1 %v2589_v41 }
 0x793   : > { %5079 = vmatpush3.msk.msra.mxu1 %vm1391_vm4, %v6772_v7  ;;  %5791 = vmatpush3.bf16.msra.mxu0 %v6301_v50  ;;  %v7406_v50 = vld [vmem:[#allocation23_spill] sm:$0xff] }
 0x794   : > { %5080 = vmatprep.mubr.msk.f32.mxu1 %vm6046_vm3, %v7371_v47  ;;  %5750 = vmatprep.subr.bf16.mxu1 %v7370_v46 }
 0x795   : > { %5792 = vmatprep.subr.bf16.mxu0 %v7370_v46 }
 0x796   : > { %5081 = vmatmul.mubr.msk.f32.vlgmr.msra.gmra.mrb[22].mxu1 %vm1387_vm5, %v7055_v43 }
 0x797   : > { %5752 = vmatpush3.bf16.msra.mxu1 %v7374_v10  ;;  %5794 = vmatpush3.bf16.msra.mxu0 %v6321_v56  ;;  %v7408_v56 = vld [vmem:[#allocation25_spill] sm:$0xff] }
 0x798   : > { %5753 = vmatprep.subr.bf16.mxu1 %v7370_v46  ;;  %5795 = vmatprep.subr.bf16.mxu0 %v7370_v46 }
 0x799   : > { %5125 = vmatprep.mubr.msk.f32.mxu1 %vm6046_vm3, %v7371_v47 }
 0x79b   : > { %5755 = vmatpush3.bf16.msra.mxu1 %v7375_v35  ;;  %5797 = vmatpush3.bf16.msra.mxu0 %v6344_v63  ;;  %v7410_v63 = vld [vmem:[#allocation28_spill] sm:$0xff] }
 0x79c   : > { %5756 = vmatprep.subr.bf16.mxu1 %v7370_v46  ;;  %5822 = vmatprep.subr.bf16.mxu0 %v7370_v46 }
 0x79e   : > { %5161 = vmatmul.mubr.f32.vlgmr.msra.gmra.mrb[28].mxu0 %v7065_v60 }
 0x79f   : > { %5758 = vmatpush3.bf16.msra.mxu1 %v6197_v20  ;;  %5824 = vmatpush3.bf16.msra.mxu0 %v6481_v16  ;;  %v7397_v20 = vld [vmem:[#allocation8_spill] sm:$0xff] }
 0x7a0   : > { %5759 = vmatprep.subr.bf16.mxu1 %v7370_v46  ;;  %5825 = vmatprep.subr.bf16.mxu0 %v7370_v46 }
 0x7a1   : > { %5230 = vmatprep.mubr.msk.f32.mxu0 %vm6046_vm3, %v7371_v47 }
 0x7a3   : > { %5761 = vmatpush3.bf16.msra.mxu1 %v6222_v27  ;;  %5827 = vmatpush3.bf16.msra.mxu0 %v6501_v28  ;;  %v7399_v27 = vld [vmem:[#allocation10_spill] sm:$0xff] }
 0x7a4   : > { %5762 = vmatprep.subr.bf16.mxu1 %v7370_v46  ;;  %5828 = vmatprep.subr.bf16.mxu0 %v7370_v46 }
 0x7a7   : > { %5764 = vmatpush3.bf16.msra.mxu1 %v6245_v33  ;;  %5830 = vmatpush3.bf16.msra.mxu0 %v6521_v34  ;;  %v7401_v33 = vld [vmem:[#allocation12_spill] sm:$0xff] }
 0x7a8   : > { %5765 = vmatprep.subr.bf16.mxu1 %v7370_v46  ;;  %5831 = vmatprep.subr.bf16.mxu0 %v7370_v46 }
 0x7ab   : > { %5767 = vmatpush3.bf16.msra.mxu1 %v6265_v39  ;;  %5833 = vmatpush3.bf16.msra.mxu0 %v6539_v8  ;;  %v7403_v39 = vld [vmem:[#allocation20_spill] sm:$0xff] }
 0x7ac   : > { %5768 = vmatprep.subr.bf16.mxu1 %v7370_v46  ;;  %5834 = vmatprep.subr.bf16.mxu0 %v7370_v46 }
 0x7af   : > { %5770 = vmatpush3.bf16.msra.mxu1 %v6285_v45  ;;  %5836 = vmatpush3.bf16.msra.mxu0 %v6558_v21  ;;  %v7405_v45 = vld [vmem:[#allocation22_spill] sm:$0xff] }
 0x7b0   : > { %5771 = vmatprep.subr.bf16.mxu1 %v7370_v46  ;;  %5837 = vmatprep.subr.bf16.mxu0 %v7370_v46 }
 0x7b3   : > { %5773 = vmatpush3.bf16.msra.mxu1 %v6305_v51  ;;  %5839 = vmatpush3.bf16.msra.mxu0 %v6579_v55  ;;  %v7407_v51 = vld [vmem:[#allocation24_spill] sm:$0xff] }
 0x7b4   : > { %5798 = vmatprep.subr.bf16.mxu1 %v7370_v46  ;;  %5840 = vmatprep.subr.bf16.mxu0 %v7370_v46 }
 0x7b6   : > { %5126 = vmatmul.mubr.f32.vlgmr.msra.gmra.mrb[26].mxu1 %v7065_v60 }
 0x7b7   : > { %5800 = vmatpush3.bf16.msra.mxu1 %v6327_v58  ;;  %5195 = vmatprep.mubr.msk.f32.mxu1 %vm6046_vm3, %v7371_v47  ;;  %v7409_v58 = vld [vmem:[#allocation26_spill] sm:$0xff] }
 0x7b8   : > { %5801 = vmatprep.subr.bf16.mxu1 %v7370_v46  ;;  %5842 = vmatpush3.bf16.msra.mxu0 %v6602_v57 }
 0x7b9   : > { %5843 = vmatprep.subr.bf16.mxu0 %v7370_v46 }
 0x7bb   : > { %5803 = vmatpush3.bf16.msra.mxu1 %v7395_v12  ;;  %v7412_v12 = vld [vmem:[#allocation14_spill] sm:$0xff] }
 0x7bc   : > { %5804 = vmatprep.subr.bf16.mxu1 %v7370_v46  ;;  %5845 = vmatpush3.bf16.msra.mxu0 %v7396_v19 }
 0x7bd   : > { %5870 = vmatprep.subr.bf16.mxu0 %v7370_v46 }
 0x7bf   : > { %5806 = vmatpush3.bf16.msra.mxu1 %v7397_v20 }
 0x7c0   : > { %5807 = vmatprep.subr.bf16.mxu1 %v7370_v46 }
 0x7c3   : > { %5809 = vmatpush3.bf16.msra.mxu1 %v7398_v26 }
 0x7c4   : > { %5810 = vmatprep.subr.bf16.mxu1 %v7370_v46 }
 0x7c7   : > { %5812 = vmatpush3.bf16.msra.mxu1 %v7399_v27 }
 0x7c8   : > { %5813 = vmatprep.subr.bf16.mxu1 %v7370_v46 }
 0x7cb   : > { %5815 = vmatpush3.bf16.msra.mxu1 %v7400_v32 }
 0x7cc   : > { %5816 = vmatprep.subr.bf16.mxu1 %v7370_v46 }
 0x7cf   : > { %5818 = vmatpush3.bf16.msra.mxu1 %v7401_v33 }
 0x7d0   : > { %5819 = vmatprep.subr.bf16.mxu1 %v7370_v46 }
 0x7d3   : > { %5821 = vmatpush3.bf16.msra.mxu1 %v7402_v38 }
 0x7d4   : > { %5846 = vmatprep.subr.bf16.mxu1 %v7370_v46 }
 0x7d6   : > { %5196 = vmatmul.mubr.f32.vlgmr.msra.gmra.mrb[28].mxu1 %v7065_v60 }
 0x7d7   : > { %5848 = vmatpush3.bf16.msra.mxu1 %v7403_v39  ;;  %5265 = vmatprep.mubr.msk.f32.mxu1 %vm6046_vm3, %v7371_v47 }
 0x7d8   : > { %5849 = vmatprep.subr.bf16.mxu1 %v7370_v46 }
 0x7db   : > { %5851 = vmatpush3.bf16.msra.mxu1 %v7404_v44 }
 0x7dc   : > { %5852 = vmatprep.subr.bf16.mxu1 %v7370_v46 }
 0x7df   : > { %5854 = vmatpush3.bf16.msra.mxu1 %v7405_v45 }
 0x7e0   : > { %5855 = vmatprep.subr.bf16.mxu1 %v7370_v46 }
 0x7e3   : > { %5857 = vmatpush3.bf16.msra.mxu1 %v7406_v50 }
 0x7e4   : > { %5858 = vmatprep.subr.bf16.mxu1 %v7370_v46 }
 0x7e7   : > { %5860 = vmatpush3.bf16.msra.mxu1 %v7407_v51 }
 0x7e8   : > { %5861 = vmatprep.subr.bf16.mxu1 %v7370_v46 }
 0x7eb   : > { %5863 = vmatpush3.bf16.msra.mxu1 %v7408_v56 }
 0x7ec   : > { %5864 = vmatprep.subr.bf16.mxu1 %v7370_v46 }
 0x7ef   : > { %5866 = vmatpush3.bf16.msra.mxu1 %v7409_v58 }
 0x7f0   : > { %5867 = vmatprep.subr.bf16.mxu1 %v7370_v46 }
 0x7f3   : > { %5869 = vmatpush3.bf16.msra.mxu1 %v7410_v63 }
 0x7f4   : > { %5308 = vmatprep.subr.mxu1 %v7371_v47 }
 0x84d   : > { %v2939_v40 = vpop.f32.mrb[24].mxu0 }
 0x84e   : > { %v5087_v16 = vpop.f32.mrb[25].mxu0  ;;  %v5905_v7 = vadd.f32 %v6877_v61, %v2939_v40 }
 0x850   : > { %v3931_v10 = vmul.f32 -1.442695, %v5905_v7 }
 0x851   : > { %v3009_v28 = vpop.f32.mrb[26].mxu0 }
 0x852   : > { %v5092_v34 = vpop.f32.mrb[27].mxu0  ;;  %v3010_v3 = vadd.f32 %v6886_v23, %v3009_v28  ;;  %v7413_v28 = vld [vmem:[#allocation18_spill] sm:$0xff] }
 0x865   : > { %v2796_v8 = vpop.f32.mrb[24].mxu1 }
 0x866   : > { %v5077_v21 = vpop.f32.mrb[25].mxu1  ;;  %v2797_v24 = vadd.f32 %v6891_v6, %v2796_v8 }
 0x869   : > { %v2869_v55 = vpop.f32.mrb[22].mxu1 }
 0x86a   : > { %v5903_v57 = vadd.f32 %v6875_v49, %v2869_v55  ;;  %v5082_v29 = vpop.f32.mrb[23].mxu1 }
 0x86c   : > { %v3930_v4 = vmul.f32 -1.442695, %v5903_v57 }
 0x86e   : > { %5994 = vpow2.f32 %v3930_v4 }
 0x86f   : > { %5996 = vpow2.f32 %v3931_v10 }
 0x871   : > { %v3173_v35 = vpop.f32.mrb[28].mxu0 }
 0x872   : > { %v3174_v54 = vadd.f32 %v6028_v53, %v3173_v35  ;;  %v5162_v22 = vpop.f32.mrb[29].mxu0 }
 0x874   : > { %v3254_v52 = vadd.f32 %v3174_v54, %v7411_v9 }
 0x876   : > { %v3933_v39 = vmul.f32 -1.442695, %v3254_v52  ;;  %v6029_v52 = vld [vmem:[%s7295_s5] ss:$0 sm:$0xff] }
 0x878   : > { %v5995_v2 = vpop.eup %5994 }
 0x879   : > { %v3017_v18 = vadd.f32 1.0, %v5995_v2  ;;  %v5997_v17 = vpop.eup %5996 }
 0x87a   : > { %v3024_v5 = vadd.f32 1.0, %v5997_v17  ;;  %v6031_v17 = vld [vmem:[%s7298_s8 + $0x2] sm:$0x3] }
 0x87b   : > { %5998 = vrcp.f32 %v3017_v18 }
 0x87c   : > { %6000 = vrcp.f32 %v3024_v5 }
 0x885   : > { %v5999_v37 = vpop.eup %5998 }
 0x886   : > { %v3027_v25 = vmul.f32 %v5999_v37, %v3010_v3  ;;  %v6001_v26 = vpop.eup %6000 }
 0x887   : > { %v3030_v27 = vsub.f32 1.0, %v6001_v26  ;;  %v3032_v38 = vmul.f32 %v6001_v26, %v7055_v43 }
 0x888   : > { %v3028_v15 = vadd.f32 %v3027_v25, %v2797_v24 }
 0x889   : > { %v3103_v62 = vpop.f32.mrb[26].mxu1 }
 0x88a   : > { %6002 = vtanh.f32 %v3028_v15  ;;  %v3104_v31 = vadd.f32 %v7050_v11, %v3103_v62  ;;  %v5127_v41 = vpop.f32.mrb[27].mxu1 }
 0x88c   : > { %v3247_v19 = vadd.f32 %v3104_v31, %v7412_v12 }
 0x88e   : > { %v3932_v20 = vmul.f32 -1.442695, %v3247_v19 }
 0x890   : > { %6004 = vpow2.f32 %v3932_v20 }
 0x891   : > { %6006 = vpow2.f32 %v3933_v39 }
 0x894   : > { %v6003_v32 = vpop.eup %6002 }
 0x895   : > { %v3031_v33 = vmul.f32 %v6003_v32, %v3030_v27 }
 0x897   : > { %v7214_v44 = vadd.f32 %v3032_v38, %v3031_v33 }
 0x89a   : > { %v6005_v45 = vpop.eup %6004 }
 0x89b   : > { %v3251_v50 = vadd.f32 1.0, %v6005_v45  ;;  %v6007_v51 = vpop.eup %6006 }
 0x89c   : > { %v3258_v11 = vadd.f32 1.0, %v6007_v51 }
 0x89d   : > { %6008 = vrcp.f32 %v3251_v50 }
 0x89e   : > { %6010 = vrcp.f32 %v3258_v11 }
 0x8a7   : > { %v6009_v40 = vpop.eup %6008 }
 0x8a8   : > { %v6011_v43 = vpop.eup %6010 }
 0x8a9   : > { %v3243_v56 = vpop.f32.mrb[28].mxu1  ;;  %v3264_v8 = vsub.f32 1.0, %v6011_v43  ;;  %v3266_v57 = vmul.f32 %v6011_v43, %v7065_v60  ;;  %v6030_v60 = vld [vmem:[%s7296_s6] ss:$0 sm:$0xff] }
 0x8aa   : > { %v3244_v58 = vadd.f32 %v7060_v36, %v3243_v56  ;;  %v5197_v63 = vpop.f32.mrb[29].mxu1 }
 0x8ab   : > { %v3943_v63 = vld [vmem:[%s7301_s11] ss:$0 sm:$0xff] (!%p3942_p5) }
 0x8ac   : > { %v3261_v16 = vmul.f32 %v6009_v40, %v3244_v58 }
 0x8ae   : > { %v3262_v34 = vadd.f32 %v3261_v16, %v7413_v28  ;;  %v3944_v16 = vld [vmem:[%s7302_s12] ss:$0 sm:$0xff] (!%p3942_p5) }
 0x8b0   : > { %6012 = vtanh.f32 %v3262_v34 }
 0x8ba   : > { %v6013_v21 = vpop.eup %6012 }
 0x8bb   : > { %v3265_v55 = vmul.f32 %v6013_v21, %v3264_v8 }
 0x8bd   : > { %v3267_v29 = vadd.f32 %v3266_v57, %v3265_v55 }
 0x8bf   : > { %3268 = vadd.xlane.f32.xlu0 %v3267_v29  ;;  %3725 = vst [vmem:[#allocation3] sm:$0xff] %v3267_v29 }
 0x94c   : > { %v3269_v4 = vpop.xlane.xlu0 %3268 }
 0x94d   : > { %v3270_v7 = vmul.f32 0.0078125, %v3269_v4 }
 0x94f   : > { %v3271_v10 = vsub.f32 %v3267_v29, %v3270_v7 }
 0x951   : > { %v3272_v36 = vmul.f32 %v3271_v10, %v3271_v10 }
 0x953   : > { %3273 = vadd.xlane.f32.xlu1 %v3272_v36 }
 0x9e0   : > { %v3274_v35 = vpop.xlane.xlu1 %3273 }
 0x9e1   : > { %v3275_v53 = vmul.f32 0.0078125, %v3274_v35 }
 0x9e3   : > { %v3276_v54 = vadd.f32 1e-05, %v3275_v53 }
 0x9e5   : > { %6014 = vrsqrt.f32 %v3276_v54 }
 0x9ef   : > { %v6015_v22 = vpop.eup %6014 }
 0x9f0   : > { %v3278_v9 = vmul.f32 %v6015_v22, %v3271_v10 }
 0x9f2   : > { %v3279_v2 = vmul.f32 %v6029_v52, %v3278_v9 }
 0x9f4   : > { %v3280_v18 = vadd.f32 %v6030_v60, %v3279_v2 }
 0x9f6   : > { %5231 = vmatmul.mubr.f32.vlgmr.msra.gmra.mrb[30].mxu0 %v3280_v18  ;;  %5266 = vmatmul.mubr.f32.vlgmr.msra.gmra.mrb[30].mxu1 %v3280_v18 }
 0x9f7   : > { %5872 = vmatpush3.bf16.msra.mxu0 %v6650_v13  ;;  %5309 = vmatpush3.msk.msra.mxu1 %vm1391_vm4, %v6031_v17  ;;  %v6032_v13 = vld [vmem:[%s7298_s8 + $0x4] sm:$0x3] }
 0x9f8   : > { %5873 = vmatprep.subr.bf16.mxu0 %v7370_v46  ;;  %5310 = vmatprep.mubr.msk.f32.mxu1 %vm6046_vm3, %v7371_v47 }
 0x9f9   : > { %5313 = vmatprep.subr.mxu1 %v7371_v47  ;;  %5300 = vmatprep.mubr.msk.f32.mxu0 %vm6046_vm3, %v7371_v47 }
 0x9fb   : > { %5875 = vmatpush3.bf16.msra.mxu0 %v6669_v30  ;;  %v6033_v30 = vld [vmem:[%s7298_s8] sm:$0x3] }
 0x9fc   : > { %5876 = vmatprep.subr.bf16.mxu0 %v7370_v46 }
 0x9fe   : > { %5311 = vmatmul.mubr.msk.f32.vlgmr.msra.gmra.mrb[30].mxu1 %vm1387_vm5, %v7214_v44 }
 0x9ff   : > { %5878 = vmatpush3.bf16.msra.mxu0 %v6686_v1  ;;  %5314 = vmatpush3.msk.msra.mxu1 %vm1391_vm4, %v6032_v13 }
 0xa00   : > { %5879 = vmatprep.subr.bf16.mxu0 %v7370_v46  ;;  %5315 = vmatprep.mubr.msk.f32.mxu1 %vm6046_vm3, %v7371_v47 }
 0xa02   : > { %5316 = vmatmul.mubr.msk.f32.vlgmr.msra.gmra.mrb[32].mxu1 %vm1387_vm5, %v7214_v44 }
 0xa03   : > { %5881 = vmatpush3.bf16.msra.mxu0 %v6707_v59 }
 0xa04   : > { %5882 = vmatprep.subr.bf16.mxu0 %v7370_v46 }
 0xa07   : > { %5884 = vmatpush3.bf16.msra.mxu0 %v7373_v0 }
 0xa08   : > { %5885 = vmatprep.subr.bf16.mxu0 %v7370_v46 }
 0xa0b   : > { %5887 = vmatpush3.bf16.msra.mxu0 %v6737_v42 }
 0xa0c   : > { %5888 = vmatprep.subr.bf16.mxu0 %v7370_v46 }
 0xa0f   : > { %5890 = vmatpush3.bf16.msra.mxu0 %v6749_v48 }
 0xa10   : > { %5891 = vmatprep.subr.bf16.mxu0 %v7370_v46 }
 0xa13   : > { %5893 = vmatpush3.bf16.msra.mxu0 %v6761_v14 }
 0xa14   : > { %5303 = vmatprep.subr.mxu0 %v7371_v47 }
 0xa16   : > { %5301 = vmatmul.mubr.f32.vlgmr.msra.gmra.mrb[32].mxu0 %v3280_v18 }
 0xa17   : > { %5304 = vmatpush3.msk.msra.mxu0 %vm1391_vm4, %v6033_v30  ;;  %5305 = vmatprep.mubr.msk.f32.mxu0 %vm6046_vm3, %v7371_v47 }
 0xa1a   : > { %5306 = vmatmul.mubr.msk.f32.vlgmr.msra.gmra.mrb[30].mxu0 %vm1387_vm5, %v7214_v44 }
 0xad1   : > { %v3630_v1 = vpop.f32.mrb[30].mxu1 }
 0xad2   : > { %v5312_v59 = vpop.f32.mrb[31].mxu1  ;;  %v5909_v24 = vadd.f32 %v6877_v61, %v3630_v1 }
 0xad4   : > { %v3941_v25 = vmul.f32 -1.442695, %v5909_v24 }
 0xad5   : > { %v3700_v46 = vpop.f32.mrb[32].mxu1 }
 0xad6   : > { %v5317_v48 = vpop.f32.mrb[33].mxu1  ;;  %v3701_v41 = vadd.f32 %v6886_v23, %v3700_v46 }
 0xae9   : > { %v3487_v14 = vpop.f32.mrb[32].mxu0 }
 0xaea   : > { %v5302_v42 = vpop.f32.mrb[33].mxu0  ;;  %v3488_v19 = vadd.f32 %v6891_v6, %v3487_v14 }
 0xaed   : > { %v3560_v0 = vpop.f32.mrb[30].mxu0 }
 0xaee   : > { %v5907_v5 = vadd.f32 %v6875_v49, %v3560_v0  ;;  %v5307_v3 = vpop.f32.mrb[31].mxu0 }
 0xaf0   : > { %v3940_v37 = vmul.f32 -1.442695, %v5907_v5 }
 0xaf2   : > { %6016 = vpow2.f32 %v3940_v37 }
 0xaf3   : > { %6018 = vpow2.f32 %v3941_v25 }
 0xafc   : > { %v6017_v47 = vpop.eup %6016 }
 0xafd   : > { %v3708_v15 = vadd.f32 1.0, %v6017_v47  ;;  %v6019_v62 = vpop.eup %6018 }
 0xafe   : > { %v3715_v31 = vadd.f32 1.0, %v6019_v62 }
 0xaff   : > { %6020 = vrcp.f32 %v3708_v15 }
 0xb00   : > { %6022 = vrcp.f32 %v3715_v31 }
 0xb09   : > { %v6021_v12 = vpop.eup %6020 }
 0xb0a   : > { %v3718_v20 = vmul.f32 %v6021_v12, %v3701_v41  ;;  %v6023_v26 = vpop.eup %6022 }
 0xb0b   : > { %v3721_v27 = vsub.f32 1.0, %v6023_v26  ;;  %v3723_v32 = vmul.f32 %v6023_v26, %v7214_v44 }
 0xb0c   : > { %v3719_v49 = vadd.f32 %v3718_v20, %v3488_v19 }
 0xb0e   : > { %6024 = vtanh.f32 %v3719_v49 }
 0xb17   : > { %3730 = sbr.rel (%p3942_p5) target bundleno = 3159 (0xc57), region = 80 }
 0xb18   : > { %v6025_v61 = vpop.eup %6024 }
 0xb19   : > { %v3722_v33 = vmul.f32 %v6025_v61, %v3721_v27 }
 0xb1b   : > { %v3724_v38 = vadd.f32 %v3723_v32, %v3722_v33 }
 0xb1d   : > { %3726 = vst.msk [vmem:[#allocation4] sm:$0xff] %vm1387_vm5, %v3724_v38  ;;  %v3731_v23 = vsel (!%p3942_p5), %vm1387_vm5, %v3724_v38, 0.0 }
 0xb1e   : > { %3732 = vadd.xlane.f32.xlu0 %v3731_v23 }
 0xbab   : > { %v3733_v39 = vpop.xlane.xlu0 %3732 }
 0xbac   : > { %v3735_v6 = vmul.f32 0.5, %v3733_v39 }
 0xbae   : > { %v3736_v45 = vsub.f32 %v3724_v38, %v3735_v6 }
 0xbb0   : > { %v3737_v50 = vmul.f32 %v3736_v45, %v3736_v45 }
 0xbb2   : > { %v3738_v51 = vsel %vm1387_vm5, %v3737_v50, 0.0 }
 0xbb3   : > { %3739 = vadd.xlane.f32.xlu0 %v3738_v51 }
 0xc40   : > { %v3740_v11 = vpop.xlane.xlu0 %3739 }
 0xc41   : > { %v3741_v56 = vmul.f32 0.5, %v3740_v11 }
 0xc43   : > { %v3742_v44 = vadd.f32 1e-05, %v3741_v56 }
 0xc45   : > { %6034 = vrsqrt.f32 %v3742_v44 }
 0xc4f   : > { %v6035_v58 = vpop.eup %6034 }
 0xc50   : > { %v3744_v40 = vmul.f32 %v6035_v58, %v3736_v45 }
 0xc52   : > { %v3752_v28 = vmul.f32 %v3943_v63, %v3744_v40 }
 0xc54   : > { %v3760_v34 = vadd.f32 %v3944_v16, %v3752_v28 }
 0xc56   : > { %3761 = vst.msk [vmem:[%s7303_s13] sm:$0xff] %vm1387_vm5, %v3760_v34 }
 0xc57 PF: > { %s23_s25 = sadd.s32 1, %s6042_s25  }
 0xc58   : > { %p20_p6 = scmp.ge.s32.totalorder %s23_s25, 4  }
 0xc5a   :  { %22 = sbr.rel (!%p20_p6) target bundleno = 1 (0x1), region = 124 }

</bundles_post_ra>
